<compile_context>
chip_gen: v7x
topology: tpu7x:2x2x1
jax: 0.10.0
libtpu: 0.0.40
codegen_flags: <defaults>
</compile_context>

<pallas_src>
import math

import jax
import jax.numpy as jnp
from jax import lax
from jax.experimental import pallas as pl

# ---- model hyper-parameters (small, consistent with the PyTorch module) ----
VOCAB_SIZE = 30
N_LAYERS = 2
N_HEADS = 1            # head_size == n_embed // n_heads == n_embed
N_EMBED = 32
MAX_SEQ_LEN = 16
N_CLASSES = 2
BATCH = 2
LANE_PAD = 128         # classifier output padded to a full 128-lane width


# --------------------------------------------------------------------------
# small math helpers (all run inside the kernel)
# --------------------------------------------------------------------------
def _layer_norm(x, w, b, eps):
    # torch.nn.LayerNorm over the last dim (biased variance); rsqrt -> EUP slot
    mean = jnp.mean(x, axis=-1, keepdims=True)
    c = x - mean
    var = jnp.mean(c * c, axis=-1, keepdims=True)
    return c * lax.rsqrt(var + eps) * w + b


def _gelu(x):
    # exact (erf) GELU, matching torch.nn.GELU default
    return 0.5 * x * (1.0 + lax.erf(x * jnp.float32(1.0 / math.sqrt(2.0))))


def _softmax(x):
    m = jnp.max(x, axis=-1, keepdims=True)
    e = jnp.exp(x - m)
    return e * pl.reciprocal(jnp.sum(e, axis=-1, keepdims=True), approx=True)


# --------------------------------------------------------------------------
# the kernel: entire NanoBERT forward in one invocation
# --------------------------------------------------------------------------
def nanobert_kernel(
    ids_col_ref,     # (B*S, 1) int32   — token ids, column layout (for the gather)
    ids_row_ref,     # (B, S)   int32   — token ids, row layout (for the key mask)
    wemb_ref,        # (VOCAB, E)
    pemb_ref,        # (S, E)
    vec_ref,         # (2 + 6*L + 1, E) — LN gammas/betas + E-wide biases slab
    wqkv_ref,        # (L, E, 3E)       — fused q|k|v weights
    bqkv_ref,        # (L, 1, 3E)
    wproj_ref,       # (L, E, E)
    w1_ref,          # (L, E, 4E)
    b1_ref,          # (L, 1, 4E)
    w2_ref,          # (L, 4E, E)
    wpool_ref,       # (E, E)
    wcls_ref,        # (E, 128)  — classifier weight zero-padded to 128 lanes
    bcls_ref,        # (1, 128)
    out_ref,         # (B*S, 128) f32   — lane-dense logits
):
    V, E = wemb_ref.shape
    S = pemb_ref.shape[0]
    BS = out_ref.shape[0]
    B = BS // S
    L = wqkv_ref.shape[0]

    ids_col = ids_col_ref[...]                       # (BS, 1) int32
    ids_row = ids_row_ref[...]                       # (B, S)  int32

    # ---- word-embedding gather as a one-hot matmul (stays on the MXU) ----
    vocab_iota = lax.broadcasted_iota(jnp.int32, (BS, V), 1)
    onehot = (ids_col == vocab_iota).astype(jnp.float32)          # (BS, V)
    x = jnp.dot(onehot, wemb_ref[...], preferred_element_type=jnp.float32)  # (BS, E)

    # ---- position embeddings broadcast over batch ----
    pos = pemb_ref[...]                              # (S, E)
    x = x + jnp.concatenate([pos] * B, axis=0)       # (BS, E)

    # ---- embedding LayerNorm (eps=1e-12); dropout = identity (eval) ----
    x = _layer_norm(x, vec_ref[0], vec_ref[1], 1e-12)

    inv_sqrt_e = jnp.float32(1.0 / math.sqrt(E))
    kvalid = ids_row > 0                             # (B, S) bool, True = attended key

    for l in range(L):                               # static unroll, L = 2
        base = 2 + 6 * l

        # x = layer_norm1(x)
        h = _layer_norm(x, vec_ref[base + 0], vec_ref[base + 1], 1e-5)

        # fused q|k|v projection: one (BS, E) x (E, 3E) matmul
        qkv = (jnp.dot(h, wqkv_ref[l], preferred_element_type=jnp.float32)
               + bqkv_ref[l])                        # (BS, 3E)

        # single-head attention, per batch (B is tiny and static)
        ctx_parts = []
        for b in range(B):
            blk = qkv[b * S:(b + 1) * S]             # (S, 3E), static slice
            qb = blk[:, 0:E]
            kb = blk[:, E:2 * E]
            vb = blk[:, 2 * E:3 * E]
            # q @ k^T via dot_general contracting the E dims — no transpose
            att = lax.dot_general(qb, kb, (((1,), (1,)), ((), ())),
                                  preferred_element_type=jnp.float32) * inv_sqrt_e
            # mask padded keys (integer-derived mask, matches masked_fill(mask==0,-1e9))
            att = jnp.where(kvalid[b][None, :], att, jnp.float32(-1e9))
            p = _softmax(att)                        # dropout = identity (eval)
            ctx_parts.append(jnp.dot(p, vb, preferred_element_type=jnp.float32))
        ctx = jnp.concatenate(ctx_parts, axis=0)     # (BS, E)

        attn = (jnp.dot(ctx, wproj_ref[l], preferred_element_type=jnp.float32)
                + vec_ref[base + 2])
        # residual adds the *normed* x, exactly as in the PyTorch BertLayer
        x = h + attn

        # x = layer_norm2(x); out = x + feed_forward(x)
        h2 = _layer_norm(x, vec_ref[base + 3], vec_ref[base + 4], 1e-5)
        ff = (jnp.dot(h2, w1_ref[l], preferred_element_type=jnp.float32)
              + b1_ref[l])                           # (BS, 4E) = (32, 128), lane-dense
        ff = _gelu(ff)
        ff = (jnp.dot(ff, w2_ref[l], preferred_element_type=jnp.float32)
              + vec_ref[base + 5])
        x = h2 + ff

    # ---- pooler (dense + GELU over every position, as in the reference) ----
    pooled = _gelu(jnp.dot(x, wpool_ref[...], preferred_element_type=jnp.float32)
                   + vec_ref[2 + 6 * L])

    # ---- classifier, written lane-dense (128 wide); wrapper slices [:, :C] ----
    out_ref[...] = (jnp.dot(pooled, wcls_ref[...], preferred_element_type=jnp.float32)
                    + bcls_ref[...])


# --------------------------------------------------------------------------
# parameter construction (deterministic synthetic weights, packed into slabs)
# --------------------------------------------------------------------------
def init_params(key):
    """Linear weights stored as (in, out); biases zero (packed into slabs)."""
    ks = iter(jax.random.split(key, 16))
    scale = 0.02

    def w(shape):
        return (scale * jax.random.normal(next(ks), shape)).astype(jnp.float32)

    L, E, C, H = N_LAYERS, N_EMBED, N_CLASSES, 4 * N_EMBED

    # vector slab rows: 0 lnE_w, 1 lnE_b,
    #   per layer l (base = 2 + 6l): ln1_w, ln1_b, bproj, ln2_w, ln2_b, b2,
    #   last row: bpool
    n_rows = 2 + 6 * L + 1
    vec = jnp.zeros((n_rows, E), jnp.float32)
    vec = vec.at[0].set(1.0)                       # lnE gamma
    for l in range(L):
        base = 2 + 6 * l
        vec = vec.at[base + 0].set(1.0)            # ln1 gamma
        vec = vec.at[base + 3].set(1.0)            # ln2 gamma
    # all biases (lnE_b, ln1_b, ln2_b, bproj, b2, bpool) remain zero

    wcls = w((E, C))
    wcls_pad = jnp.zeros((E, LANE_PAD), jnp.float32).at[:, :C].set(wcls)
    bcls_pad = jnp.zeros((1, LANE_PAD), jnp.float32)

    return dict(
        wemb=w((VOCAB_SIZE, E)),
        pemb=w((MAX_SEQ_LEN, E)),
        vec_slab=vec,
        wqkv=w((L, E, 3 * E)),
        bqkv=jnp.zeros((L, 1, 3 * E), jnp.float32),
        wproj=w((L, E, E)),
        w1=w((L, E, H)),
        b1=jnp.zeros((L, 1, H), jnp.float32),
        w2=w((L, H, E)),
        wpool=w((E, E)),
        wcls_pad=wcls_pad,
        bcls_pad=bcls_pad,
    )


# --------------------------------------------------------------------------
# wrapper
# --------------------------------------------------------------------------
@jax.jit
def nanobert_for_classification(input_ids, params):
    B, S = input_ids.shape
    C = N_CLASSES
    BS = B * S

    ids_row = input_ids.astype(jnp.int32)          # (B, S)   — for the key mask
    ids_col = ids_row.reshape(BS, 1)               # (BS, 1)  — for the gather

    args = (
        ids_col, ids_row,
        params["wemb"], params["pemb"], params["vec_slab"],
        params["wqkv"], params["bqkv"], params["wproj"],
        params["w1"], params["b1"], params["w2"],
        params["wpool"], params["wcls_pad"], params["bcls_pad"],
    )

    # grid-less call: single invocation, every operand whole-resident in VMEM
    padded = pl.pallas_call(
        nanobert_kernel,
        out_shape=jax.ShapeDtypeStruct((BS, LANE_PAD), jnp.float32),
    )(*args)

    return padded[:, :C].reshape(B, S, C)


if __name__ == "__main__":
    key = jax.random.PRNGKey(0)
    pkey, dkey = jax.random.split(key)
    params = init_params(pkey)

    # token ids in [0, VOCAB_SIZE); zeros act as padding and exercise the mask
    input_ids = jax.random.randint(
        dkey, (BATCH, MAX_SEQ_LEN), 0, VOCAB_SIZE, dtype=jnp.int32)

    logits = nanobert_for_classification(input_ids, params)
    jax.block_until_ready(logits)
    assert logits.shape == (BATCH, MAX_SEQ_LEN, N_CLASSES)
    assert bool(jnp.all(jnp.isfinite(logits)))
    print("KERNEL_OK")
</pallas_src>

<mosaic_0001>
module attributes {stable_mosaic.version = 11 : i64} {
  func.func @nanobert_kernel(%arg0: memref<32x1xi32, #tpu.memory_space<vmem>>, %arg1: memref<2x16xi32, #tpu.memory_space<vmem>>, %arg2: memref<30x32xf32, #tpu.memory_space<vmem>>, %arg3: memref<16x32xf32, #tpu.memory_space<vmem>>, %arg4: memref<15x32xf32, #tpu.memory_space<vmem>>, %arg5: memref<2x32x96xf32, #tpu.memory_space<vmem>>, %arg6: memref<2x1x96xf32, #tpu.memory_space<vmem>>, %arg7: memref<2x32x32xf32, #tpu.memory_space<vmem>>, %arg8: memref<2x32x128xf32, #tpu.memory_space<vmem>>, %arg9: memref<2x1x128xf32, #tpu.memory_space<vmem>>, %arg10: memref<2x128x32xf32, #tpu.memory_space<vmem>>, %arg11: memref<32x32xf32, #tpu.memory_space<vmem>>, %arg12: memref<32x128xf32, #tpu.memory_space<vmem>>, %arg13: memref<1x128xf32, #tpu.memory_space<vmem>>, %arg14: memref<32x128xf32, #tpu.memory_space<vmem>>) attributes {dimension_semantics = [], scalar_prefetch = 0 : i64, scratch_operands = 0 : i64, tpu.core_type = #tpu.core_type<tc>} {
    %c0 = arith.constant 0 : index
    %c0_0 = arith.constant 0 : index
    %0 = vector.load %arg0[%c0, %c0_0] : memref<32x1xi32, #tpu.memory_space<vmem>>, vector<32x1xi32>
    %c0_1 = arith.constant 0 : index
    %c0_2 = arith.constant 0 : index
    %1 = vector.load %arg1[%c0_1, %c0_2] : memref<2x16xi32, #tpu.memory_space<vmem>>, vector<2x16xi32>
    %2 = tpu.iota {dimensions = array<i32: 1>} : vector<32x30xi32>
    %3 = vector.broadcast %0 : vector<32x1xi32> to vector<32x30xi32>
    %4 = arith.cmpi eq, %3, %2 : vector<32x30xi32>
    %5 = arith.extui %4 : vector<32x30xi1> to vector<32x30xi32>
    %6 = arith.sitofp %5 : vector<32x30xi32> to vector<32x30xf32>
    %c0_3 = arith.constant 0 : index
    %c0_4 = arith.constant 0 : index
    %7 = vector.load %arg2[%c0_3, %c0_4] : memref<30x32xf32, #tpu.memory_space<vmem>>, vector<30x32xf32>
    %cst = arith.constant dense<0.000000e+00> : vector<32x32xf32>
    %8 = tpu.matmul %6, %7, %cst {dimension_numbers = #tpu.dot_dimension_numbers<[1], [0], [0], [1], [0, 0, 1, 1], [], []>} : vector<32x30xf32>, vector<30x32xf32>, vector<32x32xf32> -> vector<32x32xf32>
    %c0_5 = arith.constant 0 : index
    %c0_6 = arith.constant 0 : index
    %9 = vector.load %arg3[%c0_5, %c0_6] : memref<16x32xf32, #tpu.memory_space<vmem>>, vector<16x32xf32>
    %10 = tpu.concatenate %9, %9 in 0 : vector<16x32xf32>, vector<16x32xf32> -> vector<32x32xf32>
    %11 = arith.addf %8, %10 : vector<32x32xf32>
    %c0_7 = arith.constant 0 : index
    %c0_8 = arith.constant 0 : index
    %12 = vector.load %arg4[%c0_7, %c0_8] : memref<15x32xf32, #tpu.memory_space<vmem>>, vector<1x32xf32>
    %13 = vector.shape_cast %12 : vector<1x32xf32> to vector<32xf32>
    %c1 = arith.constant 1 : index
    %c0_9 = arith.constant 0 : index
    %14 = vector.load %arg4[%c1, %c0_9] : memref<15x32xf32, #tpu.memory_space<vmem>>, vector<1x32xf32>
    %15 = vector.shape_cast %14 : vector<1x32xf32> to vector<32xf32>
    %cst_10 = arith.constant dense<0.000000e+00> : vector<32xf32>
    %16 = vector.multi_reduction <add>, %11, %cst_10 [1] : vector<32x32xf32> to vector<32xf32>
    %17 = vector.shape_cast %16 : vector<32xf32> to vector<32x1xf32>
    %cst_11 = arith.constant 3.200000e+01 : f32
    %18 = vector.broadcast %cst_11 : f32 to vector<32x1xf32>
    %19 = arith.divf %17, %18 : vector<32x1xf32>
    %20 = vector.broadcast %19 : vector<32x1xf32> to vector<32x32xf32>
    %21 = arith.subf %11, %20 : vector<32x32xf32>
    %22 = arith.mulf %21, %21 : vector<32x32xf32>
    %cst_12 = arith.constant dense<0.000000e+00> : vector<32xf32>
    %23 = vector.multi_reduction <add>, %22, %cst_12 [1] : vector<32x32xf32> to vector<32xf32>
    %24 = vector.shape_cast %23 : vector<32xf32> to vector<32x1xf32>
    %cst_13 = arith.constant 3.200000e+01 : f32
    %25 = vector.broadcast %cst_13 : f32 to vector<32x1xf32>
    %26 = arith.divf %24, %25 : vector<32x1xf32>
    %cst_14 = arith.constant 9.99999996E-13 : f32
    %27 = vector.broadcast %cst_14 : f32 to vector<32x1xf32>
    %28 = arith.addf %26, %27 : vector<32x1xf32>
    %29 = math.rsqrt %28 : vector<32x1xf32>
    %30 = vector.broadcast %29 : vector<32x1xf32> to vector<32x32xf32>
    %31 = arith.mulf %21, %30 : vector<32x32xf32>
    %32 = vector.shape_cast %13 : vector<32xf32> to vector<1x32xf32>
    %33 = vector.broadcast %32 : vector<1x32xf32> to vector<32x32xf32>
    %34 = arith.mulf %31, %33 : vector<32x32xf32>
    %35 = vector.shape_cast %15 : vector<32xf32> to vector<1x32xf32>
    %36 = vector.broadcast %35 : vector<1x32xf32> to vector<32x32xf32>
    %37 = arith.addf %34, %36 : vector<32x32xf32>
    %c0_i32 = arith.constant 0 : i32
    %38 = vector.broadcast %c0_i32 : i32 to vector<2x16xi32>
    %39 = arith.cmpi sgt, %1, %38 : vector<2x16xi32>
    %c2 = arith.constant 2 : index
    %c0_15 = arith.constant 0 : index
    %40 = vector.load %arg4[%c2, %c0_15] : memref<15x32xf32, #tpu.memory_space<vmem>>, vector<1x32xf32>
    %41 = vector.shape_cast %40 : vector<1x32xf32> to vector<32xf32>
    %c3 = arith.constant 3 : index
    %c0_16 = arith.constant 0 : index
    %42 = vector.load %arg4[%c3, %c0_16] : memref<15x32xf32, #tpu.memory_space<vmem>>, vector<1x32xf32>
    %43 = vector.shape_cast %42 : vector<1x32xf32> to vector<32xf32>
    %cst_17 = arith.constant dense<0.000000e+00> : vector<32xf32>
    %44 = vector.multi_reduction <add>, %37, %cst_17 [1] : vector<32x32xf32> to vector<32xf32>
    %45 = vector.shape_cast %44 : vector<32xf32> to vector<32x1xf32>
    %cst_18 = arith.constant 3.200000e+01 : f32
    %46 = vector.broadcast %cst_18 : f32 to vector<32x1xf32>
    %47 = arith.divf %45, %46 : vector<32x1xf32>
    %48 = vector.broadcast %47 : vector<32x1xf32> to vector<32x32xf32>
    %49 = arith.subf %37, %48 : vector<32x32xf32>
    %50 = arith.mulf %49, %49 : vector<32x32xf32>
    %cst_19 = arith.constant dense<0.000000e+00> : vector<32xf32>
    %51 = vector.multi_reduction <add>, %50, %cst_19 [1] : vector<32x32xf32> to vector<32xf32>
    %52 = vector.shape_cast %51 : vector<32xf32> to vector<32x1xf32>
    %cst_20 = arith.constant 3.200000e+01 : f32
    %53 = vector.broadcast %cst_20 : f32 to vector<32x1xf32>
    %54 = arith.divf %52, %53 : vector<32x1xf32>
    %cst_21 = arith.constant 9.99999974E-6 : f32
    %55 = vector.broadcast %cst_21 : f32 to vector<32x1xf32>
    %56 = arith.addf %54, %55 : vector<32x1xf32>
    %57 = math.rsqrt %56 : vector<32x1xf32>
    %58 = vector.broadcast %57 : vector<32x1xf32> to vector<32x32xf32>
    %59 = arith.mulf %49, %58 : vector<32x32xf32>
    %60 = vector.shape_cast %41 : vector<32xf32> to vector<1x32xf32>
    %61 = vector.broadcast %60 : vector<1x32xf32> to vector<32x32xf32>
    %62 = arith.mulf %59, %61 : vector<32x32xf32>
    %63 = vector.shape_cast %43 : vector<32xf32> to vector<1x32xf32>
    %64 = vector.broadcast %63 : vector<1x32xf32> to vector<32x32xf32>
    %65 = arith.addf %62, %64 : vector<32x32xf32>
    %c0_22 = arith.constant 0 : index
    %c0_23 = arith.constant 0 : index
    %c0_24 = arith.constant 0 : index
    %66 = vector.load %arg5[%c0_22, %c0_23, %c0_24] : memref<2x32x96xf32, #tpu.memory_space<vmem>>, vector<1x32x96xf32>
    %67 = vector.shape_cast %66 : vector<1x32x96xf32> to vector<32x96xf32>
    %cst_25 = arith.constant dense<0.000000e+00> : vector<32x96xf32>
    %68 = tpu.matmul %65, %67, %cst_25 {dimension_numbers = #tpu.dot_dimension_numbers<[1], [0], [0], [1], [0, 0, 1, 1], [], []>} : vector<32x32xf32>, vector<32x96xf32>, vector<32x96xf32> -> vector<32x96xf32>
    %c0_26 = arith.constant 0 : index
    %c0_27 = arith.constant 0 : index
    %c0_28 = arith.constant 0 : index
    %69 = vector.load %arg6[%c0_26, %c0_27, %c0_28] : memref<2x1x96xf32, #tpu.memory_space<vmem>>, vector<1x1x96xf32>
    %70 = vector.shape_cast %69 : vector<1x1x96xf32> to vector<1x96xf32>
    %71 = vector.broadcast %70 : vector<1x96xf32> to vector<32x96xf32>
    %72 = arith.addf %68, %71 : vector<32x96xf32>
    %73 = vector.extract_strided_slice %72 {offsets = [0, 0], sizes = [16, 96], strides = [1, 1]} : vector<32x96xf32> to vector<16x96xf32>
    %74 = vector.extract_strided_slice %73 {offsets = [0, 0], sizes = [16, 32], strides = [1, 1]} : vector<16x96xf32> to vector<16x32xf32>
    %75 = vector.extract_strided_slice %73 {offsets = [0, 32], sizes = [16, 32], strides = [1, 1]} : vector<16x96xf32> to vector<16x32xf32>
    %76 = vector.extract_strided_slice %73 {offsets = [0, 64], sizes = [16, 32], strides = [1, 1]} : vector<16x96xf32> to vector<16x32xf32>
    %cst_29 = arith.constant dense<0.000000e+00> : vector<16x16xf32>
    %77 = tpu.matmul %74, %75, %cst_29 {dimension_numbers = #tpu.dot_dimension_numbers<[1], [1], [0], [0], [0, 0, 1, 0], [], []>} : vector<16x32xf32>, vector<16x32xf32>, vector<16x16xf32> -> vector<16x16xf32>
    %cst_30 = arith.constant 0.176776692 : f32
    %78 = vector.broadcast %cst_30 : f32 to vector<16x16xf32>
    %79 = arith.mulf %77, %78 : vector<16x16xf32>
    %80 = vector.extract_strided_slice %39 {offsets = [0, 0], sizes = [1, 16], strides = [1, 1]} : vector<2x16xi1> to vector<1x16xi1>
    %81 = vector.shape_cast %80 : vector<1x16xi1> to vector<16xi1>
    %82 = vector.shape_cast %81 : vector<16xi1> to vector<1x16xi1>
    %cst_31 = arith.constant -1.000000e+09 : f32
    %83 = vector.shape_cast %82 : vector<1x16xi1> to vector<1x16xi1>
    %84 = vector.broadcast %83 : vector<1x16xi1> to vector<16x16xi1>
    %85 = vector.broadcast %cst_31 : f32 to vector<16x16xf32>
    %86 = arith.select %84, %79, %85 : vector<16x16xi1>, vector<16x16xf32>
    %cst_32 = arith.constant dense<0xFF800000> : vector<16xf32>
    %87 = vector.multi_reduction <maximumf>, %86, %cst_32 [1] : vector<16x16xf32> to vector<16xf32>
    %88 = vector.shape_cast %87 : vector<16xf32> to vector<16x1xf32>
    %89 = vector.broadcast %88 : vector<16x1xf32> to vector<16x16xf32>
    %90 = arith.subf %86, %89 : vector<16x16xf32>
    %91 = math.exp %90 : vector<16x16xf32>
    %cst_33 = arith.constant dense<0.000000e+00> : vector<16xf32>
    %92 = vector.multi_reduction <add>, %91, %cst_33 [1] : vector<16x16xf32> to vector<16xf32>
    %93 = vector.shape_cast %92 : vector<16xf32> to vector<16x1xf32>
    %94 = tpu.reciprocal %93 {approx = true} : vector<16x1xf32> -> vector<16x1xf32>
    %95 = vector.broadcast %94 : vector<16x1xf32> to vector<16x16xf32>
    %96 = arith.mulf %91, %95 : vector<16x16xf32>
    %cst_34 = arith.constant dense<0.000000e+00> : vector<16x32xf32>
    %97 = tpu.matmul %96, %76, %cst_34 {dimension_numbers = #tpu.dot_dimension_numbers<[1], [0], [0], [1], [0, 0, 1, 1], [], []>} : vector<16x16xf32>, vector<16x32xf32>, vector<16x32xf32> -> vector<16x32xf32>
    %98 = vector.extract_strided_slice %72 {offsets = [16, 0], sizes = [16, 96], strides = [1, 1]} : vector<32x96xf32> to vector<16x96xf32>
    %99 = vector.extract_strided_slice %98 {offsets = [0, 0], sizes = [16, 32], strides = [1, 1]} : vector<16x96xf32> to vector<16x32xf32>
    %100 = vector.extract_strided_slice %98 {offsets = [0, 32], sizes = [16, 32], strides = [1, 1]} : vector<16x96xf32> to vector<16x32xf32>
    %101 = vector.extract_strided_slice %98 {offsets = [0, 64], sizes = [16, 32], strides = [1, 1]} : vector<16x96xf32> to vector<16x32xf32>
    %cst_35 = arith.constant dense<0.000000e+00> : vector<16x16xf32>
    %102 = tpu.matmul %99, %100, %cst_35 {dimension_numbers = #tpu.dot_dimension_numbers<[1], [1], [0], [0], [0, 0, 1, 0], [], []>} : vector<16x32xf32>, vector<16x32xf32>, vector<16x16xf32> -> vector<16x16xf32>
    %cst_36 = arith.constant 0.176776692 : f32
    %103 = vector.broadcast %cst_36 : f32 to vector<16x16xf32>
    %104 = arith.mulf %102, %103 : vector<16x16xf32>
    %105 = vector.extract_strided_slice %39 {offsets = [1, 0], sizes = [1, 16], strides = [1, 1]} : vector<2x16xi1> to vector<1x16xi1>
    %106 = vector.shape_cast %105 : vector<1x16xi1> to vector<16xi1>
    %107 = vector.shape_cast %106 : vector<16xi1> to vector<1x16xi1>
    %cst_37 = arith.constant -1.000000e+09 : f32
    %108 = vector.shape_cast %107 : vector<1x16xi1> to vector<1x16xi1>
    %109 = vector.broadcast %108 : vector<1x16xi1> to vector<16x16xi1>
    %110 = vector.broadcast %cst_37 : f32 to vector<16x16xf32>
    %111 = arith.select %109, %104, %110 : vector<16x16xi1>, vector<16x16xf32>
    %cst_38 = arith.constant dense<0xFF800000> : vector<16xf32>
    %112 = vector.multi_reduction <maximumf>, %111, %cst_38 [1] : vector<16x16xf32> to vector<16xf32>
    %113 = vector.shape_cast %112 : vector<16xf32> to vector<16x1xf32>
    %114 = vector.broadcast %113 : vector<16x1xf32> to vector<16x16xf32>
    %115 = arith.subf %111, %114 : vector<16x16xf32>
    %116 = math.exp %115 : vector<16x16xf32>
    %cst_39 = arith.constant dense<0.000000e+00> : vector<16xf32>
    %117 = vector.multi_reduction <add>, %116, %cst_39 [1] : vector<16x16xf32> to vector<16xf32>
    %118 = vector.shape_cast %117 : vector<16xf32> to vector<16x1xf32>
    %119 = tpu.reciprocal %118 {approx = true} : vector<16x1xf32> -> vector<16x1xf32>
    %120 = vector.broadcast %119 : vector<16x1xf32> to vector<16x16xf32>
    %121 = arith.mulf %116, %120 : vector<16x16xf32>
    %cst_40 = arith.constant dense<0.000000e+00> : vector<16x32xf32>
    %122 = tpu.matmul %121, %101, %cst_40 {dimension_numbers = #tpu.dot_dimension_numbers<[1], [0], [0], [1], [0, 0, 1, 1], [], []>} : vector<16x16xf32>, vector<16x32xf32>, vector<16x32xf32> -> vector<16x32xf32>
    %123 = tpu.concatenate %97, %122 in 0 : vector<16x32xf32>, vector<16x32xf32> -> vector<32x32xf32>
    %c0_41 = arith.constant 0 : index
    %c0_42 = arith.constant 0 : index
    %c0_43 = arith.constant 0 : index
    %124 = vector.load %arg7[%c0_41, %c0_42, %c0_43] : memref<2x32x32xf32, #tpu.memory_space<vmem>>, vector<1x32x32xf32>
    %125 = vector.shape_cast %124 : vector<1x32x32xf32> to vector<32x32xf32>
    %cst_44 = arith.constant dense<0.000000e+00> : vector<32x32xf32>
    %126 = tpu.matmul %123, %125, %cst_44 {dimension_numbers = #tpu.dot_dimension_numbers<[1], [0], [0], [1], [0, 0, 1, 1], [], []>} : vector<32x32xf32>, vector<32x32xf32>, vector<32x32xf32> -> vector<32x32xf32>
    %c4 = arith.constant 4 : index
    %c0_45 = arith.constant 0 : index
    %127 = vector.load %arg4[%c4, %c0_45] : memref<15x32xf32, #tpu.memory_space<vmem>>, vector<1x32xf32>
    %128 = vector.shape_cast %127 : vector<1x32xf32> to vector<32xf32>
    %129 = vector.shape_cast %128 : vector<32xf32> to vector<1x32xf32>
    %130 = vector.broadcast %129 : vector<1x32xf32> to vector<32x32xf32>
    %131 = arith.addf %126, %130 : vector<32x32xf32>
    %132 = arith.addf %65, %131 : vector<32x32xf32>
    %c5 = arith.constant 5 : index
    %c0_46 = arith.constant 0 : index
    %133 = vector.load %arg4[%c5, %c0_46] : memref<15x32xf32, #tpu.memory_space<vmem>>, vector<1x32xf32>
    %134 = vector.shape_cast %133 : vector<1x32xf32> to vector<32xf32>
    %c6 = arith.constant 6 : index
    %c0_47 = arith.constant 0 : index
    %135 = vector.load %arg4[%c6, %c0_47] : memref<15x32xf32, #tpu.memory_space<vmem>>, vector<1x32xf32>
    %136 = vector.shape_cast %135 : vector<1x32xf32> to vector<32xf32>
    %cst_48 = arith.constant dense<0.000000e+00> : vector<32xf32>
    %137 = vector.multi_reduction <add>, %132, %cst_48 [1] : vector<32x32xf32> to vector<32xf32>
    %138 = vector.shape_cast %137 : vector<32xf32> to vector<32x1xf32>
    %cst_49 = arith.constant 3.200000e+01 : f32
    %139 = vector.broadcast %cst_49 : f32 to vector<32x1xf32>
    %140 = arith.divf %138, %139 : vector<32x1xf32>
    %141 = vector.broadcast %140 : vector<32x1xf32> to vector<32x32xf32>
    %142 = arith.subf %132, %141 : vector<32x32xf32>
    %143 = arith.mulf %142, %142 : vector<32x32xf32>
    %cst_50 = arith.constant dense<0.000000e+00> : vector<32xf32>
    %144 = vector.multi_reduction <add>, %143, %cst_50 [1] : vector<32x32xf32> to vector<32xf32>
    %145 = vector.shape_cast %144 : vector<32xf32> to vector<32x1xf32>
    %cst_51 = arith.constant 3.200000e+01 : f32
    %146 = vector.broadcast %cst_51 : f32 to vector<32x1xf32>
    %147 = arith.divf %145, %146 : vector<32x1xf32>
    %cst_52 = arith.constant 9.99999974E-6 : f32
    %148 = vector.broadcast %cst_52 : f32 to vector<32x1xf32>
    %149 = arith.addf %147, %148 : vector<32x1xf32>
    %150 = math.rsqrt %149 : vector<32x1xf32>
    %151 = vector.broadcast %150 : vector<32x1xf32> to vector<32x32xf32>
    %152 = arith.mulf %142, %151 : vector<32x32xf32>
    %153 = vector.shape_cast %134 : vector<32xf32> to vector<1x32xf32>
    %154 = vector.broadcast %153 : vector<1x32xf32> to vector<32x32xf32>
    %155 = arith.mulf %152, %154 : vector<32x32xf32>
    %156 = vector.shape_cast %136 : vector<32xf32> to vector<1x32xf32>
    %157 = vector.broadcast %156 : vector<1x32xf32> to vector<32x32xf32>
    %158 = arith.addf %155, %157 : vector<32x32xf32>
    %c0_53 = arith.constant 0 : index
    %c0_54 = arith.constant 0 : index
    %c0_55 = arith.constant 0 : index
    %159 = vector.load %arg8[%c0_53, %c0_54, %c0_55] : memref<2x32x128xf32, #tpu.memory_space<vmem>>, vector<1x32x128xf32>
    %160 = vector.shape_cast %159 : vector<1x32x128xf32> to vector<32x128xf32>
    %cst_56 = arith.constant dense<0.000000e+00> : vector<32x128xf32>
    %161 = tpu.matmul %158, %160, %cst_56 {dimension_numbers = #tpu.dot_dimension_numbers<[1], [0], [0], [1], [0, 0, 1, 1], [], []>} : vector<32x32xf32>, vector<32x128xf32>, vector<32x128xf32> -> vector<32x128xf32>
    %c0_57 = arith.constant 0 : index
    %c0_58 = arith.constant 0 : index
    %c0_59 = arith.constant 0 : index
    %162 = vector.load %arg9[%c0_57, %c0_58, %c0_59] : memref<2x1x128xf32, #tpu.memory_space<vmem>>, vector<1x1x128xf32>
    %163 = vector.shape_cast %162 : vector<1x1x128xf32> to vector<1x128xf32>
    %164 = vector.broadcast %163 : vector<1x128xf32> to vector<32x128xf32>
    %165 = arith.addf %161, %164 : vector<32x128xf32>
    %cst_60 = arith.constant 5.000000e-01 : f32
    %166 = vector.broadcast %cst_60 : f32 to vector<32x128xf32>
    %167 = arith.mulf %166, %165 : vector<32x128xf32>
    %cst_61 = arith.constant 0.707106769 : f32
    %168 = vector.broadcast %cst_61 : f32 to vector<32x128xf32>
    %169 = arith.mulf %165, %168 : vector<32x128xf32>
    %170 = math.erf %169 : vector<32x128xf32>
    %cst_62 = arith.constant 1.000000e+00 : f32
    %171 = vector.broadcast %cst_62 : f32 to vector<32x128xf32>
    %172 = arith.addf %171, %170 : vector<32x128xf32>
    %173 = arith.mulf %167, %172 : vector<32x128xf32>
    %c0_63 = arith.constant 0 : index
    %c0_64 = arith.constant 0 : index
    %c0_65 = arith.constant 0 : index
    %174 = vector.load %arg10[%c0_63, %c0_64, %c0_65] : memref<2x128x32xf32, #tpu.memory_space<vmem>>, vector<1x128x32xf32>
    %175 = vector.shape_cast %174 : vector<1x128x32xf32> to vector<128x32xf32>
    %cst_66 = arith.constant dense<0.000000e+00> : vector<32x32xf32>
    %176 = tpu.matmul %173, %175, %cst_66 {dimension_numbers = #tpu.dot_dimension_numbers<[1], [0], [0], [1], [0, 0, 1, 1], [], []>} : vector<32x128xf32>, vector<128x32xf32>, vector<32x32xf32> -> vector<32x32xf32>
    %c7 = arith.constant 7 : index
    %c0_67 = arith.constant 0 : index
    %177 = vector.load %arg4[%c7, %c0_67] : memref<15x32xf32, #tpu.memory_space<vmem>>, vector<1x32xf32>
    %178 = vector.shape_cast %177 : vector<1x32xf32> to vector<32xf32>
    %179 = vector.shape_cast %178 : vector<32xf32> to vector<1x32xf32>
    %180 = vector.broadcast %179 : vector<1x32xf32> to vector<32x32xf32>
    %181 = arith.addf %176, %180 : vector<32x32xf32>
    %182 = arith.addf %158, %181 : vector<32x32xf32>
    %c8 = arith.constant 8 : index
    %c0_68 = arith.constant 0 : index
    %183 = vector.load %arg4[%c8, %c0_68] : memref<15x32xf32, #tpu.memory_space<vmem>>, vector<1x32xf32>
    %184 = vector.shape_cast %183 : vector<1x32xf32> to vector<32xf32>
    %c9 = arith.constant 9 : index
    %c0_69 = arith.constant 0 : index
    %185 = vector.load %arg4[%c9, %c0_69] : memref<15x32xf32, #tpu.memory_space<vmem>>, vector<1x32xf32>
    %186 = vector.shape_cast %185 : vector<1x32xf32> to vector<32xf32>
    %cst_70 = arith.constant dense<0.000000e+00> : vector<32xf32>
    %187 = vector.multi_reduction <add>, %182, %cst_70 [1] : vector<32x32xf32> to vector<32xf32>
    %188 = vector.shape_cast %187 : vector<32xf32> to vector<32x1xf32>
    %cst_71 = arith.constant 3.200000e+01 : f32
    %189 = vector.broadcast %cst_71 : f32 to vector<32x1xf32>
    %190 = arith.divf %188, %189 : vector<32x1xf32>
    %191 = vector.broadcast %190 : vector<32x1xf32> to vector<32x32xf32>
    %192 = arith.subf %182, %191 : vector<32x32xf32>
    %193 = arith.mulf %192, %192 : vector<32x32xf32>
    %cst_72 = arith.constant dense<0.000000e+00> : vector<32xf32>
    %194 = vector.multi_reduction <add>, %193, %cst_72 [1] : vector<32x32xf32> to vector<32xf32>
    %195 = vector.shape_cast %194 : vector<32xf32> to vector<32x1xf32>
    %cst_73 = arith.constant 3.200000e+01 : f32
    %196 = vector.broadcast %cst_73 : f32 to vector<32x1xf32>
    %197 = arith.divf %195, %196 : vector<32x1xf32>
    %cst_74 = arith.constant 9.99999974E-6 : f32
    %198 = vector.broadcast %cst_74 : f32 to vector<32x1xf32>
    %199 = arith.addf %197, %198 : vector<32x1xf32>
    %200 = math.rsqrt %199 : vector<32x1xf32>
    %201 = vector.broadcast %200 : vector<32x1xf32> to vector<32x32xf32>
    %202 = arith.mulf %192, %201 : vector<32x32xf32>
    %203 = vector.shape_cast %184 : vector<32xf32> to vector<1x32xf32>
    %204 = vector.broadcast %203 : vector<1x32xf32> to vector<32x32xf32>
    %205 = arith.mulf %202, %204 : vector<32x32xf32>
    %206 = vector.shape_cast %186 : vector<32xf32> to vector<1x32xf32>
    %207 = vector.broadcast %206 : vector<1x32xf32> to vector<32x32xf32>
    %208 = arith.addf %205, %207 : vector<32x32xf32>
    %c1_75 = arith.constant 1 : index
    %c0_76 = arith.constant 0 : index
    %c0_77 = arith.constant 0 : index
    %209 = vector.load %arg5[%c1_75, %c0_76, %c0_77] : memref<2x32x96xf32, #tpu.memory_space<vmem>>, vector<1x32x96xf32>
    %210 = vector.shape_cast %209 : vector<1x32x96xf32> to vector<32x96xf32>
    %cst_78 = arith.constant dense<0.000000e+00> : vector<32x96xf32>
    %211 = tpu.matmul %208, %210, %cst_78 {dimension_numbers = #tpu.dot_dimension_numbers<[1], [0], [0], [1], [0, 0, 1, 1], [], []>} : vector<32x32xf32>, vector<32x96xf32>, vector<32x96xf32> -> vector<32x96xf32>
    %c1_79 = arith.constant 1 : index
    %c0_80 = arith.constant 0 : index
    %c0_81 = arith.constant 0 : index
    %212 = vector.load %arg6[%c1_79, %c0_80, %c0_81] : memref<2x1x96xf32, #tpu.memory_space<vmem>>, vector<1x1x96xf32>
    %213 = vector.shape_cast %212 : vector<1x1x96xf32> to vector<1x96xf32>
    %214 = vector.broadcast %213 : vector<1x96xf32> to vector<32x96xf32>
    %215 = arith.addf %211, %214 : vector<32x96xf32>
    %216 = vector.extract_strided_slice %215 {offsets = [0, 0], sizes = [16, 96], strides = [1, 1]} : vector<32x96xf32> to vector<16x96xf32>
    %217 = vector.extract_strided_slice %216 {offsets = [0, 0], sizes = [16, 32], strides = [1, 1]} : vector<16x96xf32> to vector<16x32xf32>
    %218 = vector.extract_strided_slice %216 {offsets = [0, 32], sizes = [16, 32], strides = [1, 1]} : vector<16x96xf32> to vector<16x32xf32>
    %219 = vector.extract_strided_slice %216 {offsets = [0, 64], sizes = [16, 32], strides = [1, 1]} : vector<16x96xf32> to vector<16x32xf32>
    %cst_82 = arith.constant dense<0.000000e+00> : vector<16x16xf32>
    %220 = tpu.matmul %217, %218, %cst_82 {dimension_numbers = #tpu.dot_dimension_numbers<[1], [1], [0], [0], [0, 0, 1, 0], [], []>} : vector<16x32xf32>, vector<16x32xf32>, vector<16x16xf32> -> vector<16x16xf32>
    %cst_83 = arith.constant 0.176776692 : f32
    %221 = vector.broadcast %cst_83 : f32 to vector<16x16xf32>
    %222 = arith.mulf %220, %221 : vector<16x16xf32>
    %223 = vector.extract_strided_slice %39 {offsets = [0, 0], sizes = [1, 16], strides = [1, 1]} : vector<2x16xi1> to vector<1x16xi1>
    %224 = vector.shape_cast %223 : vector<1x16xi1> to vector<16xi1>
    %225 = vector.shape_cast %224 : vector<16xi1> to vector<1x16xi1>
    %cst_84 = arith.constant -1.000000e+09 : f32
    %226 = vector.shape_cast %225 : vector<1x16xi1> to vector<1x16xi1>
    %227 = vector.broadcast %226 : vector<1x16xi1> to vector<16x16xi1>
    %228 = vector.broadcast %cst_84 : f32 to vector<16x16xf32>
    %229 = arith.select %227, %222, %228 : vector<16x16xi1>, vector<16x16xf32>
    %cst_85 = arith.constant dense<0xFF800000> : vector<16xf32>
    %230 = vector.multi_reduction <maximumf>, %229, %cst_85 [1] : vector<16x16xf32> to vector<16xf32>
    %231 = vector.shape_cast %230 : vector<16xf32> to vector<16x1xf32>
    %232 = vector.broadcast %231 : vector<16x1xf32> to vector<16x16xf32>
    %233 = arith.subf %229, %232 : vector<16x16xf32>
    %234 = math.exp %233 : vector<16x16xf32>
    %cst_86 = arith.constant dense<0.000000e+00> : vector<16xf32>
    %235 = vector.multi_reduction <add>, %234, %cst_86 [1] : vector<16x16xf32> to vector<16xf32>
    %236 = vector.shape_cast %235 : vector<16xf32> to vector<16x1xf32>
    %237 = tpu.reciprocal %236 {approx = true} : vector<16x1xf32> -> vector<16x1xf32>
    %238 = vector.broadcast %237 : vector<16x1xf32> to vector<16x16xf32>
    %239 = arith.mulf %234, %238 : vector<16x16xf32>
    %cst_87 = arith.constant dense<0.000000e+00> : vector<16x32xf32>
    %240 = tpu.matmul %239, %219, %cst_87 {dimension_numbers = #tpu.dot_dimension_numbers<[1], [0], [0], [1], [0, 0, 1, 1], [], []>} : vector<16x16xf32>, vector<16x32xf32>, vector<16x32xf32> -> vector<16x32xf32>
    %241 = vector.extract_strided_slice %215 {offsets = [16, 0], sizes = [16, 96], strides = [1, 1]} : vector<32x96xf32> to vector<16x96xf32>
    %242 = vector.extract_strided_slice %241 {offsets = [0, 0], sizes = [16, 32], strides = [1, 1]} : vector<16x96xf32> to vector<16x32xf32>
    %243 = vector.extract_strided_slice %241 {offsets = [0, 32], sizes = [16, 32], strides = [1, 1]} : vector<16x96xf32> to vector<16x32xf32>
    %244 = vector.extract_strided_slice %241 {offsets = [0, 64], sizes = [16, 32], strides = [1, 1]} : vector<16x96xf32> to vector<16x32xf32>
    %cst_88 = arith.constant dense<0.000000e+00> : vector<16x16xf32>
    %245 = tpu.matmul %242, %243, %cst_88 {dimension_numbers = #tpu.dot_dimension_numbers<[1], [1], [0], [0], [0, 0, 1, 0], [], []>} : vector<16x32xf32>, vector<16x32xf32>, vector<16x16xf32> -> vector<16x16xf32>
    %cst_89 = arith.constant 0.176776692 : f32
    %246 = vector.broadcast %cst_89 : f32 to vector<16x16xf32>
    %247 = arith.mulf %245, %246 : vector<16x16xf32>
    %248 = vector.extract_strided_slice %39 {offsets = [1, 0], sizes = [1, 16], strides = [1, 1]} : vector<2x16xi1> to vector<1x16xi1>
    %249 = vector.shape_cast %248 : vector<1x16xi1> to vector<16xi1>
    %250 = vector.shape_cast %249 : vector<16xi1> to vector<1x16xi1>
    %cst_90 = arith.constant -1.000000e+09 : f32
    %251 = vector.shape_cast %250 : vector<1x16xi1> to vector<1x16xi1>
    %252 = vector.broadcast %251 : vector<1x16xi1> to vector<16x16xi1>
    %253 = vector.broadcast %cst_90 : f32 to vector<16x16xf32>
    %254 = arith.select %252, %247, %253 : vector<16x16xi1>, vector<16x16xf32>
    %cst_91 = arith.constant dense<0xFF800000> : vector<16xf32>
    %255 = vector.multi_reduction <maximumf>, %254, %cst_91 [1] : vector<16x16xf32> to vector<16xf32>
    %256 = vector.shape_cast %255 : vector<16xf32> to vector<16x1xf32>
    %257 = vector.broadcast %256 : vector<16x1xf32> to vector<16x16xf32>
    %258 = arith.subf %254, %257 : vector<16x16xf32>
    %259 = math.exp %258 : vector<16x16xf32>
    %cst_92 = arith.constant dense<0.000000e+00> : vector<16xf32>
    %260 = vector.multi_reduction <add>, %259, %cst_92 [1] : vector<16x16xf32> to vector<16xf32>
    %261 = vector.shape_cast %260 : vector<16xf32> to vector<16x1xf32>
    %262 = tpu.reciprocal %261 {approx = true} : vector<16x1xf32> -> vector<16x1xf32>
    %263 = vector.broadcast %262 : vector<16x1xf32> to vector<16x16xf32>
    %264 = arith.mulf %259, %263 : vector<16x16xf32>
    %cst_93 = arith.constant dense<0.000000e+00> : vector<16x32xf32>
    %265 = tpu.matmul %264, %244, %cst_93 {dimension_numbers = #tpu.dot_dimension_numbers<[1], [0], [0], [1], [0, 0, 1, 1], [], []>} : vector<16x16xf32>, vector<16x32xf32>, vector<16x32xf32> -> vector<16x32xf32>
    %266 = tpu.concatenate %240, %265 in 0 : vector<16x32xf32>, vector<16x32xf32> -> vector<32x32xf32>
    %c1_94 = arith.constant 1 : index
    %c0_95 = arith.constant 0 : index
    %c0_96 = arith.constant 0 : index
    %267 = vector.load %arg7[%c1_94, %c0_95, %c0_96] : memref<2x32x32xf32, #tpu.memory_space<vmem>>, vector<1x32x32xf32>
    %268 = vector.shape_cast %267 : vector<1x32x32xf32> to vector<32x32xf32>
    %cst_97 = arith.constant dense<0.000000e+00> : vector<32x32xf32>
    %269 = tpu.matmul %266, %268, %cst_97 {dimension_numbers = #tpu.dot_dimension_numbers<[1], [0], [0], [1], [0, 0, 1, 1], [], []>} : vector<32x32xf32>, vector<32x32xf32>, vector<32x32xf32> -> vector<32x32xf32>
    %c10 = arith.constant 10 : index
    %c0_98 = arith.constant 0 : index
    %270 = vector.load %arg4[%c10, %c0_98] : memref<15x32xf32, #tpu.memory_space<vmem>>, vector<1x32xf32>
    %271 = vector.shape_cast %270 : vector<1x32xf32> to vector<32xf32>
    %272 = vector.shape_cast %271 : vector<32xf32> to vector<1x32xf32>
    %273 = vector.broadcast %272 : vector<1x32xf32> to vector<32x32xf32>
    %274 = arith.addf %269, %273 : vector<32x32xf32>
    %275 = arith.addf %208, %274 : vector<32x32xf32>
    %c11 = arith.constant 11 : index
    %c0_99 = arith.constant 0 : index
    %276 = vector.load %arg4[%c11, %c0_99] : memref<15x32xf32, #tpu.memory_space<vmem>>, vector<1x32xf32>
    %277 = vector.shape_cast %276 : vector<1x32xf32> to vector<32xf32>
    %c12 = arith.constant 12 : index
    %c0_100 = arith.constant 0 : index
    %278 = vector.load %arg4[%c12, %c0_100] : memref<15x32xf32, #tpu.memory_space<vmem>>, vector<1x32xf32>
    %279 = vector.shape_cast %278 : vector<1x32xf32> to vector<32xf32>
    %cst_101 = arith.constant dense<0.000000e+00> : vector<32xf32>
    %280 = vector.multi_reduction <add>, %275, %cst_101 [1] : vector<32x32xf32> to vector<32xf32>
    %281 = vector.shape_cast %280 : vector<32xf32> to vector<32x1xf32>
    %cst_102 = arith.constant 3.200000e+01 : f32
    %282 = vector.broadcast %cst_102 : f32 to vector<32x1xf32>
    %283 = arith.divf %281, %282 : vector<32x1xf32>
    %284 = vector.broadcast %283 : vector<32x1xf32> to vector<32x32xf32>
    %285 = arith.subf %275, %284 : vector<32x32xf32>
    %286 = arith.mulf %285, %285 : vector<32x32xf32>
    %cst_103 = arith.constant dense<0.000000e+00> : vector<32xf32>
    %287 = vector.multi_reduction <add>, %286, %cst_103 [1] : vector<32x32xf32> to vector<32xf32>
    %288 = vector.shape_cast %287 : vector<32xf32> to vector<32x1xf32>
    %cst_104 = arith.constant 3.200000e+01 : f32
    %289 = vector.broadcast %cst_104 : f32 to vector<32x1xf32>
    %290 = arith.divf %288, %289 : vector<32x1xf32>
    %cst_105 = arith.constant 9.99999974E-6 : f32
    %291 = vector.broadcast %cst_105 : f32 to vector<32x1xf32>
    %292 = arith.addf %290, %291 : vector<32x1xf32>
    %293 = math.rsqrt %292 : vector<32x1xf32>
    %294 = vector.broadcast %293 : vector<32x1xf32> to vector<32x32xf32>
    %295 = arith.mulf %285, %294 : vector<32x32xf32>
    %296 = vector.shape_cast %277 : vector<32xf32> to vector<1x32xf32>
    %297 = vector.broadcast %296 : vector<1x32xf32> to vector<32x32xf32>
    %298 = arith.mulf %295, %297 : vector<32x32xf32>
    %299 = vector.shape_cast %279 : vector<32xf32> to vector<1x32xf32>
    %300 = vector.broadcast %299 : vector<1x32xf32> to vector<32x32xf32>
    %301 = arith.addf %298, %300 : vector<32x32xf32>
    %c1_106 = arith.constant 1 : index
    %c0_107 = arith.constant 0 : index
    %c0_108 = arith.constant 0 : index
    %302 = vector.load %arg8[%c1_106, %c0_107, %c0_108] : memref<2x32x128xf32, #tpu.memory_space<vmem>>, vector<1x32x128xf32>
    %303 = vector.shape_cast %302 : vector<1x32x128xf32> to vector<32x128xf32>
    %cst_109 = arith.constant dense<0.000000e+00> : vector<32x128xf32>
    %304 = tpu.matmul %301, %303, %cst_109 {dimension_numbers = #tpu.dot_dimension_numbers<[1], [0], [0], [1], [0, 0, 1, 1], [], []>} : vector<32x32xf32>, vector<32x128xf32>, vector<32x128xf32> -> vector<32x128xf32>
    %c1_110 = arith.constant 1 : index
    %c0_111 = arith.constant 0 : index
    %c0_112 = arith.constant 0 : index
    %305 = vector.load %arg9[%c1_110, %c0_111, %c0_112] : memref<2x1x128xf32, #tpu.memory_space<vmem>>, vector<1x1x128xf32>
    %306 = vector.shape_cast %305 : vector<1x1x128xf32> to vector<1x128xf32>
    %307 = vector.broadcast %306 : vector<1x128xf32> to vector<32x128xf32>
    %308 = arith.addf %304, %307 : vector<32x128xf32>
    %cst_113 = arith.constant 5.000000e-01 : f32
    %309 = vector.broadcast %cst_113 : f32 to vector<32x128xf32>
    %310 = arith.mulf %309, %308 : vector<32x128xf32>
    %cst_114 = arith.constant 0.707106769 : f32
    %311 = vector.broadcast %cst_114 : f32 to vector<32x128xf32>
    %312 = arith.mulf %308, %311 : vector<32x128xf32>
    %313 = math.erf %312 : vector<32x128xf32>
    %cst_115 = arith.constant 1.000000e+00 : f32
    %314 = vector.broadcast %cst_115 : f32 to vector<32x128xf32>
    %315 = arith.addf %314, %313 : vector<32x128xf32>
    %316 = arith.mulf %310, %315 : vector<32x128xf32>
    %c1_116 = arith.constant 1 : index
    %c0_117 = arith.constant 0 : index
    %c0_118 = arith.constant 0 : index
    %317 = vector.load %arg10[%c1_116, %c0_117, %c0_118] : memref<2x128x32xf32, #tpu.memory_space<vmem>>, vector<1x128x32xf32>
    %318 = vector.shape_cast %317 : vector<1x128x32xf32> to vector<128x32xf32>
    %cst_119 = arith.constant dense<0.000000e+00> : vector<32x32xf32>
    %319 = tpu.matmul %316, %318, %cst_119 {dimension_numbers = #tpu.dot_dimension_numbers<[1], [0], [0], [1], [0, 0, 1, 1], [], []>} : vector<32x128xf32>, vector<128x32xf32>, vector<32x32xf32> -> vector<32x32xf32>
    %c13 = arith.constant 13 : index
    %c0_120 = arith.constant 0 : index
    %320 = vector.load %arg4[%c13, %c0_120] : memref<15x32xf32, #tpu.memory_space<vmem>>, vector<1x32xf32>
    %321 = vector.shape_cast %320 : vector<1x32xf32> to vector<32xf32>
    %322 = vector.shape_cast %321 : vector<32xf32> to vector<1x32xf32>
    %323 = vector.broadcast %322 : vector<1x32xf32> to vector<32x32xf32>
    %324 = arith.addf %319, %323 : vector<32x32xf32>
    %325 = arith.addf %301, %324 : vector<32x32xf32>
    %c0_121 = arith.constant 0 : index
    %c0_122 = arith.constant 0 : index
    %326 = vector.load %arg11[%c0_121, %c0_122] : memref<32x32xf32, #tpu.memory_space<vmem>>, vector<32x32xf32>
    %cst_123 = arith.constant dense<0.000000e+00> : vector<32x32xf32>
    %327 = tpu.matmul %325, %326, %cst_123 {dimension_numbers = #tpu.dot_dimension_numbers<[1], [0], [0], [1], [0, 0, 1, 1], [], []>} : vector<32x32xf32>, vector<32x32xf32>, vector<32x32xf32> -> vector<32x32xf32>
    %c14 = arith.constant 14 : index
    %c0_124 = arith.constant 0 : index
    %328 = vector.load %arg4[%c14, %c0_124] : memref<15x32xf32, #tpu.memory_space<vmem>>, vector<1x32xf32>
    %329 = vector.shape_cast %328 : vector<1x32xf32> to vector<32xf32>
    %330 = vector.shape_cast %329 : vector<32xf32> to vector<1x32xf32>
    %331 = vector.broadcast %330 : vector<1x32xf32> to vector<32x32xf32>
    %332 = arith.addf %327, %331 : vector<32x32xf32>
    %cst_125 = arith.constant 5.000000e-01 : f32
    %333 = vector.broadcast %cst_125 : f32 to vector<32x32xf32>
    %334 = arith.mulf %333, %332 : vector<32x32xf32>
    %cst_126 = arith.constant 0.707106769 : f32
    %335 = vector.broadcast %cst_126 : f32 to vector<32x32xf32>
    %336 = arith.mulf %332, %335 : vector<32x32xf32>
    %337 = math.erf %336 : vector<32x32xf32>
    %cst_127 = arith.constant 1.000000e+00 : f32
    %338 = vector.broadcast %cst_127 : f32 to vector<32x32xf32>
    %339 = arith.addf %338, %337 : vector<32x32xf32>
    %340 = arith.mulf %334, %339 : vector<32x32xf32>
    %c0_128 = arith.constant 0 : index
    %c0_129 = arith.constant 0 : index
    %341 = vector.load %arg12[%c0_128, %c0_129] : memref<32x128xf32, #tpu.memory_space<vmem>>, vector<32x128xf32>
    %cst_130 = arith.constant dense<0.000000e+00> : vector<32x128xf32>
    %342 = tpu.matmul %340, %341, %cst_130 {dimension_numbers = #tpu.dot_dimension_numbers<[1], [0], [0], [1], [0, 0, 1, 1], [], []>} : vector<32x32xf32>, vector<32x128xf32>, vector<32x128xf32> -> vector<32x128xf32>
    %c0_131 = arith.constant 0 : index
    %c0_132 = arith.constant 0 : index
    %343 = vector.load %arg13[%c0_131, %c0_132] : memref<1x128xf32, #tpu.memory_space<vmem>>, vector<1x128xf32>
    %344 = vector.broadcast %343 : vector<1x128xf32> to vector<32x128xf32>
    %345 = arith.addf %342, %344 : vector<32x128xf32>
    %c0_133 = arith.constant 0 : index
    %c0_134 = arith.constant 0 : index
    %346 = vector.load %arg14[%c0_133, %c0_134] : memref<32x128xf32, #tpu.memory_space<vmem>>, vector<32x128xf32>
    tpu.vector_store %arg14[%c0_133, %c0_134], %345 {strides = array<i32>} : memref<32x128xf32, #tpu.memory_space<vmem>>, vector<32x128xf32>,
    return
  }
}

</mosaic_0001>

<bundles_post_ra>
// kernel: nanobert_for_classification.1
= control target key start
LH: loop header
LB: loop body
LE: loop exit
PB: predicated region body
PF: predicated region fallthrough
CT: control target
= control target key end

     0   :  { %v4695_v0 = vmov 0   ;;  %vm97_vm0 = vcmask 1045504   ;;  %vm4696_vm1 = vmmov 1   ;;  %v52_v11 = vlaneseq  ;;  %s4698_s30 = smov 96   ;;  %s6159_s0 = inlined_call_operand.vmem [shape: s32[32,1], index: 0, kind: input, shape index: {}]   ;;  %s6160_s2 = inlined_call_operand.vmem [shape: f32[30,32], index: 2, kind: input, shape index: {}]   ;;  %s6161_s3 = inlined_call_operand.vmem [shape: f32[16,32], index: 3, kind: input, shape index: {}]   ;;  %s6162_s4 = inlined_call_operand.vmem [shape: f32[15,32], index: 4, kind: input, shape index: {}]   ;;  %s6163_s5 = inlined_call_operand.vmem [shape: f32[2,32,96], index: 5, kind: input, shape index: {}]   ;;  %s6164_s6 = inlined_call_operand.vmem [shape: f32[2,1,96], index: 6, kind: input, shape index: {}]   ;;  %s6165_s1 = inlined_call_operand.vmem [shape: s32[2,16], index: 1, kind: input, shape index: {}]   ;;  %s6166_s7 = inlined_call_operand.vmem [shape: f32[2,32,32], index: 7, kind: input, shape index: {}]   ;;  %s6167_s8 = inlined_call_operand.vmem [shape: f32[2,32,128], index: 8, kind: input, shape index: {}]   ;;  %s6168_s10 = inlined_call_operand.vmem [shape: f32[2,128,32], index: 10, kind: input, shape index: {}]   ;;  %s6169_s9 = inlined_call_operand.vmem [shape: f32[2,1,128], index: 9, kind: input, shape index: {}]   ;;  %s6170_s11 = inlined_call_operand.vmem [shape: f32[32,32], index: 11, kind: input, shape index: {}]   ;;  %s6171_s12 = inlined_call_operand.vmem [shape: f32[32,128], index: 12, kind: input, shape index: {}]   ;;  %s6172_s13 = inlined_call_operand.vmem [shape: f32[1,128], index: 13, kind: input, shape index: {}]   ;;  %s6173_s14 = inlined_call_operand.vmem [shape: f32[32,128], index: 14, kind: output, shape index: {}]  }
   0x1   :  { %4441 = vset.pattern.permute.xlu0 %v4695_v0  ;;  %v47_v1 = vld [vmem:[%s6159_s0] sm:$0xff]  ;;  %4442 = vset.pattern.permute.xlu1 %v4695_v0  ;;  %v79_v3 = vld [vmem:[%s6160_s2 + $0x8] sm:$0xff]  ;;  %v80_v4 = vld [vmem:[%s6160_s2 + $0x10] sm:$0xff]  ;;  %vm84_vm3 = vcmask 244736   ;;  %v4697_v14 = vmov 0.0   ;;  %vm188_vm8 = vcmask 261120  }
   0x2   :  { %v78_v2 = vld [vmem:[%s6160_s2] sm:$0xff]  ;;  %55 = vperm.xlu0 %4441, %v47_v1   ;;  %v81_v5 = vld [vmem:[%s6160_s2 + $0x18] sm:$0x3f]  ;;  %v48_v6 = vld [vmem:[%s6159_s0 + $0x8] sm:$0xff]  ;;  %v53_v12 = vand.u32 127, %v52_v11  ;;  %vm595_vm11 = vcmask 1041409  }
   0x3   :  { %v4254_v7 = vpack.c.bf16 %v79_v3, %v78_v2  ;;  %v4258_v8 = vpack.c.bf16 %v81_v5, %v80_v4  ;;  %vm4259_vm2 = vmpackc.low %vm97_vm0, %vm4696_vm1  ;;  %v49_v9 = vld [vmem:[%s6159_s0 + $0x10] sm:$0xff]  ;;  %v50_v10 = vld [vmem:[%s6159_s0 + $0x18] sm:$0xff]  ;;  %vm598_vm12 = vcmask 1042434   ;;  %vm601_vm13 = vcmask 1043459  }
   0x4   :  { %61 = vperm.xlu1 %4442, %v49_v9   ;;  %v83_v22 = vld [vmem:[%s6161_s3 + $0x8] sm:$0xff]  ;;  %v82_v23 = vld [vmem:[%s6161_s3] sm:$0xff]  ;;  %vm4887_vm9 = vmpackc.low %vm188_vm8, %vm188_vm8  ;;  %vm604_vm14 = vcmask 1044484   ;;  %vm607_vm15 = vcmask 1045509   ;;  %vm610_vm0 = vcmask 1046534   ;;  %vm613_vm1 = vcmask 1047559  }
   0x5   :  { %4255 = vmatprep.subr.bf16.mxu0 %v4254_v7  ;;  %v4816_v49 = vld [vmem:[%s6162_s4] ss:$0 sm:$0xff]  ;;  %v4821_v51 = vld [vmem:[%s6162_s4 + $0x1] ss:$0 sm:$0xff] }
   0x6   :  { %58 = vperm.xlu0 %4441, %v48_v6   ;;  %4257 = vmatpush3.bf16.msra.mxu0 %v4254_v7 }
   0x7   :  { %4260 = vmatprep.subr.msk.bf16.mxu0 %vm4259_vm2, %v4258_v8 }
   0x8   :  { %64 = vperm.xlu1 %4442, %v50_v10  }
   0xa   :  { %4263 = vmatpush3.bf16.msk.msra.mxu0 %vm4259_vm2, %v4258_v8  ;;  %vm631_vm2 = vcmask 130048  }
  0x81   :  { %v56_v13 = vpop.permute.xlu0 %55 }
  0x82   :  { %vm66_vm4 = vcmp.eq.s32.totalorder %v56_v13, %v53_v12 }
  0x83   :  { %v3737_v15 = vsel %vm66_vm4, 1.0, %v4697_v14  ;;  %v62_v18 = vpop.permute.xlu1 %61  ;;  %vm1141_vm4 = vcmask 122880  }
  0x84   :  { %4004 = vmatprep.mubr.msk.f32.mxu0 %vm84_vm3, %v3737_v15  ;;  %vm68_vm6 = vcmp.eq.s32.totalorder %v62_v18, %v53_v12 }
  0x85   :  { %v59_v16 = vpop.permute.xlu0 %58  ;;  %v3739_v19 = vsel %vm68_vm6, 1.0, %v4697_v14 }
  0x86   :  { %vm67_vm5 = vcmp.eq.s32.totalorder %v59_v16, %v53_v12 }
  0x87   :  { %v3738_v17 = vsel %vm67_vm5, 1.0, %v4697_v14  ;;  %v65_v20 = vpop.permute.xlu1 %64 }
  0x88   :  { %4005 = vmatmul.mubr.msk.f32.vlgmr.msra.gmra.mrb[0].mxu0 %vm84_vm3, %v3738_v17  ;;  %vm69_vm7 = vcmp.eq.s32.totalorder %v65_v20, %v53_v12  ;;  %v329_v20 = vld [vmem:[%s6163_s5] sm:$0xff] }
  0x89   :  { %4007 = vmatprep.mubr.msk.f32.mxu0 %vm84_vm3, %v3739_v19  ;;  %v3740_v21 = vsel %vm69_vm7, 1.0, %v4697_v14 }
  0x8c   :  { %4008 = vmatmul.mubr.msk.f32.gmra.mrb[2].mxu0 %vm84_vm3, %v3740_v21  ;;  %v330_v21 = vld [vmem:[%s6163_s5 + $0x8] sm:$0xff]  ;;  %vm1134_vm3 = vcmask 130049  }
 0x15b   :  { %v4006_v24 = vpop.f32.mrb[0].mxu0 }
 0x15c   :  { %v173_v25 = vadd.f32 %v4006_v24, %v83_v22  ;;  %v167_v26 = vpop.f32.mrb[1].mxu0  ;;  %v332_v24 = vld [vmem:[%s6163_s5 + $0x18] sm:$0xff] }
 0x15d   :  { %v168_v27 = vadd.f32 %v167_v26, %v82_v23 }
 0x15e   :  { %v192_v28 = vsel %vm188_vm8, %v173_v25, 0.0 }
 0x15f   :  { %193 = vadd.xlane.f32.xlu1 %v192_v28  ;;  %v189_v29 = vsel %vm188_vm8, %v168_v27, 0.0  ;;  %v4009_v40 = vpop.f32.mrb[2].mxu0 }
 0x160   :  { %190 = vadd.xlane.f32.xlu0 %v189_v29  ;;  %v177_v41 = vpop.f32.mrb[3].mxu0  ;;  %v183_v60 = vadd.f32 %v4009_v40, %v83_v22  ;;  %v4264_v22 = vpack.c.bf16 %v330_v21, %v329_v20 }
 0x161   :  { %v178_v56 = vadd.f32 %v177_v41, %v82_v23  ;;  %v331_v23 = vld [vmem:[%s6163_s5 + $0x10] sm:$0xff]  ;;  %v3749_v41 = vld [vmem:[%s6162_s4 + $0x3] ss:$0 sm:$0xff] }
 0x162   :  { %v198_v63 = vsel %vm188_vm8, %v183_v60, 0.0  ;;  %4265 = vmatprep.subr.bf16.mxu0 %v4264_v22 }
 0x163   :  { %v195_v61 = vsel %vm188_vm8, %v178_v56, 0.0  ;;  %4267 = vmatpush3.bf16.msra.mxu0 %v4264_v22 }
 0x1ec   :  { %v194_v30 = vpop.xlane.xlu1 %193 }
 0x1ed   :  { %v203_v31 = vmul.f32 0.03125, %v194_v30  ;;  %v191_v32 = vpop.xlane.xlu0 %190 }
 0x1ee   :  { %v202_v33 = vmul.f32 0.03125, %v191_v32 }
 0x1ef   :  { %v207_v34 = vsub.f32 %v173_v25, %v203_v31  ;;  %v4268_v25 = vpack.c.bf16 %v332_v24, %v331_v23 }
 0x1f0   :  { %v206_v35 = vsub.f32 %v168_v27, %v202_v33 }
 0x1f1   :  { %v211_v38 = vmul.f32 %v207_v34, %v207_v34  ;;  %4269 = vmatprep.subr.bf16.mxu0 %v4268_v25 }
 0x1f2   :  { %v210_v36 = vmul.f32 %v206_v35, %v206_v35  ;;  %4271 = vmatpush3.bf16.msra.mxu0 %v4268_v25 }
 0x1f3   :  { %v217_v39 = vsel %vm188_vm8, %v211_v38, 0.0 }
 0x1f4   :  { %v214_v37 = vsel %vm188_vm8, %v210_v36, 0.0 }
 0x1f5   :  { %215 = vadd.xlane.f32.xlu0 %v214_v37 }
 0x1f9   :  { %218 = vadd.xlane.f32.xlu0 %v217_v39  ;;  %v3748_v39 = vld [vmem:[%s6162_s4 + $0x2] ss:$0 sm:$0xff] }
 0x282   :  { %v216_v42 = vpop.xlane.xlu0 %215 }
 0x283   :  { %v226_v43 = vmul.f32 0.03125, %v216_v42 }
 0x285   :  { %v230_v44 = vadd.f32 1e-12, %v226_v43 }
 0x286   :  { %v219_v45 = vpop.xlane.xlu0 %218 }
 0x287   :  { %4483 = vrsqrt.f32 %v230_v44  ;;  %v227_v46 = vmul.f32 0.03125, %v219_v45 }
 0x289   :  { %v231_v47 = vadd.f32 1e-12, %v227_v46 }
 0x28b   :  { %4485 = vrsqrt.f32 %v231_v47 }
 0x291   :  { %v4484_v48 = vpop.eup %4483 }
 0x292   :  { %v238_v50 = vmul.f32 %v4484_v48, %v206_v35 }
 0x294   :  { %v246_v52 = vmul.f32 %v4816_v49, %v238_v50 }
 0x295   :  { %v4486_v53 = vpop.eup %4485 }
 0x296   :  { %v254_v54 = vadd.f32 %v4821_v51, %v246_v52  ;;  %v239_v55 = vmul.f32 %v4486_v53, %v207_v34 }
 0x298   :  { %v261_v57 = vsel %vm188_vm8, %v254_v54, 0.0  ;;  %v247_v58 = vmul.f32 %v4816_v49, %v239_v55 }
 0x299   :  { %262 = vadd.xlane.f32.xlu1 %v261_v57 }
 0x29a   :  { %v255_v59 = vadd.f32 %v4821_v51, %v247_v58 }
 0x29c   :  { %v264_v62 = vsel %vm188_vm8, %v255_v59, 0.0 }
 0x29d   :  { %196 = vadd.xlane.f32.xlu1 %v195_v61  ;;  %265 = vadd.xlane.f32.xlu0 %v264_v62 }
 0x2a1   :  { %199 = vadd.xlane.f32.xlu0 %v198_v63 }
 0x326   :  { %v263_v0 = vpop.xlane.xlu1 %262 }
 0x327   :  { %v273_v1 = vmul.f32 0.03125, %v263_v0 }
 0x329   :  { %v277_v2 = vsub.f32 %v254_v54, %v273_v1 }
 0x32a   :  { %v197_v3 = vpop.xlane.xlu1 %196  ;;  %v266_v4 = vpop.xlane.xlu0 %265 }
 0x32b   :  { %v204_v5 = vmul.f32 0.03125, %v197_v3  ;;  %v274_v6 = vmul.f32 0.03125, %v266_v4  ;;  %v281_v7 = vmul.f32 %v277_v2, %v277_v2 }
 0x32d   :  { %v208_v8 = vsub.f32 %v178_v56, %v204_v5  ;;  %v278_v9 = vsub.f32 %v255_v59, %v274_v6  ;;  %v285_v10 = vsel %vm188_vm8, %v281_v7, 0.0 }
 0x32e   :  { %286 = vadd.xlane.f32.xlu1 %v285_v10  ;;  %v200_v11 = vpop.xlane.xlu0 %199 }
 0x32f   :  { %v205_v12 = vmul.f32 0.03125, %v200_v11  ;;  %v212_v13 = vmul.f32 %v208_v8, %v208_v8  ;;  %v282_v14 = vmul.f32 %v278_v9, %v278_v9 }
 0x331   :  { %v209_v15 = vsub.f32 %v183_v60, %v205_v12  ;;  %v220_v16 = vsel %vm188_vm8, %v212_v13, 0.0  ;;  %v288_v17 = vsel %vm188_vm8, %v282_v14, 0.0 }
 0x332   :  { %221 = vadd.xlane.f32.xlu1 %v220_v16  ;;  %289 = vadd.xlane.f32.xlu0 %v288_v17 }
 0x333   :  { %v213_v18 = vmul.f32 %v209_v15, %v209_v15 }
 0x335   :  { %v223_v19 = vsel %vm188_vm8, %v213_v18, 0.0 }
 0x336   :  { %224 = vadd.xlane.f32.xlu0 %v223_v19 }
 0x3bb   :  { %v287_v26 = vpop.xlane.xlu1 %286 }
 0x3bc   :  { %v297_v27 = vmul.f32 0.03125, %v287_v26 }
 0x3be   :  { %v301_v28 = vadd.f32 1e-05, %v297_v27  ;;  %v6178_v27 = vmov 0 }
 0x3bf   :  { %v222_v29 = vpop.xlane.xlu1 %221  ;;  %v290_v30 = vpop.xlane.xlu0 %289  ;;  %v6179_v27 = vsel %vm4887_vm9, 4294967295, %v6178_v27 }
 0x3c0   :  { %4487 = vrsqrt.f32 %v301_v28  ;;  %v228_v31 = vmul.f32 0.03125, %v222_v29  ;;  %v298_v32 = vmul.f32 0.03125, %v290_v30  ;;  %6180 = vst [vmem:[#allocation2_spill] sm:$0xff] %v6179_v27 }
 0x3c2   :  { %v232_v33 = vadd.f32 1e-12, %v228_v31  ;;  %v302_v34 = vadd.f32 1e-05, %v298_v32 }
 0x3c3   :  { %v225_v35 = vpop.xlane.xlu0 %224 }
 0x3c4   :  { %4489 = vrsqrt.f32 %v232_v33  ;;  %v229_v36 = vmul.f32 0.03125, %v225_v35 }
 0x3c5   :  { %4491 = vrsqrt.f32 %v302_v34  ;;  %v4907_v34 = vld [vmem:[%s6165_s1] sm:$0x3]  ;;  %s4699_s1 = smov 64  }
 0x3c6   :  { %v233_v37 = vadd.f32 1e-12, %v229_v36  ;;  %6181 = vst [vmem:[#allocation3_spill] sm:$0xff] %v4907_v34  ;;  %vm258_vm10 = vcmp.gt.s32.totalorder %v4907_v34, 0 }
 0x3c8   :  { %4493 = vrsqrt.f32 %v233_v37 }
 0x3ca   :  { %v4488_v38 = vpop.eup %4487 }
 0x3cb   :  { %v309_v40 = vmul.f32 %v4488_v38, %v277_v2 }
 0x3cd   :  { %v317_v42 = vmul.f32 %v3748_v39, %v309_v40 }
 0x3ce   :  { %v4490_v43 = vpop.eup %4489 }
 0x3cf   :  { %v4492_v44 = vpop.eup %4491  ;;  %v4853_v45 = vadd.f32 %v3749_v41, %v317_v42  ;;  %v240_v46 = vmul.f32 %v4490_v43, %v208_v8 }
 0x3d0   :  { %v310_v47 = vmul.f32 %v4492_v44, %v278_v9 }
 0x3d1   :  { %4018 = vmatprep.mubr.msk.f32.mxu0 %vm188_vm8, %v4853_v45  ;;  %v248_v48 = vmul.f32 %v4816_v49, %v240_v46 }
 0x3d2   :  { %v4494_v50 = vpop.eup %4493  ;;  %v318_v52 = vmul.f32 %v3748_v39, %v310_v47 }
 0x3d3   :  { %v256_v53 = vadd.f32 %v4821_v51, %v248_v48  ;;  %v241_v54 = vmul.f32 %v4494_v50, %v209_v15 }
 0x3d4   :  { %v4859_v55 = vadd.f32 %v3749_v41, %v318_v52 }
 0x3d5   :  { %v267_v56 = vsel %vm188_vm8, %v256_v53, 0.0  ;;  %v249_v57 = vmul.f32 %v4816_v49, %v241_v54 }
 0x3d6   :  { %4019 = vmatmul.mubr.msk.f32.vlgmr.msra.gmra.mrb[4].mxu0 %vm188_vm8, %v4859_v55  ;;  %268 = vadd.xlane.f32.xlu1 %v267_v56 }
 0x3d7   :  { %v257_v58 = vadd.f32 %v4821_v51, %v249_v57  ;;  %v3750_v51 = vld [vmem:[%s6164_s6] ss:$0 sm:$0xff] }
 0x3d9   :  { %v270_v59 = vsel %vm188_vm8, %v257_v58, 0.0 }
 0x3da   :  { %271 = vadd.xlane.f32.xlu0 %v270_v59 }
 0x463   :  { %v269_v60 = vpop.xlane.xlu1 %268 }
 0x464   :  { %v275_v61 = vmul.f32 0.03125, %v269_v60 }
 0x466   :  { %v279_v62 = vsub.f32 %v256_v53, %v275_v61 }
 0x467   :  { %v272_v63 = vpop.xlane.xlu0 %271 }
 0x468   :  { %v276_v0 = vmul.f32 0.03125, %v272_v63  ;;  %v283_v1 = vmul.f32 %v279_v62, %v279_v62 }
 0x46a   :  { %v280_v2 = vsub.f32 %v257_v58, %v276_v0  ;;  %v291_v3 = vsel %vm188_vm8, %v283_v1, 0.0 }
 0x46b   :  { %292 = vadd.xlane.f32.xlu1 %v291_v3 }
 0x46c   :  { %v284_v49 = vmul.f32 %v280_v2, %v280_v2 }
 0x46e   :  { %v294_v4 = vsel %vm188_vm8, %v284_v49, 0.0 }
 0x46f   :  { %295 = vadd.xlane.f32.xlu0 %v294_v4 }
 0x4a9   :  { %v4020_v5 = vpop.f32.mrb[4].mxu0 }
 0x4aa   :  { %v424_v6 = vadd.f32 %v4020_v5, %v3750_v51  ;;  %v418_v7 = vpop.f32.mrb[5].mxu0 }
 0x4ab   :  { %v419_v8 = vadd.f32 %v3750_v51, %v418_v7 }
 0x4ad   :  { %v4872_v9 = vpack.i.bf16 %v424_v6, %v419_v8 }
 0x4af   :  { %4444 = vrot.lane.b32.xlu1 %v4872_v9, %s4698_s30 }
 0x4f8   :  { %v293_v10 = vpop.xlane.xlu1 %292 }
 0x4f9   :  { %v299_v11 = vmul.f32 0.03125, %v293_v10 }
 0x4fb   :  { %v303_v12 = vadd.f32 1e-05, %v299_v11 }
 0x4fc   :  { %v296_v13 = vpop.xlane.xlu0 %295 }
 0x4fd   :  { %4495 = vrsqrt.f32 %v303_v12  ;;  %v300_v14 = vmul.f32 0.03125, %v296_v13 }
 0x4ff   :  { %v304_v15 = vadd.f32 1e-05, %v300_v14 }
 0x501   :  { %4497 = vrsqrt.f32 %v304_v15 }
 0x507   :  { %v4496_v16 = vpop.eup %4495 }
 0x508   :  { %v311_v17 = vmul.f32 %v4496_v16, %v279_v62 }
 0x50a   :  { %v319_v18 = vmul.f32 %v3748_v39, %v311_v17 }
 0x50b   :  { %v4498_v19 = vpop.eup %4497 }
 0x50c   :  { %v4876_v20 = vadd.f32 %v3749_v41, %v319_v18  ;;  %v312_v21 = vmul.f32 %v4498_v19, %v280_v2 }
 0x50e   :  { %4021 = vmatprep.mubr.msk.f32.mxu0 %vm188_vm8, %v4876_v20  ;;  %v320_v22 = vmul.f32 %v3748_v39, %v312_v21 }
 0x510   :  { %v4880_v23 = vadd.f32 %v3749_v41, %v320_v22 }
 0x512   :  { %4022 = vmatmul.mubr.msk.f32.gmra.mrb[6].mxu0 %vm188_vm8, %v4880_v23 }
 0x513   :  { %4028 = vmatprep.mubr.msk.f32.mxu0 %vm188_vm8, %v419_v8 }
 0x521   :  { %v4445_v24 = vpop.permute.xlu1 %4444 }
 0x522   :  { %v4447_v25 = vunpack.i.h.bf16 %v4445_v24  ;;  %v4446_v26 = vunpack.i.l.bf16 %v4445_v24 }
 0x524   :  { %v4272_v28 = vpack.c.bf16 %v4447_v25, %v4446_v26 }
 0x526   :  { %4274 = vmatprep.subr.msk.bf16.mxu0 %vm4887_vm9, %v4272_v28 }
 0x527   :  { %4277 = vmatpush3.bf16.xpose.msk.msra.mxu0 %vm4887_vm9, %v4272_v28 }
 0x52e   :  { %4029 = vmatmul.mubr.msk.f32.vlgmr.msra.gmra.mrb[8].mxu0 %vm188_vm8, %v424_v6 }
 0x5e5   :  { %v4023_v29 = vpop.f32.mrb[6].mxu0 }
 0x5e6   :  { %v4896_v30 = vadd.f32 %v4023_v29, %v3750_v51  ;;  %v428_v31 = vpop.f32.mrb[7].mxu0 }
 0x5e7   :  { %v429_v32 = vadd.f32 %v3750_v51, %v428_v31 }
 0x5e9   :  { %4042 = vmatprep.mubr.msk.f32.mxu0 %vm188_vm8, %v429_v32  ;;  %v4900_v33 = vpack.i.bf16 %v4896_v30, %v429_v32 }
 0x5eb   :  { %4449 = vrot.lane.b32.xlu0 %v4900_v33, %s4698_s30 }
 0x601   :  { %v4030_v35 = vpop.f32.mrb[8].mxu0 }
 0x602   :  { %v527_v36 = vmul.f32 0.17677669, %v4030_v35  ;;  %v517_v37 = vpop.f32.mrb[9].mxu0 }
 0x603   :  { %v526_v42 = vmul.f32 0.17677669, %v517_v37 }
 0x604   :  { %v539_v38 = vrot.slane %v527_v36, 1  ;;  %v540_v39 = vrot.slane %v527_v36, 2  ;;  %v541_v40 = vrot.slane %v527_v36, 3  ;;  %v542_v41 = vrot.slane %v527_v36, 4 }
 0x605   :  { %v543_v43 = vrot.slane %v527_v36, 5  ;;  %v544_v44 = vrot.slane %v527_v36, 6  ;;  %v545_v50 = vrot.slane %v527_v36, 7  ;;  %v4924_v52 = vsel %vm258_vm10, %v527_v36, -1e+09 }
 0x606   :  { %v4912_v46 = vsel %vm258_vm10, %v539_v38, -1e+09  ;;  %v4916_v47 = vsel %vm258_vm10, %v540_v39, -1e+09  ;;  %v4920_v48 = vsel %vm258_vm10, %v541_v40, -1e+09 }
 0x607   :  { %v4928_v53 = vsel %vm258_vm10, %v542_v41, -1e+09  ;;  %v615_v54 = vrot.slane %v4912_v46, 7  ;;  %v617_v56 = vrot.slane %v4916_v47, 6  ;;  %v4934_v57 = vsel %vm258_vm10, %v543_v43, -1e+09 }
 0x608   :  { %v4938_v58 = vsel %vm258_vm10, %v544_v44, -1e+09  ;;  %v619_v59 = vrot.slane %v4920_v48, 5  ;;  %v532_v61 = vrot.slane %v526_v42, 1  ;;  %v533_v62 = vrot.slane %v526_v42, 2 }
 0x609   :  { %v616_v60 = vsel %vm595_vm11, %v615_v54, %v4924_v52  ;;  %v534_v63 = vrot.slane %v526_v42, 3  ;;  %v4945_v0 = vsel %vm258_vm10, %v545_v50, -1e+09  ;;  %v621_v2 = vrot.slane %v4928_v53, 4 }
 0x60a   :  { %v618_v1 = vsel %vm598_vm12, %v617_v56, %v616_v60  ;;  %v535_v3 = vrot.slane %v526_v42, 4  ;;  %v623_v4 = vrot.slane %v4934_v57, 3  ;;  %v536_v51 = vrot.slane %v526_v42, 5 }
 0x60b   :  { %v620_v49 = vsel %vm601_vm13, %v619_v59, %v618_v1  ;;  %v4953_v5 = vsel %vm258_vm10, %v532_v61, -1e+09  ;;  %v625_v7 = vrot.slane %v4938_v58, 2  ;;  %v537_v8 = vrot.slane %v526_v42, 6 }
 0x60c   :  { %v622_v6 = vsel %vm604_vm14, %v621_v2, %v620_v49  ;;  %v4959_v10 = vsel %vm258_vm10, %v533_v62, -1e+09  ;;  %v627_v12 = vrot.slane %v4945_v0, 1  ;;  %v538_v13 = vrot.slane %v526_v42, 7 }
 0x60d   :  { %v624_v11 = vsel %vm607_vm15, %v623_v4, %v622_v6  ;;  %v4965_v14 = vsel %vm258_vm10, %v534_v63, -1e+09  ;;  %v4970_v16 = vsel %vm258_vm10, %v535_v3, -1e+09  ;;  %v594_v17 = vrot.slane %v4953_v5, 7 }
 0x60e   :  { %v626_v15 = vsel %vm610_vm0, %v625_v7, %v624_v11  ;;  %v597_v18 = vrot.slane %v4959_v10, 6  ;;  %v4977_v21 = vsel %vm258_vm10, %v526_v42, -1e+09  ;;  %v4981_v22 = vsel %vm258_vm10, %v536_v51, -1e+09 }
 0x60f   :  { %v628_v19 = vsel %vm613_vm1, %v627_v12, %v626_v15  ;;  %v4986_v25 = vsel %vm258_vm10, %v537_v8, -1e+09  ;;  %v596_v26 = vsel %vm595_vm11, %v594_v17, %v4977_v21  ;;  %v600_v28 = vrot.slane %v4965_v14, 5 }
 0x610   :  { %v635_v24 = vsel %vm631_vm2, %v628_v19, -inf  ;;  %v4993_v29 = vsel %vm258_vm10, %v538_v13, -1e+09  ;;  %v599_v31 = vsel %vm598_vm12, %v597_v18, %v596_v26  ;;  %v603_v32 = vrot.slane %v4970_v16, 4 }
 0x611   :  { %636 = vmax.xlane.f32.xlu0 %v635_v24  ;;  %v602_v35 = vsel %vm601_vm13, %v600_v28, %v599_v31  ;;  %v606_v36 = vrot.slane %v4981_v22, 3  ;;  %v609_v38 = vrot.slane %v4986_v25, 2  ;;  %v612_v40 = vrot.slane %v4993_v29, 1 }
 0x612   :  { %v605_v37 = vsel %vm604_vm14, %v603_v32, %v602_v35 }
 0x613   :  { %v608_v39 = vsel %vm607_vm15, %v606_v36, %v605_v37 }
 0x614   :  { %v611_v41 = vsel %vm610_vm0, %v609_v38, %v608_v39 }
 0x615   :  { %v614_v42 = vsel %vm613_vm1, %v612_v40, %v611_v41 }
 0x616   :  { %v632_v43 = vsel %vm631_vm2, %v614_v42, -inf }
 0x617   :  { %633 = vmax.xlane.f32.xlu1 %v632_v43 }
 0x65d   :  { %v4450_v44 = vpop.permute.xlu0 %4449 }
 0x65e   :  { %v4452_v50 = vunpack.i.h.bf16 %v4450_v44  ;;  %v4451_v54 = vunpack.i.l.bf16 %v4450_v44 }
 0x660   :  { %v4282_v56 = vpack.c.bf16 %v4452_v50, %v4451_v54 }
 0x662   :  { %4284 = vmatprep.subr.msk.bf16.mxu0 %vm4887_vm9, %v4282_v56 }
 0x663   :  { %4287 = vmatpush3.bf16.xpose.msk.msra.mxu0 %vm4887_vm9, %v4282_v56 }
 0x66a   :  { %4043 = vmatmul.mubr.msk.f32.vlgmr.msra.gmra.mrb[10].mxu0 %vm188_vm8, %v4896_v30 }
 0x69e   :  { %v637_v59 = vpop.xlane.xlu0 %636 }
 0x69f   :  { %v647_v60 = vrot.slane %v637_v59, 1  ;;  %v648_v61 = vrot.slane %v637_v59, 2  ;;  %v649_v62 = vrot.slane %v637_v59, 3  ;;  %v650_v63 = vrot.slane %v637_v59, 4 }
 0x6a0   :  { %v651_v1 = vrot.slane %v637_v59, 5  ;;  %v652_v2 = vrot.slane %v637_v59, 6  ;;  %v678_v3 = vsub.f32 %v4924_v52, %v637_v59  ;;  %v653_v17 = vrot.slane %v637_v59, 7 }
 0x6a1   :  { %v679_v49 = vsub.f32 %v4912_v46, %v647_v60  ;;  %v680_v4 = vsub.f32 %v4916_v47, %v648_v61  ;;  %v681_v51 = vsub.f32 %v4920_v48, %v649_v62  ;;  %v682_v6 = vsub.f32 %v4928_v53, %v650_v63 }
 0x6a2   :  { %v683_v7 = vsub.f32 %v4934_v57, %v651_v1  ;;  %v702_v30 = vmul.f32 1.442695, %v678_v3  ;;  %v684_v8 = vsub.f32 %v4938_v58, %v652_v2  ;;  %v685_v36 = vsub.f32 %v4945_v0, %v653_v17 }
 0x6a3   :  { %v704_v11 = vmul.f32 1.442695, %v679_v49  ;;  %v706_v12 = vmul.f32 1.442695, %v680_v4  ;;  %v708_v13 = vmul.f32 1.442695, %v681_v51 }
 0x6a4   :  { %4499 = vpow2.f32 %v702_v30  ;;  %v710_v15 = vmul.f32 1.442695, %v682_v6  ;;  %v634_v52 = vpop.xlane.xlu1 %633  ;;  %v712_v46 = vmul.f32 1.442695, %v683_v7  ;;  %v714_v18 = vmul.f32 1.442695, %v684_v8 }
 0x6a5   :  { %4501 = vpow2.f32 %v704_v11  ;;  %v640_v47 = vrot.slane %v634_v52, 1  ;;  %v641_v48 = vrot.slane %v634_v52, 2  ;;  %v642_v19 = vrot.slane %v634_v52, 3 }
 0x6a6   :  { %4503 = vpow2.f32 %v706_v12  ;;  %v643_v53 = vrot.slane %v634_v52, 4  ;;  %v644_v57 = vrot.slane %v634_v52, 5  ;;  %v645_v24 = vrot.slane %v634_v52, 6 }
 0x6a7   :  { %4505 = vpow2.f32 %v708_v13  ;;  %v646_v58 = vrot.slane %v634_v52, 7  ;;  %v670_v26 = vsub.f32 %v4977_v21, %v634_v52  ;;  %v671_v28 = vsub.f32 %v4953_v5, %v640_v47 }
 0x6a8   :  { %4507 = vpow2.f32 %v710_v15  ;;  %v672_v31 = vsub.f32 %v4959_v10, %v641_v48  ;;  %v673_v32 = vsub.f32 %v4965_v14, %v642_v19  ;;  %v674_v35 = vsub.f32 %v4970_v16, %v643_v53 }
 0x6a9   :  { %v675_v37 = vsub.f32 %v4981_v22, %v644_v57  ;;  %v686_v38 = vmul.f32 1.442695, %v670_v26  ;;  %v688_v39 = vmul.f32 1.442695, %v671_v28  ;;  %4509 = vpow2.f32 %v712_v46 }
 0x6aa   :  { %v690_v40 = vmul.f32 1.442695, %v672_v31  ;;  %v692_v41 = vmul.f32 1.442695, %v673_v32  ;;  %4511 = vpow2.f32 %v714_v18  ;;  %v676_v21 = vsub.f32 %v4986_v25, %v645_v24 }
 0x6ab   :  { %4513 = vpow2.f32 %v686_v38  ;;  %v694_v5 = vmul.f32 1.442695, %v674_v35  ;;  %v677_v10 = vsub.f32 %v4993_v29, %v646_v58  ;;  %v716_v14 = vmul.f32 1.442695, %v685_v36 }
 0x6ac   :  { %4515 = vpow2.f32 %v688_v39  ;;  %v696_v0 = vmul.f32 1.442695, %v675_v37  ;;  %v698_v22 = vmul.f32 1.442695, %v676_v21 }
 0x6ad   :  { %4517 = vpow2.f32 %v690_v40  ;;  %v700_v25 = vmul.f32 1.442695, %v677_v10 }
 0x6ae   :  { %v5028_v42 = vpop.eup %4499  ;;  %4519 = vpow2.f32 %v692_v41 }
 0x6af   :  { %v5030_v16 = vpop.eup %4501  ;;  %4521 = vpow2.f32 %v694_v5 }
 0x6b0   :  { %v5032_v43 = vpop.eup %4503  ;;  %v748_v44 = vrot.slane %v5030_v16, 7  ;;  %4523 = vpow2.f32 %v716_v14 }
 0x6b1   :  { %v5035_v50 = vpop.eup %4505  ;;  %v750_v29 = vrot.slane %v5032_v43, 6  ;;  %4525 = vpow2.f32 %v696_v0 }
 0x6b2   :  { %v5038_v54 = vpop.eup %4507  ;;  %v749_v56 = vsel %vm595_vm11, %v748_v44, %v5028_v42  ;;  %v752_v59 = vrot.slane %v5035_v50, 5  ;;  %4527 = vpow2.f32 %v698_v22 }
 0x6b3   :  { %v751_v60 = vsel %vm598_vm12, %v750_v29, %v749_v56  ;;  %v754_v61 = vrot.slane %v5038_v54, 4  ;;  %v5045_v62 = vpop.eup %4509  ;;  %4529 = vpow2.f32 %v700_v25 }
 0x6b4   :  { %v753_v63 = vsel %vm601_vm13, %v752_v59, %v751_v60  ;;  %v5048_v1 = vpop.eup %4511  ;;  %v756_v49 = vrot.slane %v5045_v62, 3 }
 0x6b5   :  { %v755_v2 = vsel %vm604_vm14, %v754_v61, %v753_v63  ;;  %v5051_v3 = vpop.eup %4513  ;;  %v758_v8 = vrot.slane %v5048_v1, 2 }
 0x6b6   :  { %v5054_v4 = vpop.eup %4515  ;;  %v757_v6 = vsel %vm607_vm15, %v756_v49, %v755_v2 }
 0x6b7   :  { %v5056_v51 = vpop.eup %4517  ;;  %v734_v7 = vrot.slane %v5054_v4, 7  ;;  %v759_v52 = vsel %vm610_vm0, %v758_v8, %v757_v6 }
 0x6b8   :  { %v5060_v30 = vpop.eup %4519  ;;  %v736_v11 = vrot.slane %v5056_v51, 6 }
 0x6b9   :  { %v5064_v12 = vpop.eup %4521  ;;  %v735_v13 = vsel %vm595_vm11, %v734_v7, %v5051_v3  ;;  %v738_v15 = vrot.slane %v5060_v30, 5 }
 0x6ba   :  { %v5069_v17 = vpop.eup %4523  ;;  %v737_v46 = vsel %vm598_vm12, %v736_v11, %v735_v13  ;;  %v740_v18 = vrot.slane %v5064_v12, 4 }
 0x6bb   :  { %v5074_v47 = vpop.eup %4525  ;;  %v760_v48 = vrot.slane %v5069_v17, 1  ;;  %v739_v19 = vsel %vm601_vm13, %v738_v15, %v737_v46 }
 0x6bc   :  { %v5078_v53 = vpop.eup %4527  ;;  %v741_v57 = vsel %vm604_vm14, %v740_v18, %v739_v19  ;;  %v742_v24 = vrot.slane %v5074_v47, 3 }
 0x6bd   :  { %v5082_v58 = vpop.eup %4529  ;;  %v761_v26 = vsel %vm613_vm1, %v760_v48, %v759_v52  ;;  %v744_v28 = vrot.slane %v5078_v53, 2 }
 0x6be   :  { %v767_v31 = vsel %vm631_vm2, %v761_v26, 0.0  ;;  %v743_v32 = vsel %vm607_vm15, %v742_v24, %v741_v57  ;;  %v746_v35 = vrot.slane %v5082_v58, 1 }
 0x6bf   :  { %768 = vadd.xlane.f32.xlu0 %v767_v31  ;;  %v745_v36 = vsel %vm610_vm0, %v744_v28, %v743_v32 }
 0x6c0   :  { %v747_v37 = vsel %vm613_vm1, %v746_v35, %v745_v36 }
 0x6c1   :  { %v764_v38 = vsel %vm631_vm2, %v747_v37, 0.0 }
 0x6c2   :  { %765 = vadd.xlane.f32.xlu1 %v764_v38 }
 0x6d3   :  { %4454 = vrot.lane.b32.xlu1 %v4872_v9, %s4699_s1 }
 0x73d   :  { %v4044_v39 = vpop.f32.mrb[10].mxu0 }
 0x73e   :  { %v1039_v40 = vmul.f32 0.17677669, %v4044_v39  ;;  %v1029_v41 = vpop.f32.mrb[11].mxu0 }
 0x73f   :  { %v1038_v21 = vmul.f32 0.17677669, %v1029_v41 }
 0x740   :  { %v1049_v5 = vrot.slane %v1039_v40, 7  ;;  %v1050_v56 = vrot.slane %v1039_v40, 1  ;;  %v1051_v61 = vrot.slane %v1039_v40, 2  ;;  %v1052_v15 = vrot.slane %v1039_v40, 3 }
 0x741   :  { %v1042_v10 = vrot.slane %v1038_v21, 7  ;;  %v1043_v14 = vrot.slane %v1038_v21, 1  ;;  %v1044_v0 = vrot.slane %v1038_v21, 2  ;;  %v1045_v22 = vrot.slane %v1038_v21, 3 }
 0x742   :  { %v1046_v44 = vrot.slane %v1038_v21, 4  ;;  %v1047_v25 = vrot.slane %v1038_v21, 5  ;;  %v5096_v29 = vsel %vm258_vm10, %v1038_v21, -1e+09  ;;  %v1048_v60 = vrot.slane %v1038_v21, 6 }
 0x743   :  { %v5100_v59 = vsel %vm258_vm10, %v1043_v14, -1e+09  ;;  %v5104_v9 = vsel %vm258_vm10, %v1044_v0, -1e+09  ;;  %v5108_v63 = vsel %vm258_vm10, %v1042_v10, -1e+09 }
 0x744   :  { %v5112_v2 = vsel %vm258_vm10, %v1045_v22, -1e+09  ;;  %v5116_v49 = vsel %vm258_vm10, %v1046_v44, -1e+09  ;;  %v5120_v6 = vsel %vm258_vm10, %v1047_v25, -1e+09 }
 0x745   :  { %v1104_v7 = vrot.slane %v5096_v29, 7  ;;  %v1106_v8 = vrot.slane %v5100_v59, 6  ;;  %v1108_v11 = vrot.slane %v5104_v9, 5  ;;  %v1110_v13 = vrot.slane %v5112_v2, 4 }
 0x746   :  { %v1053_v52 = vrot.slane %v1039_v40, 4  ;;  %v1054_v18 = vrot.slane %v1039_v40, 5  ;;  %v5130_v48 = vsel %vm258_vm10, %v1048_v60, -1e+09  ;;  %v5134_v19 = vsel %vm258_vm10, %v1039_v40, -1e+09 }
 0x747   :  { %v1105_v46 = vsel %vm598_vm12, %v1104_v7, %v5108_v63  ;;  %v1112_v24 = vrot.slane %v5116_v49, 3  ;;  %v1114_v26 = vrot.slane %v5120_v6, 2  ;;  %v5141_v28 = vsel %vm258_vm10, %v1050_v56, -1e+09 }
 0x748   :  { %v1107_v57 = vsel %vm601_vm13, %v1106_v8, %v1105_v46  ;;  %v5146_v32 = vsel %vm258_vm10, %v1049_v5, -1e+09  ;;  %v5150_v35 = vsel %vm258_vm10, %v1051_v61, -1e+09  ;;  %v1116_v36 = vrot.slane %v5130_v48, 1 }
 0x749   :  { %v1109_v31 = vsel %vm604_vm14, %v1108_v11, %v1107_v57  ;;  %v5156_v38 = vsel %vm258_vm10, %v1052_v15, -1e+09  ;;  %v5160_v39 = vsel %vm258_vm10, %v1053_v52, -1e+09  ;;  %v1118_v41 = vrot.slane %v5134_v19, 7 }
 0x74a   :  { %v1111_v37 = vsel %vm607_vm15, %v1110_v13, %v1109_v31  ;;  %v5166_v5 = vsel %vm258_vm10, %v1054_v18, -1e+09  ;;  %v1117_v10 = vsel %vm595_vm11, %v5146_v32, %v1116_v36  ;;  %v1120_v14 = vrot.slane %v5141_v28, 6 }
 0x74b   :  { %v1113_v21 = vsel %vm610_vm0, %v1112_v24, %v1111_v37  ;;  %v1119_v22 = vsel %vm598_vm12, %v1118_v41, %v1117_v10  ;;  %v1122_v44 = vrot.slane %v5150_v35, 5  ;;  %v1055_v25 = vrot.slane %v1039_v40, 6 }
 0x74c   :  { %v1115_v0 = vsel %vm613_vm1, %v1114_v26, %v1113_v21  ;;  %v1121_v60 = vsel %vm601_vm13, %v1120_v14, %v1119_v22  ;;  %v1124_v61 = vrot.slane %v5156_v38, 4  ;;  %v769_v7 = vpop.xlane.xlu0 %768  ;;  %v1126_v11 = vrot.slane %v5160_v39, 3 }
 0x74d   :  { %v1135_v56 = vsel %vm1134_vm3, %v1115_v0, -inf  ;;  %v1123_v8 = vsel %vm604_vm14, %v1122_v44, %v1121_v60  ;;  %4531 = vrcp.f32 %v769_v7  ;;  %v1128_v15 = vrot.slane %v5166_v5, 2 }
 0x74e   :  { %1136 = vmax.xlane.f32.xlu0 %v1135_v56  ;;  %v1125_v13 = vsel %vm607_vm15, %v1124_v61, %v1123_v8  ;;  %v5183_v40 = vsel %vm258_vm10, %v1055_v25, -1e+09 }
 0x74f   :  { %v1127_v52 = vsel %vm610_vm0, %v1126_v11, %v1125_v13  ;;  %v766_v46 = vpop.xlane.xlu1 %765  ;;  %v1130_v24 = vrot.slane %v5183_v40, 1 }
 0x750   :  { %v1129_v18 = vsel %vm613_vm1, %v1128_v15, %v1127_v52  ;;  %4533 = vrcp.f32 %v766_v46 }
 0x751   :  { %v1138_v57 = vsel %vm631_vm2, %v1129_v18, -inf  ;;  %v1142_v37 = vsel %vm1141_vm4, %v1130_v24, -inf }
 0x752   :  { %1139 = vmax.xlane.f32.xlu0 %v1138_v57 }
 0x753   :  { %v4455_v26 = vpop.permute.xlu1 %4454 }
 0x754   :  { %v4457_v31 = vunpack.i.h.bf16 %v4455_v26  ;;  %v4456_v36 = vunpack.i.l.bf16 %v4455_v26 }
 0x756   :  { %1143 = vmax.xlane.f32.xlu0 %v1142_v37  ;;  %v4278_v41 = vpack.c.bf16 %v4457_v31, %v4456_v36 }
 0x757   :  { %v4532_v21 = vpop.eup %4531 }
 0x758   :  { %4279 = vmatprep.subr.bf16.mxu1 %v4278_v41  ;;  %v781_v10 = vrot.slane %v4532_v21, 1  ;;  %v782_v14 = vrot.slane %v4532_v21, 2  ;;  %v783_v22 = vrot.slane %v4532_v21, 3  ;;  %v784_v44 = vrot.slane %v4532_v21, 4 }
 0x759   :  { %4281 = vmatpush3.bf16.msra.mxu1 %v4278_v41  ;;  %v785_v25 = vrot.slane %v4532_v21, 5  ;;  %v786_v56 = vrot.slane %v4532_v21, 6  ;;  %v787_v36 = vrot.slane %v4532_v21, 7  ;;  %v812_v37 = vmul.f32 %v4532_v21, %v5028_v42 }
 0x75a   :  { %v4534_v0 = vpop.eup %4533  ;;  %v813_v52 = vmul.f32 %v5030_v16, %v781_v10  ;;  %v814_v24 = vmul.f32 %v5032_v43, %v782_v14  ;;  %v815_v16 = vmul.f32 %v5035_v50, %v783_v22 }
 0x75b   :  { %v774_v60 = vrot.slane %v4534_v0, 1  ;;  %v775_v61 = vrot.slane %v4534_v0, 2  ;;  %v776_v7 = vrot.slane %v4534_v0, 3  ;;  %v777_v8 = vrot.slane %v4534_v0, 4 }
 0x75c   :  { %v778_v11 = vrot.slane %v4534_v0, 5  ;;  %v779_v13 = vrot.slane %v4534_v0, 6  ;;  %v780_v15 = vrot.slane %v4534_v0, 7  ;;  %v804_v41 = vmul.f32 %v4534_v0, %v5051_v3 }
 0x75d   :  { %v805_v46 = vmul.f32 %v5054_v4, %v774_v60  ;;  %v806_v18 = vmul.f32 %v5056_v51, %v775_v61  ;;  %v807_v57 = vmul.f32 %v5060_v30, %v776_v7  ;;  %v808_v26 = vmul.f32 %v5064_v12, %v777_v8 }
 0x75e   :  { %v809_v31 = vmul.f32 %v5074_v47, %v778_v11  ;;  %v810_v4 = vmul.f32 %v5078_v53, %v779_v13  ;;  %v811_v51 = vmul.f32 %v5082_v58, %v780_v15  ;;  %v816_v30 = vmul.f32 %v5038_v54, %v784_v44 }
 0x75f   :  { %v836_v34 = vrot.slane %v805_v46, 7  ;;  %v838_v27 = vrot.slane %v806_v18, 6  ;;  %v817_v43 = vmul.f32 %v5045_v62, %v785_v25  ;;  %v840_v47 = vrot.slane %v807_v57, 5 }
 0x760   :  { %v850_v10 = vrot.slane %v813_v52, 7  ;;  %v852_v14 = vrot.slane %v814_v24, 6  ;;  %v842_v3 = vrot.slane %v808_v26, 4  ;;  %v844_v21 = vrot.slane %v809_v31, 3 }
 0x761   :  { %v837_v12 = vsel %vm595_vm11, %v836_v34, %v804_v41  ;;  %v818_v0 = vmul.f32 %v5048_v1, %v786_v56  ;;  %v819_v53 = vmul.f32 %v5069_v17, %v787_v36  ;;  %v854_v54 = vrot.slane %v815_v16, 5 }
 0x762   :  { %v839_v42 = vsel %vm598_vm12, %v838_v27, %v837_v12  ;;  %v851_v58 = vsel %vm595_vm11, %v850_v10, %v812_v37  ;;  %v846_v22 = vrot.slane %v810_v4, 2  ;;  %v856_v44 = vrot.slane %v816_v30, 4 }
 0x763   :  { %v841_v50 = vsel %vm601_vm13, %v840_v47, %v839_v42  ;;  %v853_v34 = vsel %vm598_vm12, %v852_v14, %v851_v58  ;;  %v848_v27 = vrot.slane %v811_v51, 1  ;;  %v858_v61 = vrot.slane %v817_v43, 3 }
 0x764   :  { %v843_v62 = vsel %vm604_vm14, %v842_v3, %v841_v50  ;;  %v855_v60 = vsel %vm601_vm13, %v854_v54, %v853_v34  ;;  %v860_v17 = vrot.slane %v818_v0, 2  ;;  %v862_v11 = vrot.slane %v819_v53, 1 }
 0x765   :  { %v845_v25 = vsel %vm607_vm15, %v844_v21, %v843_v62  ;;  %v857_v56 = vsel %vm604_vm14, %v856_v44, %v855_v60 }
 0x766   :  { %v847_v1 = vsel %vm610_vm0, %v846_v22, %v845_v25  ;;  %v859_v8 = vsel %vm607_vm15, %v858_v61, %v857_v56 }
 0x767   :  { %v849_v7 = vsel %vm613_vm1, %v848_v27, %v847_v1  ;;  %v861_v13 = vsel %vm610_vm0, %v860_v17, %v859_v8 }
 0x768   :  { %4035 = vmatprep.mubr.msk.f32.mxu1 %vm631_vm2, %v849_v7  ;;  %v863_v15 = vsel %vm613_vm1, %v862_v11, %v861_v13 }
 0x769   :  { %4036 = vmatmul.mubr.msk.f32.vlgmr.msra.gmra.mrb[0].mxu1 %vm631_vm2, %v863_v15 }
 0x7db   :  { %v1137_v52 = vpop.xlane.xlu0 %1136 }
 0x7dc   :  { %v1148_v46 = vrot.slane %v1137_v52, 1  ;;  %v1149_v18 = vrot.slane %v1137_v52, 2  ;;  %v1150_v57 = vrot.slane %v1137_v52, 3  ;;  %v1151_v24 = vrot.slane %v1137_v52, 4 }
 0x7dd   :  { %v1152_v26 = vrot.slane %v1137_v52, 5  ;;  %v1178_v31 = vsub.f32 %v5108_v63, %v1137_v52  ;;  %v1153_v10 = vrot.slane %v1137_v52, 6 }
 0x7de   :  { %v1179_v36 = vsub.f32 %v5096_v29, %v1148_v46  ;;  %v1180_v37 = vsub.f32 %v5100_v59, %v1149_v18  ;;  %v1181_v41 = vsub.f32 %v5104_v9, %v1150_v57  ;;  %v1182_v16 = vsub.f32 %v5112_v2, %v1151_v24 }
 0x7df   :  { %v1183_v4 = vsub.f32 %v5116_v49, %v1152_v26  ;;  %v1194_v51 = vmul.f32 1.442695, %v1178_v31  ;;  %v1140_v47 = vpop.xlane.xlu0 %1139  ;;  %v1184_v53 = vsub.f32 %v5120_v6, %v1153_v10 }
 0x7e0   :  { %v1196_v30 = vmul.f32 1.442695, %v1179_v36  ;;  %v1198_v43 = vmul.f32 1.442695, %v1180_v37  ;;  %v1200_v12 = vmul.f32 1.442695, %v1181_v41  ;;  %v1186_v49 = vsub.f32 %v5146_v32, %v1140_v47 }
 0x7e1   :  { %4535 = vpow2.f32 %v1194_v51  ;;  %v1202_v14 = vmul.f32 1.442695, %v1182_v16  ;;  %v1154_v42 = vrot.slane %v1140_v47, 7  ;;  %v1155_v63 = vrot.slane %v1140_v47, 1 }
 0x7e2   :  { %4537 = vpow2.f32 %v1196_v30  ;;  %v1156_v29 = vrot.slane %v1140_v47, 2  ;;  %v1157_v3 = vrot.slane %v1140_v47, 3  ;;  %v1204_v59 = vmul.f32 1.442695, %v1183_v4 }
 0x7e3   :  { %4539 = vpow2.f32 %v1198_v43  ;;  %v1158_v9 = vrot.slane %v1140_v47, 4  ;;  %v1159_v21 = vrot.slane %v1140_v47, 5  ;;  %v1185_v2 = vsub.f32 %v5130_v48, %v1154_v42  ;;  %v1144_v50 = vpop.xlane.xlu0 %1143 }
 0x7e4   :  { %4541 = vpow2.f32 %v1200_v12  ;;  %v1187_v0 = vsub.f32 %v5134_v19, %v1155_v63  ;;  %v1160_v58 = vrot.slane %v1140_v47, 6  ;;  %v1188_v54 = vsub.f32 %v5141_v28, %v1156_v29 }
 0x7e5   :  { %v1189_v62 = vsub.f32 %v5150_v35, %v1157_v3  ;;  %4543 = vpow2.f32 %v1202_v14  ;;  %v1208_v22 = vmul.f32 1.442695, %v1185_v2  ;;  %v1210_v34 = vmul.f32 1.442695, %v1186_v49 }
 0x7e6   :  { %v1212_v44 = vmul.f32 1.442695, %v1187_v0  ;;  %4545 = vpow2.f32 %v1204_v59  ;;  %v1190_v25 = vsub.f32 %v5156_v38, %v1158_v9  ;;  %v1214_v48 = vmul.f32 1.442695, %v1188_v54 }
 0x7e7   :  { %v1161_v27 = vrot.slane %v1144_v50, 7  ;;  %4547 = vpow2.f32 %v1208_v22  ;;  %v1216_v32 = vmul.f32 1.442695, %v1189_v62  ;;  %v1191_v19 = vsub.f32 %v5160_v39, %v1159_v21 }
 0x7e8   :  { %4549 = vpow2.f32 %v1210_v34  ;;  %v1192_v28 = vsub.f32 %v5166_v5, %v1160_v58  ;;  %v1206_v35 = vmul.f32 1.442695, %v1184_v53  ;;  %v1218_v1 = vmul.f32 1.442695, %v1190_v25 }
 0x7e9   :  { %v1193_v6 = vsub.f32 %v5183_v40, %v1161_v27  ;;  %4551 = vpow2.f32 %v1212_v44  ;;  %v1220_v38 = vmul.f32 1.442695, %v1191_v19 }
 0x7ea   :  { %4553 = vpow2.f32 %v1214_v48  ;;  %v1222_v7 = vmul.f32 1.442695, %v1192_v28  ;;  %v1463_v28 = vld [vmem:[%s6166_s7 + $0x8] sm:$0xff] }
 0x7eb   :  { %v5238_v60 = vpop.eup %4535  ;;  %v1224_v61 = vmul.f32 1.442695, %v1193_v6  ;;  %4555 = vpow2.f32 %v1216_v32  ;;  %v1462_v6 = vld [vmem:[%s6166_s7] sm:$0xff] }
 0x7ec   :  { %v5240_v56 = vpop.eup %4537 }
 0x7ed   :  { %v5242_v17 = vpop.eup %4539  ;;  %4557 = vpow2.f32 %v1224_v61  ;;  %v1242_v39 = vrot.slane %v5240_v56, 7 }
 0x7ee   :  { %v5245_v40 = vpop.eup %4541  ;;  %4559 = vpow2.f32 %v1206_v35  ;;  %v1244_v5 = vrot.slane %v5242_v17, 6 }
 0x7ef   :  { %v1243_v8 = vsel %vm598_vm12, %v1242_v39, %v5238_v60  ;;  %4561 = vpow2.f32 %v1218_v1  ;;  %v5250_v11 = vpop.eup %4543  ;;  %v1246_v15 = vrot.slane %v5245_v40, 5 }
 0x7f0   :  { %v1245_v13 = vsel %vm601_vm13, %v1244_v5, %v1243_v8  ;;  %4563 = vpow2.f32 %v1220_v38  ;;  %v5254_v52 = vpop.eup %4545  ;;  %v1248_v24 = vrot.slane %v5250_v11, 4  ;;  %v5311_v38 = vpack.c.bf16 %v1463_v28, %v1462_v6 }
 0x7f1   :  { %4565 = vpow2.f32 %v1222_v7  ;;  %v5256_v46 = vpop.eup %4547  ;;  %v1247_v18 = vsel %vm604_vm14, %v1246_v15, %v1245_v13  ;;  %v1250_v51 = vrot.slane %v5254_v52, 3 }
 0x7f2   :  { %v5259_v57 = vpop.eup %4549  ;;  %v1254_v26 = vrot.slane %v5256_v46, 1  ;;  %v1249_v37 = vsel %vm607_vm15, %v1248_v24, %v1247_v18 }
 0x7f3   :  { %v5263_v31 = vpop.eup %4551  ;;  %v1251_v14 = vsel %vm610_vm0, %v1250_v51, %v1249_v37 }
 0x7f4   :  { %v5265_v36 = vpop.eup %4553  ;;  %v1255_v41 = vsel %vm595_vm11, %v5259_v57, %v1254_v26  ;;  %v1256_v16 = vrot.slane %v5263_v31, 7 }
 0x7f5   :  { %v5271_v4 = vpop.eup %4555  ;;  %v1258_v30 = vrot.slane %v5265_v36, 6 }
 0x7f6   :  { %v1257_v12 = vsel %vm598_vm12, %v1256_v16, %v1255_v41  ;;  %v1260_v47 = vrot.slane %v5271_v4, 5 }
 0x7f7   :  { %v5275_v43 = vpop.eup %4557  ;;  %v1259_v42 = vsel %vm601_vm13, %v1258_v30, %v1257_v12 }
 0x7f8   :  { %v4560_v10 = vpop.eup %4559  ;;  %v1261_v3 = vsel %vm604_vm14, %v1260_v47, %v1259_v42  ;;  %v1268_v50 = vrot.slane %v5275_v43, 1 }
 0x7f9   :  { %v5281_v63 = vpop.eup %4561  ;;  %v1252_v29 = vrot.slane %v4560_v10, 2 }
 0x7fa   :  { %v5284_v59 = vpop.eup %4563  ;;  %v1262_v9 = vrot.slane %v5281_v63, 4  ;;  %v1278_v34 = vsel %vm1141_vm4, %v1268_v50, 0.0 }
 0x7fb   :  { %v5287_v21 = vpop.eup %4565  ;;  %v1253_v2 = vsel %vm613_vm1, %v1252_v29, %v1251_v14  ;;  %v1264_v49 = vrot.slane %v5284_v59, 3 }
 0x7fc   :  { %v1272_v0 = vsel %vm1134_vm3, %v1253_v2, 0.0  ;;  %v1263_v53 = vsel %vm607_vm15, %v1262_v9, %v1261_v3  ;;  %v1266_v58 = vrot.slane %v5287_v21, 2 }
 0x7fd   :  { %1273 = vadd.xlane.f32.xlu0 %v1272_v0  ;;  %v1265_v54 = vsel %vm610_vm0, %v1264_v49, %v1263_v53 }
 0x7fe   :  { %v1267_v62 = vsel %vm613_vm1, %v1266_v58, %v1265_v54 }
 0x7ff   :  { %v1275_v22 = vsel %vm631_vm2, %v1267_v62, 0.0 }
 0x800   :  { %1276 = vadd.xlane.f32.xlu1 %v1275_v22 }
 0x801   :  { %1279 = vadd.xlane.f32.xlu0 %v1278_v34 }
 0x817   :  { %4459 = vrot.lane.b32.xlu0 %v4900_v33, %s4699_s1 }
 0x83c   :  { %v5301_v44 = vpop.f32.mrb[0].mxu1 }
 0x83d   :  { %v5303_v25 = vpop.f32.mrb[1].mxu1 }
 0x88a   :  { %v1274_v48 = vpop.xlane.xlu0 %1273 }
 0x88b   :  { %4567 = vrcp.f32 %v1274_v48 }
 0x88d   :  { %v1277_v27 = vpop.xlane.xlu1 %1276 }
 0x88e   :  { %v1280_v32 = vpop.xlane.xlu0 %1279  ;;  %4569 = vrcp.f32 %v1277_v27 }
 0x88f   :  { %4571 = vrcp.f32 %v1280_v32 }
 0x892   :  { %v4460_v19 = vpop.permute.xlu0 %4459 }
 0x893   :  { %v4462_v33 = vunpack.i.h.bf16 %v4460_v19  ;;  %v4461_v35 = vunpack.i.l.bf16 %v4460_v19 }
 0x895   :  { %v4568_v61 = vpop.eup %4567  ;;  %v4288_v1 = vpack.c.bf16 %v4462_v33, %v4461_v35 }
 0x896   :  { %v1287_v39 = vrot.slane %v4568_v61, 1  ;;  %v1288_v7 = vrot.slane %v4568_v61, 2  ;;  %v1289_v5 = vrot.slane %v4568_v61, 3  ;;  %v1290_v8 = vrot.slane %v4568_v61, 4 }
 0x897   :  { %4289 = vmatprep.subr.bf16.mxu1 %v4288_v1  ;;  %v1291_v13 = vrot.slane %v4568_v61, 5  ;;  %v1292_v15 = vrot.slane %v4568_v61, 6  ;;  %v1317_v18 = vmul.f32 %v4568_v61, %v5238_v60 }
 0x898   :  { %v4570_v24 = vpop.eup %4569  ;;  %4291 = vmatpush3.bf16.msra.mxu1 %v4288_v1  ;;  %v1318_v26 = vmul.f32 %v5240_v56, %v1287_v39  ;;  %v1319_v37 = vmul.f32 %v5242_v17, %v1288_v7  ;;  %v1320_v41 = vmul.f32 %v5245_v40, %v1289_v5  ;;  %v1321_v16 = vmul.f32 %v5250_v11, %v1290_v8  ;;  %v1465_v39 = vld [vmem:[%s6166_s7 + $0x18] sm:$0xff] }
 0x899   :  { %v4572_v51 = vpop.eup %4571  ;;  %v1293_v30 = vrot.slane %v4570_v24, 7  ;;  %v1322_v12 = vmul.f32 %v5254_v52, %v1291_v13  ;;  %v1349_v47 = vrot.slane %v1317_v18, 1  ;;  %4293 = vmatprep.subr.bf16.mxu1 %v5311_v38  ;;  %v1323_v14 = vmul.f32 %v4560_v10, %v1292_v15 }
 0x89a   :  { %v1351_v42 = vrot.slane %v1319_v37, 7  ;;  %v1353_v60 = vrot.slane %v1320_v41, 6  ;;  %v1300_v29 = vrot.slane %v4572_v51, 7  ;;  %v1355_v17 = vrot.slane %v1321_v16, 5 }
 0x89b   :  { %v1324_v3 = vmul.f32 %v5256_v46, %v1293_v30  ;;  %v1350_v56 = vsel %vm595_vm11, %v1318_v26, %v1349_v47  ;;  %v1357_v9 = vrot.slane %v1322_v12, 4  ;;  %v1294_v11 = vrot.slane %v4570_v24, 1  ;;  %v3767_v26 = vld [vmem:[%s6162_s4 + $0x4] ss:$0 sm:$0xff] }
 0x89c   :  { %v1352_v40 = vsel %vm598_vm12, %v1351_v42, %v1350_v56  ;;  %v1295_v2 = vrot.slane %v4570_v24, 2  ;;  %v1296_v0 = vrot.slane %v4570_v24, 3  ;;  %v1297_v50 = vrot.slane %v4570_v24, 4 }
 0x89d   :  { %v1354_v49 = vsel %vm601_vm13, %v1353_v60, %v1352_v40  ;;  %v1361_v52 = vrot.slane %v1324_v3, 2  ;;  %v1359_v53 = vrot.slane %v1323_v14, 3  ;;  %v1298_v58 = vrot.slane %v4570_v24, 5  ;;  %v1643_v40 = vld [vmem:[%s6167_s8 + $0x8] sm:$0xff] }
 0x89e   :  { %v1356_v10 = vsel %vm604_vm14, %v1355_v17, %v1354_v49  ;;  %v1299_v54 = vrot.slane %v4570_v24, 6  ;;  %v1325_v62 = vmul.f32 %v4570_v24, %v5259_v57  ;;  %v1326_v22 = vmul.f32 %v5263_v31, %v1294_v11  ;;  %v1644_v11 = vld [vmem:[%s6167_s8 + $0x10] sm:$0xff] }
 0x89f   :  { %v1358_v46 = vsel %vm607_vm15, %v1357_v9, %v1356_v10  ;;  %v1327_v34 = vmul.f32 %v5265_v36, %v1295_v2  ;;  %v1328_v27 = vmul.f32 %v5271_v4, %v1296_v0  ;;  %v1329_v32 = vmul.f32 %v5281_v63, %v1297_v50  ;;  %v1645_v2 = vld [vmem:[%s6167_s8 + $0x18] sm:$0xff] }
 0x8a0   :  { %v1360_v48 = vsel %vm610_vm0, %v1359_v53, %v1358_v46  ;;  %v1330_v6 = vmul.f32 %v5284_v59, %v1298_v58  ;;  %v1363_v28 = vrot.slane %v1325_v62, 1  ;;  %v1331_v57 = vmul.f32 %v5287_v21, %v1299_v54  ;;  %v1464_v59 = vld [vmem:[%s6166_s7 + $0x10] sm:$0xff] }
 0x8a1   :  { %v1362_v19 = vsel %vm613_vm1, %v1361_v52, %v1360_v48  ;;  %v1365_v33 = vrot.slane %v1327_v34, 7  ;;  %v1367_v35 = vrot.slane %v1328_v27, 6  ;;  %v1332_v31 = vmul.f32 %v5275_v43, %v1300_v29 }
 0x8a2   :  { %4049 = vmatprep.mubr.msk.f32.mxu1 %vm631_vm2, %v1362_v19  ;;  %v1364_v36 = vsel %vm595_vm11, %v1326_v22, %v1363_v28  ;;  %v1369_v4 = vrot.slane %v1329_v32, 5  ;;  %v1371_v1 = vrot.slane %v1330_v6, 4  ;;  %v1373_v7 = vrot.slane %v1331_v57, 3 }
 0x8a3   :  { %v1366_v61 = vsel %vm598_vm12, %v1365_v33, %v1364_v36  ;;  %v1375_v43 = vrot.slane %v1332_v31, 2  ;;  %v4296_v13 = vpack.c.bf16 %v1465_v39, %v1464_v59  ;;  %v4304_v49 = vpack.c.bf16 %v1645_v2, %v1644_v11 }
 0x8a4   :  { %v1368_v63 = vsel %vm601_vm13, %v1367_v35, %v1366_v61 }
 0x8a5   :  { %v1370_v21 = vsel %vm604_vm14, %v1369_v4, %v1368_v63 }
 0x8a6   :  { %v1372_v5 = vsel %vm607_vm15, %v1371_v1, %v1370_v21 }
 0x8a7   :  { %v1374_v8 = vsel %vm610_vm0, %v1373_v7, %v1372_v5 }
 0x8a8   :  { %v1376_v15 = vsel %vm613_vm1, %v1375_v43, %v1374_v8  ;;  %v1770_v8 = vld [vmem:[%s6168_s10] sm:$0xff] }
 0x8a9   :  { %4050 = vmatmul.mubr.msk.f32.vlgmr.msra.gmra.mrb[2].mxu1 %vm631_vm2, %v1376_v15 }
 0x8aa   :  { %4295 = vmatpush3.bf16.msra.mxu1 %v5311_v38  ;;  %4060 = vmatprep.mubr.msk.f32.mxu1 %vm188_vm8, %v5303_v25 }
 0x8ab   :  { %4297 = vmatprep.subr.bf16.mxu1 %v4296_v13 }
 0x8ae   :  { %4299 = vmatpush3.bf16.msra.mxu1 %v4296_v13  ;;  %v1771_v13 = vld [vmem:[%s6168_s10 + $0x8] sm:$0xff] }
 0x8af   :  { %v4308_v15 = vpack.c.bf16 %v1771_v13, %v1770_v8 }
 0x8b1   :  { %4061 = vmatmul.mubr.msk.f32.vlgmr.msra.gmra.mrb[4].mxu1 %vm188_vm8, %v5301_v44  ;;  %4309 = vmatprep.subr.bf16.mxu1 %v4308_v15 }
 0x8b2   :  { %4311 = vmatpush3.bf16.msra.mxu1 %v4308_v15 }
 0x97c   :  { %v4051_v18 = vpop.f32.mrb[2].mxu1 }
 0x97d   :  { %v1453_v24 = vpop.f32.mrb[3].mxu1 }
 0x97e   :  { %4063 = vmatprep.mubr.msk.f32.mxu1 %vm188_vm8, %v1453_v24  ;;  %v1773_v24 = vld [vmem:[%s6168_s10 + $0x18] sm:$0xff] }
 0x97f   :  { %4064 = vmatmul.mubr.msk.f32.gmra.mrb[6].mxu1 %vm188_vm8, %v4051_v18  ;;  %v1772_v18 = vld [vmem:[%s6168_s10 + $0x10] sm:$0xff] }
 0x984   :  { %v4062_v37 = vpop.f32.mrb[4].mxu1 }
 0x985   :  { %v1555_v38 = vadd.f32 %v4062_v37, %v3767_v26  ;;  %v1549_v41 = vpop.f32.mrb[5].mxu1  ;;  %v1774_v37 = vld [vmem:[%s6168_s10 + $0x20] sm:$0xff] }
 0x986   :  { %v1550_v16 = vadd.f32 %v3767_v26, %v1549_v41 }
 0x987   :  { %v1569_v25 = vadd.f32 %v1555_v38, %v4859_v55  ;;  %v1775_v38 = vld [vmem:[%s6168_s10 + $0x28] sm:$0xff] }
 0x988   :  { %v1568_v51 = vadd.f32 %v1550_v16, %v4853_v45  ;;  %v1642_v45 = vld [vmem:[%s6167_s8] sm:$0xff]  ;;  %v4316_v41 = vpack.c.bf16 %v1775_v38, %v1774_v37  ;;  %v1776_v16 = vld [vmem:[%s6168_s10 + $0x30] sm:$0xff] }
 0x989   :  { %v1577_v44 = vsel %vm188_vm8, %v1569_v25, 0.0  ;;  %v4300_v9 = vpack.c.bf16 %v1643_v40, %v1642_v45 }
 0x98a   :  { %1578 = vadd.xlane.f32.xlu1 %v1577_v44  ;;  %v1574_v30 = vsel %vm188_vm8, %v1568_v51, 0.0  ;;  %v1778_v44 = vld [vmem:[%s6168_s10 + $0x40] sm:$0xff] }
 0x98b   :  { %1575 = vadd.xlane.f32.xlu0 %v1574_v30  ;;  %4301 = vmatprep.subr.bf16.mxu0 %v4300_v9  ;;  %v1779_v30 = vld [vmem:[%s6168_s10 + $0x48] sm:$0xff] }
 0x98c   :  { %4303 = vmatpush3.bf16.msra.mxu0 %v4300_v9 }
 0x98d   :  { %4305 = vmatprep.subr.bf16.mxu0 %v4304_v49 }
 0x990   :  { %4307 = vmatpush3.bf16.msra.mxu0 %v4304_v49 }
 0xa17   :  { %v1579_v12 = vpop.xlane.xlu1 %1578 }
 0xa18   :  { %v1587_v47 = vmul.f32 0.03125, %v1579_v12  ;;  %v1576_v14 = vpop.xlane.xlu0 %1575  ;;  %v4324_v12 = vpack.c.bf16 %v1779_v30, %v1778_v44 }
 0xa19   :  { %v1586_v42 = vmul.f32 0.03125, %v1576_v14  ;;  %v1781_v14 = vld [vmem:[%s6168_s10 + $0x58] sm:$0xff] }
 0xa1a   :  { %v1591_v60 = vsub.f32 %v1569_v25, %v1587_v47  ;;  %v1777_v25 = vld [vmem:[%s6168_s10 + $0x38] sm:$0xff]  ;;  %v1780_v47 = vld [vmem:[%s6168_s10 + $0x50] sm:$0xff] }
 0xa1b   :  { %v1590_v29 = vsub.f32 %v1568_v51, %v1586_v42  ;;  %v4320_v51 = vpack.c.bf16 %v1777_v25, %v1776_v16  ;;  %v4328_v42 = vpack.c.bf16 %v1781_v14, %v1780_v47 }
 0xa1c   :  { %v1595_v17 = vmul.f32 %v1591_v60, %v1591_v60 }
 0xa1d   :  { %v1594_v3 = vmul.f32 %v1590_v29, %v1590_v29 }
 0xa1e   :  { %v1601_v55 = vsel %vm188_vm8, %v1595_v17, 0.0  ;;  %v1785_v17 = vld [vmem:[%s6168_s10 + $0x78] sm:$0xff] }
 0xa1f   :  { %v1598_v56 = vsel %vm188_vm8, %v1594_v3, 0.0 }
 0xa20   :  { %1599 = vadd.xlane.f32.xlu1 %v1598_v56  ;;  %v1784_v56 = vld [vmem:[%s6168_s10 + $0x70] sm:$0xff] }
 0xa24   :  { %1602 = vadd.xlane.f32.xlu1 %v1601_v55  ;;  %v4336_v55 = vpack.c.bf16 %v1785_v17, %v1784_v56 }
 0xa52   :  { %v4065_v52 = vpop.f32.mrb[6].mxu1 }
 0xa53   :  { %v1559_v0 = vpop.f32.mrb[7].mxu1  ;;  %v1565_v50 = vadd.f32 %v4065_v52, %v3767_v26 }
 0xa54   :  { %v1560_v10 = vadd.f32 %v3767_v26, %v1559_v0  ;;  %v4312_v26 = vpack.c.bf16 %v1773_v24, %v1772_v18 }
 0xa55   :  { %v1571_v54 = vadd.f32 %v1565_v50, %v4880_v23  ;;  %v5391_v23 = vld [vmem:[%s6162_s4 + $0x6] ss:$0 sm:$0xff] }
 0xa56   :  { %v1570_v53 = vadd.f32 %v1560_v10, %v4876_v20  ;;  %v5386_v20 = vld [vmem:[%s6162_s4 + $0x5] ss:$0 sm:$0xff]  ;;  %4313 = vmatprep.subr.bf16.mxu1 %v4312_v26 }
 0xa57   :  { %v1583_v46 = vsel %vm188_vm8, %v1571_v54, 0.0  ;;  %4315 = vmatpush3.bf16.msra.mxu1 %v4312_v26  ;;  %v3779_v26 = vld [vmem:[%s6162_s4 + $0x7] ss:$0 sm:$0xff] }
 0xa58   :  { %v1580_v58 = vsel %vm188_vm8, %v1570_v53, 0.0  ;;  %4317 = vmatprep.subr.bf16.mxu1 %v4316_v41 }
 0xa59   :  { %1581 = vadd.xlane.f32.xlu1 %v1580_v58 }
 0xa5b   :  { %4319 = vmatpush3.bf16.msra.mxu1 %v4316_v41 }
 0xa5c   :  { %4321 = vmatprep.subr.bf16.mxu1 %v4320_v51 }
 0xa5d   :  { %1584 = vadd.xlane.f32.xlu1 %v1583_v46 }
 0xa5f   :  { %4323 = vmatpush3.bf16.msra.mxu1 %v4320_v51 }
 0xa60   :  { %4325 = vmatprep.subr.bf16.mxu1 %v4324_v12 }
 0xa63   :  { %4327 = vmatpush3.bf16.msra.mxu1 %v4324_v12 }
 0xa64   :  { %4329 = vmatprep.subr.bf16.mxu1 %v4328_v42 }
 0xa67   :  { %4331 = vmatpush3.bf16.msra.mxu1 %v4328_v42 }
 0xaad   :  { %v1600_v62 = vpop.xlane.xlu1 %1599 }
 0xaae   :  { %v1610_v22 = vmul.f32 0.03125, %v1600_v62  ;;  %v3774_v62 = vld [vmem:[%s6169_s9] ss:$0 sm:$0xff] }
 0xab0   :  { %v1614_v34 = vadd.f32 1e-05, %v1610_v22 }
 0xab1   :  { %v1603_v48 = vpop.xlane.xlu1 %1602 }
 0xab2   :  { %4573 = vrsqrt.f32 %v1614_v34  ;;  %v1611_v27 = vmul.f32 0.03125, %v1603_v48 }
 0xab4   :  { %v1615_v32 = vadd.f32 1e-05, %v1611_v27 }
 0xab6   :  { %4575 = vrsqrt.f32 %v1615_v32 }
 0xabc   :  { %v4574_v19 = vpop.eup %4573 }
 0xabd   :  { %v1622_v6 = vmul.f32 %v4574_v19, %v1590_v29  ;;  %v1783_v29 = vld [vmem:[%s6168_s10 + $0x68] sm:$0xff] }
 0xabf   :  { %v1630_v28 = vmul.f32 %v5386_v20, %v1622_v6 }
 0xac0   :  { %v4576_v33 = vpop.eup %4575 }
 0xac1   :  { %v1623_v57 = vmul.f32 %v4576_v33, %v1591_v60  ;;  %v5395_v35 = vadd.f32 %v5391_v23, %v1630_v28  ;;  %v1782_v60 = vld [vmem:[%s6168_s10 + $0x60] sm:$0xff] }
 0xac2   :  { %v4332_v3 = vpack.c.bf16 %v1783_v29, %v1782_v60 }
 0xac3   :  { %4074 = vmatprep.mubr.msk.f32.mxu0 %vm188_vm8, %v5395_v35  ;;  %v1631_v31 = vmul.f32 %v5386_v20, %v1623_v57 }
 0xac4   :  { %4333 = vmatprep.subr.bf16.mxu1 %v4332_v3 }
 0xac5   :  { %v5401_v36 = vadd.f32 %v5391_v23, %v1631_v31  ;;  %4335 = vmatpush3.bf16.msra.mxu1 %v4332_v3 }
 0xac6   :  { %4337 = vmatprep.subr.bf16.mxu1 %v4336_v55 }
 0xac7   :  { %4075 = vmatmul.mubr.msk.f32.vlgmr.msra.gmra.mrb[12].mxu0 %vm188_vm8, %v5401_v36 }
 0xac9   :  { %4339 = vmatpush3.bf16.msra.mxu1 %v4336_v55  ;;  %v3783_v55 = vld [vmem:[%s6163_s5 + $0x28] sm:$0xff] }
 0xae6   :  { %v1582_v61 = vpop.xlane.xlu1 %1581 }
 0xae7   :  { %v1588_v4 = vmul.f32 0.03125, %v1582_v61 }
 0xae9   :  { %v1592_v63 = vsub.f32 %v1570_v53, %v1588_v4 }
 0xaea   :  { %v1585_v1 = vpop.xlane.xlu1 %1584 }
 0xaeb   :  { %v1589_v59 = vmul.f32 0.03125, %v1585_v1  ;;  %v1596_v39 = vmul.f32 %v1592_v63, %v1592_v63 }
 0xaed   :  { %v1593_v21 = vsub.f32 %v1571_v54, %v1589_v59  ;;  %v1604_v7 = vsel %vm188_vm8, %v1596_v39, 0.0 }
 0xaee   :  { %1605 = vadd.xlane.f32.xlu1 %v1604_v7 }
 0xaef   :  { %v1597_v43 = vmul.f32 %v1593_v21, %v1593_v21 }
 0xaf1   :  { %v1607_v5 = vsel %vm188_vm8, %v1597_v43, 0.0 }
 0xaf2   :  { %1608 = vadd.xlane.f32.xlu0 %v1607_v5 }
 0xb7b   :  { %v1606_v45 = vpop.xlane.xlu1 %1605 }
 0xb7c   :  { %v1612_v40 = vmul.f32 0.03125, %v1606_v45  ;;  %v3784_v45 = vld [vmem:[%s6163_s5 + $0x30] sm:$0xff] }
 0xb7e   :  { %v1616_v9 = vadd.f32 1e-05, %v1612_v40 }
 0xb7f   :  { %v1609_v11 = vpop.xlane.xlu0 %1608 }
 0xb80   :  { %4577 = vrsqrt.f32 %v1616_v9  ;;  %v1613_v2 = vmul.f32 0.03125, %v1609_v11  ;;  %v3785_v9 = vld [vmem:[%s6163_s5 + $0x38] sm:$0xff] }
 0xb81   :  { %v4344_v11 = vpack.c.bf16 %v3785_v9, %v3784_v45 }
 0xb82   :  { %v1617_v49 = vadd.f32 1e-05, %v1613_v2 }
 0xb84   :  { %4579 = vrsqrt.f32 %v1617_v49 }
 0xb8a   :  { %v4578_v52 = vpop.eup %4577 }
 0xb8b   :  { %v1624_v0 = vmul.f32 %v4578_v52, %v1592_v63 }
 0xb8d   :  { %v1632_v50 = vmul.f32 %v5386_v20, %v1624_v0 }
 0xb8e   :  { %v4580_v10 = vpop.eup %4579 }
 0xb8f   :  { %v5457_v53 = vadd.f32 %v5391_v23, %v1632_v50  ;;  %v1625_v58 = vmul.f32 %v4580_v10, %v1593_v21 }
 0xb91   :  { %4077 = vmatprep.mubr.msk.f32.mxu0 %vm188_vm8, %v5457_v53  ;;  %v1633_v54 = vmul.f32 %v5386_v20, %v1625_v58 }
 0xb93   :  { %v5463_v46 = vadd.f32 %v5391_v23, %v1633_v54 }
 0xb95   :  { %4078 = vmatmul.mubr.msk.f32.gmra.mrb[14].mxu0 %vm188_vm8, %v5463_v46 }
 0xb9a   :  { %v4076_v22 = vpop.f32.mrb[12].mxu0 }
 0xb9b   :  { %v1737_v34 = vadd.f32 %v4076_v22, %v3774_v62  ;;  %v1731_v48 = vpop.f32.mrb[13].mxu0 }
 0xb9c   :  { %v1732_v27 = vadd.f32 %v3774_v62, %v1731_v48 }
 0xb9d   :  { %v1755_v32 = vmul.f32 0.70710677, %v1737_v34  ;;  %v1751_v57 = vmul.f32 0.5, %v1737_v34 }
 0xb9e   :  { %v1754_v19 = vmul.f32 0.70710677, %v1732_v27  ;;  %v1750_v23 = vmul.f32 0.5, %v1732_v27 }
 0xb9f   :  { %4581 = verf.f32 %v1755_v32 }
 0xba0   :  { %4583 = verf.f32 %v1754_v19 }
 0xba9   :  { %v4582_v6 = vpop.eup %4581 }
 0xbaa   :  { %v4584_v20 = vpop.eup %4583  ;;  %v1763_v28 = vadd.f32 1.0, %v4582_v6 }
 0xbab   :  { %v1762_v33 = vadd.f32 1.0, %v4584_v20 }
 0xbac   :  { %v1767_v61 = vmul.f32 %v1763_v28, %v1751_v57  ;;  %v3781_v28 = vld [vmem:[%s6162_s4 + $0x9] ss:$0 sm:$0xff] }
 0xbad   :  { %v1766_v31 = vmul.f32 %v1762_v33, %v1750_v23 }
 0xbaf   :  { %4112 = vmatprep.mubr.f32.mxu1 %v1766_v31 }
 0xbb0   :  { %4113 = vmatmul.mubr.f32.vlgmr.msra.gmra.mrb[8].mxu1 %v1767_v61 }
 0xc68   :  { %v4079_v4 = vpop.f32.mrb[14].mxu0 }
 0xc69   :  { %v1747_v63 = vadd.f32 %v4079_v4, %v3774_v62  ;;  %v1741_v1 = vpop.f32.mrb[15].mxu0 }
 0xc6a   :  { %v1742_v59 = vadd.f32 %v3774_v62, %v1741_v1 }
 0xc6b   :  { %v1757_v39 = vmul.f32 0.70710677, %v1747_v63  ;;  %v1753_v15 = vmul.f32 0.5, %v1747_v63 }
 0xc6c   :  { %v1756_v21 = vmul.f32 0.70710677, %v1742_v59  ;;  %v1752_v8 = vmul.f32 0.5, %v1742_v59 }
 0xc6d   :  { %4585 = verf.f32 %v1757_v39 }
 0xc6e   :  { %4587 = verf.f32 %v1756_v21 }
 0xc77   :  { %v4586_v7 = vpop.eup %4585 }
 0xc78   :  { %v4588_v43 = vpop.eup %4587  ;;  %v1765_v5 = vadd.f32 1.0, %v4586_v7 }
 0xc79   :  { %v1764_v13 = vadd.f32 1.0, %v4588_v43 }
 0xc7a   :  { %v1769_v24 = vmul.f32 %v1765_v5, %v1753_v15 }
 0xc7b   :  { %v1768_v18 = vmul.f32 %v1764_v13, %v1752_v8 }
 0xc7d   :  { %4115 = vmatprep.mubr.f32.mxu1 %v1768_v18 }
 0xc7e   :  { %4116 = vmatmul.mubr.f32.gmra.mrb[10].mxu1 %v1769_v24 }
 0xc83   :  { %v4114_v37 = vpop.f32.mrb[8].mxu1 }
 0xc84   :  { %v1863_v38 = vadd.f32 %v4114_v37, %v3779_v26  ;;  %v1857_v41 = vpop.f32.mrb[9].mxu1 }
 0xc85   :  { %v1858_v16 = vadd.f32 %v3779_v26, %v1857_v41 }
 0xc86   :  { %v1877_v25 = vadd.f32 %v1863_v38, %v5401_v36 }
 0xc87   :  { %v1876_v51 = vadd.f32 %v1858_v16, %v5395_v35  ;;  %v3782_v35 = vld [vmem:[%s6163_s5 + $0x20] sm:$0xff] }
 0xc88   :  { %v1885_v44 = vsel %vm188_vm8, %v1877_v25, 0.0  ;;  %v4340_v40 = vpack.c.bf16 %v3783_v55, %v3782_v35 }
 0xc89   :  { %1886 = vadd.xlane.f32.xlu0 %v1885_v44  ;;  %v1882_v30 = vsel %vm188_vm8, %v1876_v51, 0.0 }
 0xc8a   :  { %1883 = vadd.xlane.f32.xlu1 %v1882_v30  ;;  %4341 = vmatprep.subr.bf16.mxu0 %v4340_v40 }
 0xc8b   :  { %4343 = vmatpush3.bf16.msra.mxu0 %v4340_v40 }
 0xc8c   :  { %4345 = vmatprep.subr.bf16.mxu0 %v4344_v11 }
 0xc8f   :  { %4347 = vmatpush3.bf16.msra.mxu0 %v4344_v11 }
 0xd16   :  { %v1887_v12 = vpop.xlane.xlu0 %1886 }
 0xd17   :  { %v1895_v47 = vmul.f32 0.03125, %v1887_v12  ;;  %v1884_v14 = vpop.xlane.xlu1 %1883  ;;  %v5522_v12 = vld [vmem:[%s6164_s6 + $0x1] ss:$0 sm:$0xff] }
 0xd18   :  { %v1894_v42 = vmul.f32 0.03125, %v1884_v14 }
 0xd19   :  { %v1899_v60 = vsub.f32 %v1877_v25, %v1895_v47 }
 0xd1a   :  { %v1898_v29 = vsub.f32 %v1876_v51, %v1894_v42 }
 0xd1b   :  { %v1903_v3 = vmul.f32 %v1899_v60, %v1899_v60 }
 0xd1c   :  { %v1902_v56 = vmul.f32 %v1898_v29, %v1898_v29 }
 0xd1d   :  { %v1909_v17 = vsel %vm188_vm8, %v1903_v3, 0.0 }
 0xd1e   :  { %1910 = vadd.xlane.f32.xlu0 %v1909_v17  ;;  %v1906_v36 = vsel %vm188_vm8, %v1902_v56, 0.0 }
 0xd1f   :  { %1907 = vadd.xlane.f32.xlu1 %v1906_v36 }
 0xd51   :  { %v4117_v2 = vpop.f32.mrb[10].mxu1 }
 0xd52   :  { %v1873_v49 = vadd.f32 %v4117_v2, %v3779_v26  ;;  %v1867_v52 = vpop.f32.mrb[11].mxu1 }
 0xd53   :  { %v1868_v0 = vadd.f32 %v3779_v26, %v1867_v52 }
 0xd54   :  { %v1879_v50 = vadd.f32 %v1873_v49, %v5463_v46  ;;  %v3780_v46 = vld [vmem:[%s6162_s4 + $0x8] ss:$0 sm:$0xff] }
 0xd55   :  { %v1878_v10 = vadd.f32 %v1868_v0, %v5457_v53 }
 0xd56   :  { %v1891_v58 = vsel %vm188_vm8, %v1879_v50, 0.0 }
 0xd57   :  { %1892 = vadd.xlane.f32.xlu0 %v1891_v58  ;;  %v1888_v54 = vsel %vm188_vm8, %v1878_v10, 0.0 }
 0xd58   :  { %1889 = vadd.xlane.f32.xlu1 %v1888_v54 }
 0xdab   :  { %v1911_v62 = vpop.xlane.xlu0 %1910 }
 0xdac   :  { %v1919_v22 = vmul.f32 0.03125, %v1911_v62  ;;  %v1908_v34 = vpop.xlane.xlu1 %1907 }
 0xdad   :  { %v1918_v48 = vmul.f32 0.03125, %v1908_v34 }
 0xdae   :  { %v1923_v27 = vadd.f32 1e-05, %v1919_v22 }
 0xdaf   :  { %v1922_v32 = vadd.f32 1e-05, %v1918_v48 }
 0xdb0   :  { %4589 = vrsqrt.f32 %v1923_v27 }
 0xdb1   :  { %4591 = vrsqrt.f32 %v1922_v32 }
 0xdba   :  { %v4590_v19 = vpop.eup %4589 }
 0xdbb   :  { %v4592_v53 = vpop.eup %4591  ;;  %v1931_v6 = vmul.f32 %v4590_v19, %v1899_v60 }
 0xdbc   :  { %v1930_v20 = vmul.f32 %v4592_v53, %v1898_v29 }
 0xdbd   :  { %v1939_v23 = vmul.f32 %v3780_v46, %v1931_v6 }
 0xdbe   :  { %v1938_v33 = vmul.f32 %v3780_v46, %v1930_v20 }
 0xdbf   :  { %v5503_v31 = vadd.f32 %v3781_v28, %v1939_v23 }
 0xdc0   :  { %v5501_v57 = vadd.f32 %v3781_v28, %v1938_v33 }
 0xdc2   :  { %4126 = vmatprep.mubr.msk.f32.mxu0 %vm188_vm8, %v5501_v57 }
 0xdc3   :  { %4127 = vmatmul.mubr.msk.f32.vlgmr.msra.gmra.mrb[16].mxu0 %vm188_vm8, %v5503_v31 }
 0xde4   :  { %v1893_v61 = vpop.xlane.xlu0 %1892 }
 0xde5   :  { %v1897_v4 = vmul.f32 0.03125, %v1893_v61  ;;  %v1890_v63 = vpop.xlane.xlu1 %1889 }
 0xde6   :  { %v1896_v1 = vmul.f32 0.03125, %v1890_v63 }
 0xde7   :  { %v1901_v59 = vsub.f32 %v1879_v50, %v1897_v4 }
 0xde8   :  { %v1900_v39 = vsub.f32 %v1878_v10, %v1896_v1 }
 0xde9   :  { %v1905_v21 = vmul.f32 %v1901_v59, %v1901_v59 }
 0xdea   :  { %v1904_v7 = vmul.f32 %v1900_v39, %v1900_v39 }
 0xdeb   :  { %v1915_v43 = vsel %vm188_vm8, %v1905_v21, 0.0 }
 0xdec   :  { %1916 = vadd.xlane.f32.xlu0 %v1915_v43  ;;  %v1912_v5 = vsel %vm188_vm8, %v1904_v7, 0.0 }
 0xded   :  { %1913 = vadd.xlane.f32.xlu1 %v1912_v5 }
 0xe79   :  { %v1917_v8 = vpop.xlane.xlu0 %1916 }
 0xe7a   :  { %v1921_v13 = vmul.f32 0.03125, %v1917_v8  ;;  %v1914_v15 = vpop.xlane.xlu1 %1913 }
 0xe7b   :  { %v1920_v18 = vmul.f32 0.03125, %v1914_v15 }
 0xe7c   :  { %v1925_v24 = vadd.f32 1e-05, %v1921_v13 }
 0xe7d   :  { %v1924_v26 = vadd.f32 1e-05, %v1920_v18 }
 0xe7e   :  { %4593 = vrsqrt.f32 %v1925_v24 }
 0xe7f   :  { %4595 = vrsqrt.f32 %v1924_v26 }
 0xe88   :  { %v4594_v37 = vpop.eup %4593 }
 0xe89   :  { %v4596_v38 = vpop.eup %4595  ;;  %v1933_v41 = vmul.f32 %v4594_v37, %v1901_v59 }
 0xe8a   :  { %v1932_v16 = vmul.f32 %v4596_v38, %v1900_v39 }
 0xe8b   :  { %v1941_v25 = vmul.f32 %v3780_v46, %v1933_v41 }
 0xe8c   :  { %v1940_v51 = vmul.f32 %v3780_v46, %v1932_v16 }
 0xe8d   :  { %v5513_v30 = vadd.f32 %v3781_v28, %v1941_v25 }
 0xe8e   :  { %v5511_v44 = vadd.f32 %v3781_v28, %v1940_v51 }
 0xe90   :  { %4129 = vmatprep.mubr.msk.f32.mxu0 %vm188_vm8, %v5511_v44 }
 0xe91   :  { %4130 = vmatmul.mubr.msk.f32.gmra.mrb[18].mxu0 %vm188_vm8, %v5513_v30 }
 0xe96   :  { %v4128_v47 = vpop.f32.mrb[16].mxu0 }
 0xe97   :  { %v2047_v14 = vadd.f32 %v4128_v47, %v5522_v12  ;;  %v2041_v42 = vpop.f32.mrb[17].mxu0 }
 0xe98   :  { %v2042_v60 = vadd.f32 %v5522_v12, %v2041_v42 }
 0xe9a   :  { %4136 = vmatprep.mubr.msk.f32.mxu0 %vm188_vm8, %v2042_v60  ;;  %v4463_v29 = vpack.i.bf16 %v2047_v14, %v2042_v60 }
 0xe9c   :  { %4464 = vrot.lane.b32.xlu1 %v4463_v29, %s4698_s30 }
 0xea0   :  { %4469 = vrot.lane.b32.xlu1 %v4463_v29, %s4699_s1 }
 0xf0e   :  { %v4465_v3 = vpop.permute.xlu1 %4464 }
 0xf0f   :  { %v4467_v56 = vunpack.i.h.bf16 %v4465_v3  ;;  %v4466_v17 = vunpack.i.l.bf16 %v4465_v3 }
 0xf11   :  { %v4348_v36 = vpack.c.bf16 %v4467_v56, %v4466_v17 }
 0xf12   :  { %v4470_v35 = vpop.permute.xlu1 %4469 }
 0xf13   :  { %v4472_v55 = vunpack.i.h.bf16 %v4470_v35  ;;  %v4471_v45 = vunpack.i.l.bf16 %v4470_v35  ;;  %4350 = vmatprep.subr.msk.bf16.mxu0 %vm4887_vm9, %v4348_v36 }
 0xf14   :  { %4353 = vmatpush3.bf16.xpose.msk.msra.mxu0 %vm4887_vm9, %v4348_v36 }
 0xf15   :  { %v4354_v9 = vpack.c.bf16 %v4472_v55, %v4471_v45 }
 0xf17   :  { %4355 = vmatprep.subr.bf16.mxu0 %v4354_v9 }
 0xf1b   :  { %4137 = vmatmul.mubr.msk.f32.vlgmr.msra.gmra.mrb[20].mxu0 %vm188_vm8, %v2047_v14 }
 0xf1c   :  { %4357 = vmatpush3.bf16.msra.mxu0 %v4354_v9 }
 0xf64   :  { %v5534_v11 = vpop.f32.mrb[18].mxu0 }
 0xf65   :  { %v5536_v2 = vpop.f32.mrb[19].mxu0 }
 0xfee   :  { %v4138_v49 = vpop.f32.mrb[20].mxu0 }
 0xfef   :  { %v2140_v52 = vpop.f32.mrb[21].mxu0  ;;  %v2150_v50 = vmul.f32 0.17677669, %v4138_v49 }
 0xff0   :  { %v2149_v0 = vmul.f32 0.17677669, %v2140_v52 }
 0xff1   :  { %v2160_v20 = vrot.slane %v2150_v50, 1  ;;  %v2161_v28 = vrot.slane %v2150_v50, 2  ;;  %v2162_v4 = vrot.slane %v2150_v50, 3  ;;  %v2163_v39 = vrot.slane %v2150_v50, 4 }
 0xff2   :  { %v2153_v10 = vrot.slane %v2149_v0, 1  ;;  %v2154_v58 = vrot.slane %v2149_v0, 2  ;;  %v2155_v54 = vrot.slane %v2149_v0, 3  ;;  %v2156_v62 = vrot.slane %v2149_v0, 4 }
 0xff3   :  { %v2157_v22 = vrot.slane %v2149_v0, 5  ;;  %v2158_v34 = vrot.slane %v2149_v0, 6  ;;  %v2159_v48 = vrot.slane %v2149_v0, 7  ;;  %v2183_v23 = vsel %vm258_vm10, %v2149_v0, -1e+09 }
 0xff4   :  { %v5540_v32 = vsel %vm258_vm10, %v2153_v10, -1e+09  ;;  %v5544_v19 = vsel %vm258_vm10, %v2154_v58, -1e+09  ;;  %v5548_v46 = vsel %vm258_vm10, %v2155_v54, -1e+09 }
 0xff5   :  { %v5552_v53 = vsel %vm258_vm10, %v2156_v62, -1e+09  ;;  %v5556_v6 = vsel %vm258_vm10, %v2157_v22, -1e+09  ;;  %v2215_v33 = vrot.slane %v5540_v32, 7  ;;  %v2217_v61 = vrot.slane %v5544_v19, 6 }
 0xff6   :  { %v5564_v63 = vsel %vm258_vm10, %v2158_v34, -1e+09  ;;  %v5568_v1 = vsel %vm258_vm10, %v2159_v48, -1e+09  ;;  %v2219_v59 = vrot.slane %v5548_v46, 5  ;;  %v2221_v7 = vrot.slane %v5552_v53, 4 }
 0xff7   :  { %v2216_v21 = vsel %vm595_vm11, %v2215_v33, %v2183_v23  ;;  %v2223_v43 = vrot.slane %v5556_v6, 3  ;;  %v2164_v5 = vrot.slane %v2150_v50, 5  ;;  %v2165_v13 = vrot.slane %v2150_v50, 6 }
 0xff8   :  { %v2218_v8 = vsel %vm598_vm12, %v2217_v61, %v2216_v21  ;;  %v5577_v15 = vsel %vm258_vm10, %v2160_v20, -1e+09  ;;  %v5581_v18 = vsel %vm258_vm10, %v2161_v28, -1e+09  ;;  %v2225_v26 = vrot.slane %v5564_v63, 2 }
 0xff9   :  { %v2220_v24 = vsel %vm601_vm13, %v2219_v59, %v2218_v8  ;;  %v2166_v37 = vrot.slane %v2150_v50, 7  ;;  %v5587_v38 = vsel %vm258_vm10, %v2162_v4, -1e+09  ;;  %v2227_v16 = vrot.slane %v5568_v1, 1 }
 0xffa   :  { %v2222_v41 = vsel %vm604_vm14, %v2221_v7, %v2220_v24  ;;  %v2195_v25 = vsel %vm258_vm10, %v2163_v39, -1e+09  ;;  %v2229_v51 = vrot.slane %v5577_v15, 7  ;;  %v2191_v14 = vsel %vm258_vm10, %v2150_v50, -1e+09 }
 0xffb   :  { %v2224_v47 = vsel %vm607_vm15, %v2223_v43, %v2222_v41  ;;  %v5599_v42 = vsel %vm258_vm10, %v2164_v5, -1e+09  ;;  %v2231_v60 = vrot.slane %v5581_v18, 6  ;;  %v5605_v3 = vsel %vm258_vm10, %v2165_v13, -1e+09 }
 0xffc   :  { %v2226_v29 = vsel %vm610_vm0, %v2225_v26, %v2224_v47  ;;  %v2230_v56 = vsel %vm595_vm11, %v2229_v51, %v2191_v14  ;;  %v2233_v17 = vrot.slane %v5587_v38, 5  ;;  %v5612_v35 = vsel %vm258_vm10, %v2166_v37, -1e+09 }
 0xffd   :  { %v2228_v36 = vsel %vm613_vm1, %v2227_v16, %v2226_v29  ;;  %v2232_v55 = vsel %vm598_vm12, %v2231_v60, %v2230_v56  ;;  %v2235_v45 = vrot.slane %v2195_v25, 4  ;;  %v2237_v52 = vrot.slane %v5599_v42, 3 }
 0xffe   :  { %v2245_v9 = vsel %vm631_vm2, %v2228_v36, -inf  ;;  %v2234_v49 = vsel %vm601_vm13, %v2233_v17, %v2232_v55  ;;  %v2239_v50 = vrot.slane %v5605_v3, 2  ;;  %v2241_v58 = vrot.slane %v5612_v35, 1 }
 0xfff   :  { %2246 = vmax.xlane.f32.xlu0 %v2245_v9  ;;  %v2236_v0 = vsel %vm604_vm14, %v2235_v45, %v2234_v49 }
0x1000   :  { %v2238_v10 = vsel %vm607_vm15, %v2237_v52, %v2236_v0 }
0x1001   :  { %v2240_v54 = vsel %vm610_vm0, %v2239_v50, %v2238_v10 }
0x1002   :  { %v2242_v62 = vsel %vm613_vm1, %v2241_v58, %v2240_v54 }
0x1003   :  { %v2248_v22 = vsel %vm631_vm2, %v2242_v62, -inf }
0x1004   :  { %2249 = vmax.xlane.f32.xlu0 %v2248_v22 }
0x108c   :  { %v2247_v34 = vpop.xlane.xlu0 %2246 }
0x108d   :  { %v2253_v48 = vrot.slane %v2247_v34, 1  ;;  %v2254_v20 = vrot.slane %v2247_v34, 2  ;;  %v2255_v28 = vrot.slane %v2247_v34, 3  ;;  %v2256_v33 = vrot.slane %v2247_v34, 4 }
0x108e   :  { %v2257_v61 = vrot.slane %v2247_v34, 5  ;;  %v2258_v4 = vrot.slane %v2247_v34, 6  ;;  %v2283_v59 = vsub.f32 %v2183_v23, %v2247_v34  ;;  %v2259_v5 = vrot.slane %v2247_v34, 7 }
0x108f   :  { %v2284_v39 = vsub.f32 %v5540_v32, %v2253_v48  ;;  %v2285_v21 = vsub.f32 %v5544_v19, %v2254_v20  ;;  %v2286_v7 = vsub.f32 %v5548_v46, %v2255_v28  ;;  %v2287_v43 = vsub.f32 %v5552_v53, %v2256_v33 }
0x1090   :  { %v2299_v8 = vmul.f32 1.442695, %v2283_v59  ;;  %v2288_v13 = vsub.f32 %v5556_v6, %v2257_v61  ;;  %v2289_v23 = vsub.f32 %v5564_v63, %v2258_v4  ;;  %v2290_v63 = vsub.f32 %v5568_v1, %v2259_v5 }
0x1091   :  { %v2301_v24 = vmul.f32 1.442695, %v2284_v39  ;;  %v2303_v26 = vmul.f32 1.442695, %v2285_v21  ;;  %v2305_v37 = vmul.f32 1.442695, %v2286_v7  ;;  %v2250_v41 = vpop.xlane.xlu0 %2249 }
0x1092   :  { %4597 = vpow2.f32 %v2299_v8  ;;  %v2260_v16 = vrot.slane %v2250_v41, 1  ;;  %v2261_v51 = vrot.slane %v2250_v41, 2  ;;  %v2307_v32 = vmul.f32 1.442695, %v2287_v43 }
0x1093   :  { %4599 = vpow2.f32 %v2301_v24  ;;  %v2262_v19 = vrot.slane %v2250_v41, 3  ;;  %v2263_v47 = vrot.slane %v2250_v41, 4  ;;  %v2264_v46 = vrot.slane %v2250_v41, 5 }
0x1094   :  { %4601 = vpow2.f32 %v2303_v26  ;;  %v2265_v53 = vrot.slane %v2250_v41, 6  ;;  %v2291_v60 = vsub.f32 %v2191_v14, %v2250_v41  ;;  %v2292_v6 = vsub.f32 %v5577_v15, %v2260_v16 }
0x1095   :  { %4603 = vpow2.f32 %v2305_v37  ;;  %v2293_v29 = vsub.f32 %v5581_v18, %v2261_v51  ;;  %v2294_v56 = vsub.f32 %v5587_v38, %v2262_v19  ;;  %v2266_v17 = vrot.slane %v2250_v41, 7 }
0x1096   :  { %v2295_v36 = vsub.f32 %v2195_v25, %v2263_v47  ;;  %v2315_v55 = vmul.f32 1.442695, %v2291_v60  ;;  %4605 = vpow2.f32 %v2307_v32  ;;  %v2317_v45 = vmul.f32 1.442695, %v2292_v6 }
0x1097   :  { %v2319_v9 = vmul.f32 1.442695, %v2293_v29  ;;  %v2321_v49 = vmul.f32 1.442695, %v2294_v56  ;;  %v2296_v52 = vsub.f32 %v5599_v42, %v2264_v46  ;;  %v2309_v0 = vmul.f32 1.442695, %v2288_v13 }
0x1098   :  { %4607 = vpow2.f32 %v2315_v55  ;;  %v2323_v14 = vmul.f32 1.442695, %v2295_v36  ;;  %v2297_v15 = vsub.f32 %v5605_v3, %v2265_v53  ;;  %v2311_v18 = vmul.f32 1.442695, %v2289_v23 }
0x1099   :  { %4609 = vpow2.f32 %v2317_v45  ;;  %v2298_v38 = vsub.f32 %v5612_v35, %v2266_v17  ;;  %v2313_v25 = vmul.f32 1.442695, %v2290_v63  ;;  %v2325_v1 = vmul.f32 1.442695, %v2296_v52 }
0x109a   :  { %4611 = vpow2.f32 %v2319_v9  ;;  %v2327_v42 = vmul.f32 1.442695, %v2297_v15 }
0x109b   :  { %4613 = vpow2.f32 %v2321_v49  ;;  %v2329_v3 = vmul.f32 1.442695, %v2298_v38  ;;  %v3807_v38 = vld [vmem:[%s6166_s7 + $0x38] sm:$0xff] }
0x109c   :  { %v5638_v50 = vpop.eup %4597  ;;  %4615 = vpow2.f32 %v2323_v14  ;;  %v5698_v14 = vadd.f32 %v5534_v11, %v5522_v12  ;;  %v3805_v11 = vld [vmem:[%s6166_s7 + $0x28] sm:$0xff] }
0x109d   :  { %v5640_v10 = vpop.eup %4599  ;;  %4617 = vpow2.f32 %v2309_v0  ;;  %v5702_v0 = vadd.f32 %v5522_v12, %v5536_v2  ;;  %v3806_v12 = vld [vmem:[%s6166_s7 + $0x30] sm:$0xff] }
0x109e   :  { %v5642_v58 = vpop.eup %4601  ;;  %4619 = vpow2.f32 %v2311_v18  ;;  %v2347_v54 = vrot.slane %v5640_v10, 7  ;;  %v3804_v18 = vld [vmem:[%s6166_s7 + $0x20] sm:$0xff] }
0x109f   :  { %v5645_v62 = vpop.eup %4603  ;;  %4621 = vpow2.f32 %v2313_v25  ;;  %v2349_v35 = vrot.slane %v5642_v58, 6  ;;  %v5706_v15 = vpack.i.bf16 %v5698_v14, %v5702_v0  ;;  %v4368_v2 = vpack.c.bf16 %v3805_v11, %v3804_v18 }
0x10a0   :  { %v2348_v22 = vsel %vm595_vm11, %v2347_v54, %v5638_v50  ;;  %4623 = vpow2.f32 %v2325_v1  ;;  %v5650_v34 = vpop.eup %4605  ;;  %v2351_v28 = vrot.slane %v5645_v62, 5  ;;  %v4372_v25 = vpack.c.bf16 %v3807_v38, %v3806_v12 }
0x10a1   :  { %v2350_v48 = vsel %vm598_vm12, %v2349_v35, %v2348_v22  ;;  %4625 = vpow2.f32 %v2327_v42  ;;  %v2353_v21 = vrot.slane %v5650_v34, 4  ;;  %4369 = vmatprep.subr.bf16.mxu1 %v4368_v2 }
0x10a2   :  { %v5653_v20 = vpop.eup %4607  ;;  %4627 = vpow2.f32 %v2329_v3  ;;  %v2352_v4 = vsel %vm601_vm13, %v2351_v28, %v2350_v48  ;;  %4371 = vmatpush3.bf16.msra.mxu1 %v4368_v2 }
0x10a3   :  { %v5656_v33 = vpop.eup %4609  ;;  %v2354_v24 = vsel %vm604_vm14, %v2353_v21, %v2352_v4  ;;  %4373 = vmatprep.subr.bf16.mxu1 %v4372_v25 }
0x10a4   :  { %v5658_v61 = vpop.eup %4611  ;;  %v2361_v59 = vrot.slane %v5656_v33, 7 }
0x10a5   :  { %v5662_v39 = vpop.eup %4613  ;;  %v2363_v7 = vrot.slane %v5658_v61, 6 }
0x10a6   :  { %v5666_v43 = vpop.eup %4615  ;;  %v2362_v5 = vsel %vm595_vm11, %v2361_v59, %v5653_v20  ;;  %v2365_v8 = vrot.slane %v5662_v39, 5  ;;  %4375 = vmatpush3.bf16.msra.mxu1 %v4372_v25 }
0x10a7   :  { %v5671_v13 = vpop.eup %4617  ;;  %v2364_v26 = vsel %vm598_vm12, %v2363_v7, %v2362_v5  ;;  %v2367_v51 = vrot.slane %v5666_v43, 4 }
0x10a8   :  { %v4620_v37 = vpop.eup %4619  ;;  %v2355_v41 = vrot.slane %v5671_v13, 3  ;;  %v2366_v16 = vsel %vm601_vm13, %v2365_v8, %v2364_v26 }
0x10a9   :  { %v4622_v23 = vpop.eup %4621  ;;  %v2357_v32 = vrot.slane %v4620_v37, 2  ;;  %v2368_v53 = vsel %vm604_vm14, %v2367_v51, %v2366_v16 }
0x10aa   :  { %v5678_v19 = vpop.eup %4623  ;;  %v2356_v47 = vsel %vm607_vm15, %v2355_v41, %v2354_v24  ;;  %v2359_v46 = vrot.slane %v4622_v23, 1 }
0x10ab   :  { %v5682_v60 = vpop.eup %4625  ;;  %v2358_v6 = vsel %vm610_vm0, %v2357_v32, %v2356_v47  ;;  %v2369_v29 = vrot.slane %v5678_v19, 3 }
0x10ac   :  { %v5686_v56 = vpop.eup %4627  ;;  %v2360_v17 = vsel %vm613_vm1, %v2359_v46, %v2358_v6  ;;  %v2371_v36 = vrot.slane %v5682_v60, 2 }
0x10ad   :  { %v2377_v55 = vsel %vm631_vm2, %v2360_v17, 0.0  ;;  %v2370_v63 = vsel %vm607_vm15, %v2369_v29, %v2368_v53  ;;  %v2373_v45 = vrot.slane %v5686_v56, 1 }
0x10ae   :  { %2378 = vadd.xlane.f32.xlu0 %v2377_v55  ;;  %v2372_v9 = vsel %vm610_vm0, %v2371_v36, %v2370_v63 }
0x10af   :  { %v2374_v49 = vsel %vm613_vm1, %v2373_v45, %v2372_v9 }
0x10b0   :  { %v2380_v52 = vsel %vm631_vm2, %v2374_v49, 0.0 }
0x10b2   :  { %2381 = vadd.xlane.f32.xlu0 %v2380_v52 }
0x10c8   :  { %4474 = vrot.lane.b32.xlu0 %v5706_v15, %s4698_s30 }
0x113b   :  { %v2379_v1 = vpop.xlane.xlu0 %2378 }
0x113c   :  { %4629 = vrcp.f32 %v2379_v1 }
0x113f   :  { %v2382_v42 = vpop.xlane.xlu0 %2381 }
0x1140   :  { %4631 = vrcp.f32 %v2382_v42 }
0x1143   :  { %v4475_v54 = vpop.permute.xlu0 %4474 }
0x1144   :  { %v4477_v3 = vunpack.i.h.bf16 %v4475_v54  ;;  %v4476_v35 = vunpack.i.l.bf16 %v4475_v54 }
0x1146   :  { %v4630_v22 = vpop.eup %4629  ;;  %v5722_v48 = vpack.c.bf16 %v4477_v3, %v4476_v35 }
0x1147   :  { %v2387_v28 = vrot.slane %v4630_v22, 1  ;;  %v2388_v4 = vrot.slane %v4630_v22, 2  ;;  %v2389_v59 = vrot.slane %v4630_v22, 3  ;;  %v2390_v21 = vrot.slane %v4630_v22, 4 }
0x1148   :  { %4360 = vmatprep.subr.msk.bf16.mxu0 %vm4887_vm9, %v5722_v48  ;;  %v2391_v7 = vrot.slane %v4630_v22, 5  ;;  %v2392_v5 = vrot.slane %v4630_v22, 6  ;;  %v2393_v8 = vrot.slane %v4630_v22, 7  ;;  %v2417_v46 = vmul.f32 %v4630_v22, %v5638_v50 }
0x1149   :  { %v2418_v24 = vmul.f32 %v5640_v10, %v2387_v28  ;;  %v2419_v26 = vmul.f32 %v5642_v58, %v2388_v4  ;;  %v2420_v41 = vmul.f32 %v5645_v62, %v2389_v59  ;;  %v2421_v16 = vmul.f32 %v5650_v34, %v2390_v21 }
0x114a   :  { %v4632_v51 = vpop.eup %4631  ;;  %v2422_v32 = vmul.f32 %v5671_v13, %v2391_v7  ;;  %v2423_v47 = vmul.f32 %v4620_v37, %v2392_v5  ;;  %v2424_v53 = vmul.f32 %v4622_v23, %v2393_v8 }
0x114b   :  { %v2449_v6 = vrot.slane %v2418_v24, 7  ;;  %v2451_v29 = vrot.slane %v2419_v26, 6  ;;  %v2453_v17 = vrot.slane %v2420_v41, 5  ;;  %v2455_v36 = vrot.slane %v2421_v16, 4 }
0x114c   :  { %v2457_v55 = vrot.slane %v2422_v32, 3  ;;  %v2394_v63 = vrot.slane %v4632_v51, 1  ;;  %v2395_v58 = vrot.slane %v4632_v51, 2  ;;  %v2396_v45 = vrot.slane %v4632_v51, 3 }
0x114d   :  { %v2450_v10 = vsel %vm595_vm11, %v2449_v6, %v2417_v46  ;;  %v2397_v62 = vrot.slane %v4632_v51, 4  ;;  %v2459_v9 = vrot.slane %v2423_v47, 2  ;;  %v2398_v49 = vrot.slane %v4632_v51, 5 }
0x114e   :  { %v2452_v34 = vsel %vm598_vm12, %v2451_v29, %v2450_v10  ;;  %v2399_v13 = vrot.slane %v4632_v51, 6  ;;  %v2400_v50 = vrot.slane %v4632_v51, 7  ;;  %v2426_v23 = vmul.f32 %v5656_v33, %v2394_v63 }
0x114f   :  { %v2454_v37 = vsel %vm601_vm13, %v2453_v17, %v2452_v34  ;;  %v2427_v52 = vmul.f32 %v5658_v61, %v2395_v58  ;;  %v2461_v11 = vrot.slane %v2424_v53, 1  ;;  %v2428_v12 = vmul.f32 %v5662_v39, %v2396_v45 }
0x1150   :  { %v2456_v18 = vsel %vm604_vm14, %v2455_v36, %v2454_v37  ;;  %v2429_v2 = vmul.f32 %v5666_v43, %v2397_v62  ;;  %v2425_v25 = vmul.f32 %v4632_v51, %v5653_v20  ;;  %v2430_v1 = vmul.f32 %v5678_v19, %v2398_v49 }
0x1151   :  { %v2458_v38 = vsel %vm607_vm15, %v2457_v55, %v2456_v18  ;;  %v2463_v42 = vrot.slane %v2426_v23, 7  ;;  %v2431_v33 = vmul.f32 %v5682_v60, %v2399_v13  ;;  %v2465_v3 = vrot.slane %v2427_v52, 6 }
0x1152   :  { %v2460_v54 = vsel %vm610_vm0, %v2459_v9, %v2458_v38  ;;  %v2432_v35 = vmul.f32 %v5686_v56, %v2400_v50  ;;  %v2467_v22 = vrot.slane %v2428_v12, 5  ;;  %v2469_v20 = vrot.slane %v2429_v2, 4 }
0x1153   :  { %v2462_v61 = vsel %vm613_vm1, %v2461_v11, %v2460_v54  ;;  %v2464_v39 = vsel %vm595_vm11, %v2463_v42, %v2425_v25  ;;  %v2471_v28 = vrot.slane %v2430_v1, 3  ;;  %v2473_v59 = vrot.slane %v2431_v33, 2 }
0x1154   :  { %4143 = vmatprep.mubr.msk.f32.mxu0 %vm631_vm2, %v2462_v61  ;;  %v2466_v43 = vsel %vm598_vm12, %v2465_v3, %v2464_v39  ;;  %v2475_v21 = vrot.slane %v2432_v35, 1 }
0x1155   :  { %v2468_v19 = vsel %vm601_vm13, %v2467_v22, %v2466_v43 }
0x1156   :  { %v2470_v4 = vsel %vm604_vm14, %v2469_v20, %v2468_v19 }
0x1157   :  { %v2472_v60 = vsel %vm607_vm15, %v2471_v28, %v2470_v4 }
0x1158   :  { %v2474_v7 = vsel %vm610_vm0, %v2473_v59, %v2472_v60 }
0x1159   :  { %v2476_v56 = vsel %vm613_vm1, %v2475_v21, %v2474_v7 }
0x115a   :  { %4144 = vmatmul.mubr.msk.f32.vlgmr.msra.gmra.mrb[22].mxu0 %vm631_vm2, %v2476_v56 }
0x115b   :  { %4363 = vmatpush3.bf16.xpose.msk.msra.mxu0 %vm4887_vm9, %v5722_v48  ;;  %4150 = vmatprep.mubr.msk.f32.mxu0 %vm188_vm8, %v5702_v0 }
0x1162   :  { %4151 = vmatmul.mubr.msk.f32.vlgmr.msra.gmra.mrb[24].mxu0 %vm188_vm8, %v5698_v14 }
0x122d   :  { %v4145_v5 = vpop.f32.mrb[22].mxu0 }
0x122e   :  { %v2553_v8 = vpop.f32.mrb[23].mxu0 }
0x122f   :  { %4168 = vmatprep.mubr.msk.f32.mxu1 %vm188_vm8, %v2553_v8 }
0x1230   :  { %4169 = vmatmul.mubr.msk.f32.vlgmr.msra.gmra.mrb[12].mxu1 %vm188_vm8, %v4145_v5 }
0x1235   :  { %v4152_v24 = vpop.f32.mrb[24].mxu0 }
0x1236   :  { %v2652_v26 = vmul.f32 0.17677669, %v4152_v24  ;;  %v2642_v41 = vpop.f32.mrb[25].mxu0 }
0x1237   :  { %v2651_v16 = vmul.f32 0.17677669, %v2642_v41 }
0x1238   :  { %v2662_v51 = vrot.slane %v2652_v26, 7  ;;  %v2663_v53 = vrot.slane %v2652_v26, 1  ;;  %v2664_v36 = vrot.slane %v2652_v26, 2  ;;  %v2665_v49 = vrot.slane %v2652_v26, 3 }
0x1239   :  { %v2655_v32 = vrot.slane %v2651_v16, 7  ;;  %v2656_v40 = vrot.slane %v2651_v16, 1  ;;  %v2657_v48 = vrot.slane %v2651_v16, 2  ;;  %v2658_v47 = vrot.slane %v2651_v16, 3 }
0x123a   :  { %v2659_v46 = vrot.slane %v2651_v16, 4  ;;  %v2660_v0 = vrot.slane %v2651_v16, 5  ;;  %v5768_v14 = vsel %vm258_vm10, %v2651_v16, -1e+09  ;;  %v2661_v17 = vrot.slane %v2651_v16, 6 }
0x123b   :  { %v5772_v6 = vsel %vm258_vm10, %v2656_v40, -1e+09  ;;  %v5776_v29 = vsel %vm258_vm10, %v2657_v48, -1e+09  ;;  %v5780_v55 = vsel %vm258_vm10, %v2655_v32, -1e+09 }
0x123c   :  { %v2689_v63 = vsel %vm258_vm10, %v2658_v47, -1e+09  ;;  %v2690_v10 = vsel %vm258_vm10, %v2659_v46, -1e+09  ;;  %v5788_v58 = vsel %vm258_vm10, %v2660_v0, -1e+09 }
0x123d   :  { %v2717_v45 = vrot.slane %v5768_v14, 7  ;;  %v2719_v62 = vrot.slane %v5772_v6, 6  ;;  %v2721_v34 = vrot.slane %v5776_v29, 5  ;;  %v2723_v9 = vrot.slane %v2689_v63, 4 }
0x123e   :  { %v2666_v13 = vrot.slane %v2652_v26, 4  ;;  %v2667_v50 = vrot.slane %v2652_v26, 5  ;;  %v5797_v23 = vsel %vm258_vm10, %v2661_v17, -1e+09  ;;  %v5801_v52 = vsel %vm258_vm10, %v2652_v26, -1e+09 }
0x123f   :  { %v2718_v37 = vsel %vm598_vm12, %v2717_v45, %v5780_v55  ;;  %v2725_v11 = vrot.slane %v2690_v10, 3  ;;  %v2727_v12 = vrot.slane %v5788_v58, 2  ;;  %v5807_v2 = vsel %vm258_vm10, %v2663_v53, -1e+09 }
0x1240   :  { %v2720_v18 = vsel %vm601_vm13, %v2719_v62, %v2718_v37  ;;  %v5812_v25 = vsel %vm258_vm10, %v2662_v51, -1e+09  ;;  %v5816_v1 = vsel %vm258_vm10, %v2664_v36, -1e+09  ;;  %v2729_v42 = vrot.slane %v5797_v23, 1 }
0x1241   :  { %v2722_v38 = vsel %vm604_vm14, %v2721_v34, %v2720_v18  ;;  %v5822_v33 = vsel %vm258_vm10, %v2665_v49, -1e+09  ;;  %v5826_v3 = vsel %vm258_vm10, %v2666_v13, -1e+09  ;;  %v2731_v61 = vrot.slane %v5801_v52, 7 }
0x1242   :  { %v2724_v54 = vsel %vm607_vm15, %v2723_v9, %v2722_v38  ;;  %v5832_v39 = vsel %vm258_vm10, %v2667_v50, -1e+09  ;;  %v2730_v22 = vsel %vm595_vm11, %v5812_v25, %v2729_v42  ;;  %v2733_v43 = vrot.slane %v5807_v2, 6 }
0x1243   :  { %v2726_v35 = vsel %vm610_vm0, %v2725_v11, %v2724_v54  ;;  %v2732_v19 = vsel %vm598_vm12, %v2731_v61, %v2730_v22  ;;  %v2735_v28 = vrot.slane %v5816_v1, 5  ;;  %v2668_v4 = vrot.slane %v2652_v26, 6 }
0x1244   :  { %v2728_v20 = vsel %vm613_vm1, %v2727_v12, %v2726_v35  ;;  %v2734_v60 = vsel %vm601_vm13, %v2733_v43, %v2732_v19  ;;  %v2737_v21 = vrot.slane %v5822_v33, 4  ;;  %v2739_v56 = vrot.slane %v5826_v3, 3 }
0x1245   :  { %v2747_v59 = vsel %vm1134_vm3, %v2728_v20, -inf  ;;  %v2736_v7 = vsel %vm604_vm14, %v2735_v28, %v2734_v60  ;;  %v5847_v5 = vsel %vm258_vm10, %v2668_v4, -1e+09  ;;  %v2741_v24 = vrot.slane %v5832_v39, 2 }
0x1246   :  { %2748 = vmax.xlane.f32.xlu1 %v2747_v59  ;;  %v2738_v8 = vsel %vm607_vm15, %v2737_v21, %v2736_v7  ;;  %v2743_v26 = vrot.slane %v5847_v5, 1 }
0x1247   :  { %v2740_v41 = vsel %vm610_vm0, %v2739_v56, %v2738_v8 }
0x1248   :  { %v2742_v16 = vsel %vm613_vm1, %v2741_v24, %v2740_v41  ;;  %v2753_v51 = vsel %vm1141_vm4, %v2743_v26, -inf }
0x1249   :  { %v2750_v32 = vsel %vm631_vm2, %v2742_v16, -inf }
0x124a   :  { %2754 = vmax.xlane.f32.xlu1 %v2753_v51  ;;  %2751 = vmax.xlane.f32.xlu0 %v2750_v32 }
0x1260   :  { %4479 = vrot.lane.b32.xlu0 %v5706_v15, %s4699_s1 }
0x12d3   :  { %v2749_v27 = vpop.xlane.xlu1 %2748 }
0x12d4   :  { %v2759_v40 = vrot.slane %v2749_v27, 1  ;;  %v2760_v48 = vrot.slane %v2749_v27, 2  ;;  %v2761_v47 = vrot.slane %v2749_v27, 3  ;;  %v2762_v46 = vrot.slane %v2749_v27, 4 }
0x12d5   :  { %v2763_v0 = vrot.slane %v2749_v27, 5  ;;  %v2764_v53 = vrot.slane %v2749_v27, 6  ;;  %v2789_v17 = vsub.f32 %v5780_v55, %v2749_v27 }
0x12d6   :  { %v2790_v36 = vsub.f32 %v5768_v14, %v2759_v40  ;;  %v2791_v45 = vsub.f32 %v5772_v6, %v2760_v48  ;;  %v2792_v62 = vsub.f32 %v5776_v29, %v2761_v47  ;;  %v2793_v34 = vsub.f32 %v2689_v63, %v2762_v46 }
0x12d7   :  { %v2794_v9 = vsub.f32 %v2690_v10, %v2763_v0  ;;  %v2805_v49 = vmul.f32 1.442695, %v2789_v17  ;;  %v2752_v50 = vpop.xlane.xlu0 %2751  ;;  %v2795_v18 = vsub.f32 %v5788_v58, %v2764_v53  ;;  %v2755_v61 = vpop.xlane.xlu1 %2754 }
0x12d8   :  { %v2807_v13 = vmul.f32 1.442695, %v2790_v36  ;;  %v2809_v15 = vmul.f32 1.442695, %v2791_v45  ;;  %v2811_v37 = vmul.f32 1.442695, %v2792_v62  ;;  %v2797_v10 = vsub.f32 %v5812_v25, %v2752_v50 }
0x12d9   :  { %4633 = vpow2.f32 %v2805_v49  ;;  %v2813_v11 = vmul.f32 1.442695, %v2793_v34  ;;  %v2765_v12 = vrot.slane %v2752_v50, 7  ;;  %v2766_v55 = vrot.slane %v2752_v50, 1 }
0x12da   :  { %4635 = vpow2.f32 %v2807_v13  ;;  %v2767_v38 = vrot.slane %v2752_v50, 2  ;;  %v2768_v14 = vrot.slane %v2752_v50, 3  ;;  %v2815_v6 = vmul.f32 1.442695, %v2794_v9 }
0x12db   :  { %4637 = vpow2.f32 %v2809_v15  ;;  %v2769_v42 = vrot.slane %v2752_v50, 4  ;;  %v2770_v29 = vrot.slane %v2752_v50, 5  ;;  %v2796_v63 = vsub.f32 %v5797_v23, %v2765_v12  ;;  %v4480_v58 = vpop.permute.xlu0 %4479 }
0x12dc   :  { %4639 = vpow2.f32 %v2811_v37  ;;  %v2798_v54 = vsub.f32 %v5801_v52, %v2766_v55  ;;  %v2771_v35 = vrot.slane %v2752_v50, 6  ;;  %v2799_v22 = vsub.f32 %v5807_v2, %v2767_v38 }
0x12dd   :  { %4641 = vpow2.f32 %v2813_v11  ;;  %v2800_v43 = vsub.f32 %v5816_v1, %v2768_v14  ;;  %v2801_v20 = vsub.f32 %v5822_v33, %v2769_v42  ;;  %v2819_v19 = vmul.f32 1.442695, %v2796_v63 }
0x12de   :  { %v2821_v28 = vmul.f32 1.442695, %v2797_v10  ;;  %v2823_v4 = vmul.f32 1.442695, %v2798_v54  ;;  %4643 = vpow2.f32 %v2815_v6  ;;  %v2825_v59 = vmul.f32 1.442695, %v2799_v22 }
0x12df   :  { %v2772_v23 = vrot.slane %v2755_v61, 7  ;;  %v4482_v60 = vunpack.i.h.bf16 %v4480_v58  ;;  %4645 = vpow2.f32 %v2819_v19  ;;  %v2827_v25 = vmul.f32 1.442695, %v2800_v43 }
0x12e0   :  { %v4481_v52 = vunpack.i.l.bf16 %v4480_v58  ;;  %v2802_v21 = vsub.f32 %v5826_v3, %v2770_v29  ;;  %4647 = vpow2.f32 %v2821_v28  ;;  %v2803_v7 = vsub.f32 %v5832_v39, %v2771_v35 }
0x12e1   :  { %4649 = vpow2.f32 %v2823_v4  ;;  %v2817_v1 = vmul.f32 1.442695, %v2795_v18  ;;  %v2804_v33 = vsub.f32 %v5847_v5, %v2772_v23  ;;  %v2829_v8 = vmul.f32 1.442695, %v2801_v20 }
0x12e2   :  { %v4364_v2 = vpack.c.bf16 %v4482_v60, %v4481_v52  ;;  %4651 = vpow2.f32 %v2825_v59  ;;  %v2831_v26 = vmul.f32 1.442695, %v2802_v21  ;;  %v2833_v39 = vmul.f32 1.442695, %v2803_v7  ;;  %v5936_v59 = vld [vmem:[%s6162_s4 + $0xa] ss:$0 sm:$0xff] }
0x12e3   :  { %v5871_v56 = vpop.eup %4633  ;;  %4653 = vpow2.f32 %v2827_v25  ;;  %v2835_v5 = vmul.f32 1.442695, %v2804_v33 }
0x12e4   :  { %v5874_v24 = vpop.eup %4635  ;;  %4365 = vmatprep.subr.bf16.mxu0 %v4364_v2  ;;  %4655 = vpow2.f32 %v2817_v1 }
0x12e5   :  { %v5876_v41 = vpop.eup %4637  ;;  %4367 = vmatpush3.bf16.msra.mxu0 %v4364_v2  ;;  %v2853_v3 = vrot.slane %v5874_v24, 7  ;;  %4657 = vpow2.f32 %v2829_v8 }
0x12e6   :  { %v5879_v16 = vpop.eup %4639  ;;  %v2855_v51 = vrot.slane %v5876_v41, 6  ;;  %4659 = vpow2.f32 %v2831_v26 }
0x12e7   :  { %v5882_v32 = vpop.eup %4641  ;;  %v2854_v27 = vsel %vm598_vm12, %v2853_v3, %v5871_v56  ;;  %v2857_v48 = vrot.slane %v5879_v16, 5  ;;  %4661 = vpow2.f32 %v2833_v39 }
0x12e8   :  { %v2856_v40 = vsel %vm601_vm13, %v2855_v51, %v2854_v27  ;;  %v5888_v47 = vpop.eup %4643  ;;  %4663 = vpow2.f32 %v2835_v5  ;;  %v2859_v17 = vrot.slane %v5882_v32, 4 }
0x12e9   :  { %v5890_v46 = vpop.eup %4645  ;;  %v2858_v0 = vsel %vm604_vm14, %v2857_v48, %v2856_v40  ;;  %v2861_v15 = vrot.slane %v5888_v47, 3 }
0x12ea   :  { %v5893_v53 = vpop.eup %4647  ;;  %v2865_v36 = vrot.slane %v5890_v46, 1  ;;  %v2860_v34 = vsel %vm607_vm15, %v2859_v17, %v2858_v0 }
0x12eb   :  { %v5897_v45 = vpop.eup %4649  ;;  %v2862_v12 = vsel %vm610_vm0, %v2861_v15, %v2860_v34 }
0x12ec   :  { %v5899_v62 = vpop.eup %4651  ;;  %v2866_v9 = vsel %vm595_vm11, %v5893_v53, %v2865_v36  ;;  %v2867_v49 = vrot.slane %v5897_v45, 7 }
0x12ed   :  { %v5905_v13 = vpop.eup %4653  ;;  %v2869_v37 = vrot.slane %v5899_v62, 6 }
0x12ee   :  { %v2868_v50 = vsel %vm598_vm12, %v2867_v49, %v2866_v9  ;;  %v2871_v18 = vrot.slane %v5905_v13, 5  ;;  %v4656_v11 = vpop.eup %4655 }
0x12ef   :  { %v2870_v55 = vsel %vm601_vm13, %v2869_v37, %v2868_v50  ;;  %v5913_v38 = vpop.eup %4657  ;;  %v2863_v14 = vrot.slane %v4656_v11, 2 }
0x12f0   :  { %v2872_v6 = vsel %vm604_vm14, %v2871_v18, %v2870_v55  ;;  %v5916_v42 = vpop.eup %4659  ;;  %v2873_v29 = vrot.slane %v5913_v38, 4 }
0x12f1   :  { %v5919_v63 = vpop.eup %4661  ;;  %v2864_v10 = vsel %vm613_vm1, %v2863_v14, %v2862_v12  ;;  %v2875_v54 = vrot.slane %v5916_v42, 3 }
0x12f2   :  { %v2883_v61 = vsel %vm1134_vm3, %v2864_v10, 0.0  ;;  %v2874_v58 = vsel %vm607_vm15, %v2873_v29, %v2872_v6  ;;  %v2877_v35 = vrot.slane %v5919_v63, 2  ;;  %v5926_v22 = vpop.eup %4663 }
0x12f3   :  { %2884 = vadd.xlane.f32.xlu1 %v2883_v61  ;;  %v2876_v43 = vsel %vm610_vm0, %v2875_v54, %v2874_v58  ;;  %v2879_v28 = vrot.slane %v5926_v22, 1 }
0x12f4   :  { %v2878_v20 = vsel %vm613_vm1, %v2877_v35, %v2876_v43 }
0x12f5   :  { %v2886_v19 = vsel %vm631_vm2, %v2878_v20, 0.0  ;;  %v2889_v4 = vsel %vm1141_vm4, %v2879_v28, 0.0 }
0x12f7   :  { %2887 = vadd.xlane.f32.xlu1 %v2886_v19 }
0x12fb   :  { %2890 = vadd.xlane.f32.xlu1 %v2889_v4 }
0x1303   :  { %v4170_v23 = vpop.f32.mrb[12].mxu1 }
0x1304   :  { %v3167_v60 = vadd.f32 %v4170_v23, %v5936_v59  ;;  %v3161_v25 = vpop.f32.mrb[13].mxu1 }
0x1305   :  { %v3162_v52 = vadd.f32 %v5936_v59, %v3161_v25 }
0x1306   :  { %v5941_v21 = vadd.f32 %v3167_v60, %v5503_v31 }
0x1307   :  { %v5946_v2 = vadd.f32 %v3162_v52, %v5501_v57 }
0x1308   :  { %v3189_v7 = vsel %vm188_vm8, %v5941_v21, 0.0 }
0x1309   :  { %3190 = vadd.xlane.f32.xlu1 %v3189_v7  ;;  %v3186_v1 = vsel %vm188_vm8, %v5946_v2, 0.0 }
0x130d   :  { %3187 = vadd.xlane.f32.xlu1 %v3186_v1 }
0x1380   :  { %v2885_v33 = vpop.xlane.xlu1 %2884 }
0x1381   :  { %4665 = vrcp.f32 %v2885_v33 }
0x1384   :  { %v2888_v8 = vpop.xlane.xlu1 %2887 }
0x1385   :  { %4667 = vrcp.f32 %v2888_v8 }
0x1388   :  { %v2891_v26 = vpop.xlane.xlu1 %2890 }
0x1389   :  { %4669 = vrcp.f32 %v2891_v26 }
0x138b   :  { %v4666_v3 = vpop.eup %4665 }
0x138c   :  { %v2898_v31 = vrot.slane %v4666_v3, 1  ;;  %v2899_v39 = vrot.slane %v4666_v3, 2  ;;  %v2900_v51 = vrot.slane %v4666_v3, 3  ;;  %v2901_v5 = vrot.slane %v4666_v3, 4 }
0x138d   :  { %v2902_v27 = vrot.slane %v4666_v3, 5  ;;  %v2903_v40 = vrot.slane %v4666_v3, 6  ;;  %v2928_v57 = vmul.f32 %v4666_v3, %v5871_v56 }
0x138e   :  { %v2929_v48 = vmul.f32 %v5874_v24, %v2898_v31  ;;  %v2930_v0 = vmul.f32 %v5876_v41, %v2899_v39  ;;  %v2931_v17 = vmul.f32 %v5879_v16, %v2900_v51  ;;  %v2932_v36 = vmul.f32 %v5882_v32, %v2901_v5 }
0x138f   :  { %v4668_v34 = vpop.eup %4667  ;;  %v2933_v9 = vmul.f32 %v5888_v47, %v2902_v27  ;;  %v2934_v49 = vmul.f32 %v4656_v11, %v2903_v40  ;;  %v2960_v15 = vrot.slane %v2928_v57, 1 }
0x1390   :  { %v2904_v37 = vrot.slane %v4668_v34, 7  ;;  %v2962_v50 = vrot.slane %v2930_v0, 7  ;;  %v2964_v18 = vrot.slane %v2931_v17, 6  ;;  %v2966_v12 = vrot.slane %v2932_v36, 5 }
0x1391   :  { %v2961_v55 = vsel %vm595_vm11, %v2929_v48, %v2960_v15  ;;  %v2968_v56 = vrot.slane %v2933_v9, 4  ;;  %v2970_v14 = vrot.slane %v2934_v49, 3  ;;  %v2905_v24 = vrot.slane %v4668_v34, 1 }
0x1392   :  { %v2935_v41 = vmul.f32 %v5890_v46, %v2904_v37  ;;  %v2963_v16 = vsel %vm598_vm12, %v2962_v50, %v2961_v55  ;;  %v2906_v6 = vrot.slane %v4668_v34, 2  ;;  %v2907_v32 = vrot.slane %v4668_v34, 3 }
0x1393   :  { %v4670_v29 = vpop.eup %4669  ;;  %v2965_v47 = vsel %vm601_vm13, %v2964_v18, %v2963_v16  ;;  %v2908_v11 = vrot.slane %v4668_v34, 4  ;;  %v2909_v10 = vrot.slane %v4668_v34, 5  ;;  %v2910_v54 = vrot.slane %v4668_v34, 6 }
0x1394   :  { %v2911_v61 = vrot.slane %v4670_v29, 7  ;;  %v2967_v58 = vsel %vm604_vm14, %v2966_v12, %v2965_v47  ;;  %v2972_v35 = vrot.slane %v2935_v41, 2  ;;  %v2936_v43 = vmul.f32 %v4668_v34, %v5893_v53 }
0x1395   :  { %v2969_v20 = vsel %vm607_vm15, %v2968_v56, %v2967_v58  ;;  %v2937_v46 = vmul.f32 %v5897_v45, %v2905_v24  ;;  %v2938_v19 = vmul.f32 %v5899_v62, %v2906_v6  ;;  %v2939_v28 = vmul.f32 %v5905_v13, %v2907_v32  ;;  %v3818_v56 = vld [vmem:[%s6167_s8 + $0x38] sm:$0xff] }
0x1396   :  { %v2943_v4 = vmul.f32 %v5926_v22, %v2911_v61  ;;  %v2971_v23 = vsel %vm610_vm0, %v2970_v14, %v2969_v20  ;;  %v2940_v60 = vmul.f32 %v5913_v38, %v2908_v11  ;;  %v2941_v52 = vmul.f32 %v5916_v42, %v2909_v10  ;;  %v3191_v5 = vpop.xlane.xlu1 %3190 }
0x1397   :  { %v2973_v25 = vsel %vm613_vm1, %v2972_v35, %v2971_v23  ;;  %v2974_v7 = vrot.slane %v2936_v43, 1  ;;  %v2976_v53 = vrot.slane %v2938_v19, 7  ;;  %v2942_v45 = vmul.f32 %v5919_v63, %v2910_v54  ;;  %v6023_v23 = vld [vmem:[%s6162_s4 + $0xc] ss:$0 sm:$0xff] }
0x1398   :  { %4157 = vmatprep.mubr.msk.f32.mxu0 %vm631_vm2, %v2973_v25  ;;  %v2978_v1 = vrot.slane %v2939_v28, 6  ;;  %v2980_v22 = vrot.slane %v2940_v60, 5  ;;  %v2986_v33 = vrot.slane %v2943_v4, 2  ;;  %v2982_v38 = vrot.slane %v2941_v52, 4  ;;  %v6018_v28 = vld [vmem:[%s6162_s4 + $0xb] ss:$0 sm:$0xff] }
0x1399   :  { %v2975_v62 = vsel %vm595_vm11, %v2937_v46, %v2974_v7  ;;  %v2984_v3 = vrot.slane %v2942_v45, 3  ;;  %v3199_v34 = vmul.f32 0.03125, %v3191_v5 }
0x139a   :  { %v2977_v13 = vsel %vm598_vm12, %v2976_v53, %v2975_v62  ;;  %v3188_v27 = vpop.xlane.xlu1 %3187  ;;  %v3826_v62 = vld [vmem:[%s6168_s10 + $0x88] sm:$0xff] }
0x139b   :  { %v2979_v8 = vsel %vm601_vm13, %v2978_v1, %v2977_v13  ;;  %v3198_v48 = vmul.f32 0.03125, %v3188_v27  ;;  %v3203_v37 = vsub.f32 %v5941_v21, %v3199_v34  ;;  %v3825_v1 = vld [vmem:[%s6168_s10 + $0x80] sm:$0xff]  ;;  %v3827_v13 = vld [vmem:[%s6168_s10 + $0x90] sm:$0xff]  ;;  %v3840_v34 = vld [vmem:[%s6168_s10 + $0xf8] sm:$0xff] }
0x139c   :  { %v2981_v26 = vsel %vm604_vm14, %v2980_v22, %v2979_v8  ;;  %v4384_v22 = vpack.c.bf16 %v3826_v62, %v3825_v1  ;;  %v3835_v27 = vld [vmem:[%s6168_s10 + $0xd0] sm:$0xff] }
0x139d   :  { %v2983_v42 = vsel %vm607_vm15, %v2982_v38, %v2981_v26  ;;  %v3202_v9 = vsub.f32 %v5946_v2, %v3198_v48  ;;  %v3207_v55 = vmul.f32 %v3203_v37, %v3203_v37  ;;  %v3817_v2 = vld [vmem:[%s6167_s8 + $0x30] sm:$0xff]  ;;  %v3829_v38 = vld [vmem:[%s6168_s10 + $0xa0] sm:$0xff]  ;;  %v3830_v26 = vld [vmem:[%s6168_s10 + $0xa8] sm:$0xff] }
0x139e   :  { %v2985_v31 = vsel %vm610_vm0, %v2984_v3, %v2983_v42  ;;  %v4380_v14 = vpack.c.bf16 %v3818_v56, %v3817_v2  ;;  %4385 = vmatprep.subr.bf16.mxu1 %v4384_v22  ;;  %v4392_v3 = vpack.c.bf16 %v3830_v26, %v3829_v38  ;;  %v3831_v42 = vld [vmem:[%s6168_s10 + $0xb0] sm:$0xff]  ;;  %v3837_v48 = vld [vmem:[%s6168_s10 + $0xe0] sm:$0xff] }
0x139f   :  { %v2987_v39 = vsel %vm613_vm1, %v2986_v33, %v2985_v31  ;;  %v3206_v18 = vmul.f32 %v3202_v9, %v3202_v9  ;;  %v3828_v33 = vld [vmem:[%s6168_s10 + $0x98] sm:$0xff]  ;;  %4387 = vmatpush3.bf16.msra.mxu1 %v4384_v22 }
0x13a0   :  { %4158 = vmatmul.mubr.msk.f32.vlgmr.msra.gmra.mrb[26].mxu0 %vm631_vm2, %v2987_v39  ;;  %v4388_v8 = vpack.c.bf16 %v3828_v33, %v3827_v13  ;;  %v3832_v31 = vld [vmem:[%s6168_s10 + $0xb8] sm:$0xff] }
0x13a1   :  { %v3210_v12 = vsel %vm188_vm8, %v3206_v18, 0.0  ;;  %v4396_v39 = vpack.c.bf16 %v3832_v31, %v3831_v42 }
0x13a2   :  { %4389 = vmatprep.subr.bf16.mxu1 %v4388_v8 }
0x13a3   :  { %4391 = vmatpush3.bf16.msra.mxu1 %v4388_v8 }
0x13a4   :  { %4393 = vmatprep.subr.bf16.mxu1 %v4392_v3 }
0x13a7   :  { %4395 = vmatpush3.bf16.msra.mxu1 %v4392_v3 }
0x13a8   :  { %4397 = vmatprep.subr.bf16.mxu1 %v4396_v39 }
0x13ab   :  { %4399 = vmatpush3.bf16.msra.mxu1 %v4396_v39  ;;  %v3841_v39 = vld [vmem:[%s6162_s4 + $0xd] ss:$0 sm:$0xff] }
0x1473   :  { %v4159_v63 = vpop.f32.mrb[26].mxu0 }
0x1474   :  { %v3064_v51 = vpop.f32.mrb[27].mxu0 }
0x1475   :  { %4171 = vmatprep.mubr.msk.f32.mxu1 %vm188_vm8, %v3064_v51  ;;  %v3834_v51 = vld [vmem:[%s6168_s10 + $0xc8] sm:$0xff] }
0x1476   :  { %4172 = vmatmul.mubr.msk.f32.gmra.mrb[14].mxu1 %vm188_vm8, %v4159_v63  ;;  %v3833_v63 = vld [vmem:[%s6168_s10 + $0xc0] sm:$0xff] }
0x1477   :  { %v4400_v5 = vpack.c.bf16 %v3834_v51, %v3833_v63 }
0x1479   :  { %4401 = vmatprep.subr.bf16.mxu1 %v4400_v5 }
0x147a   :  { %4403 = vmatpush3.bf16.msra.mxu1 %v4400_v5 }
0x1549   :  { %v4173_v40 = vpop.f32.mrb[14].mxu1 }
0x154a   :  { %v3171_v57 = vpop.f32.mrb[15].mxu1  ;;  %v3177_v0 = vadd.f32 %v4173_v40, %v5936_v59  ;;  %v3836_v40 = vld [vmem:[%s6168_s10 + $0xd8] sm:$0xff] }
0x154b   :  { %v3172_v17 = vadd.f32 %v5936_v59, %v3171_v57  ;;  %v3815_v59 = vld [vmem:[%s6167_s8 + $0x20] sm:$0xff]  ;;  %v4404_v57 = vpack.c.bf16 %v3836_v40, %v3835_v27 }
0x154c   :  { %v3183_v15 = vadd.f32 %v3177_v0, %v5513_v30  ;;  %v3816_v30 = vld [vmem:[%s6167_s8 + $0x28] sm:$0xff] }
0x154d   :  { %v3182_v36 = vadd.f32 %v3172_v17, %v5511_v44  ;;  %v3213_v44 = vsel %vm188_vm8, %v3207_v55, 0.0  ;;  %v4376_v21 = vpack.c.bf16 %v3816_v30, %v3815_v59  ;;  %4405 = vmatprep.subr.bf16.mxu1 %v4404_v57  ;;  %v3838_v0 = vld [vmem:[%s6168_s10 + $0xe8] sm:$0xff] }
0x154e   :  { %v3195_v50 = vsel %vm188_vm8, %v3183_v15, 0.0  ;;  %4407 = vmatpush3.bf16.msra.mxu1 %v4404_v57  ;;  %v4408_v17 = vpack.c.bf16 %v3838_v0, %v3837_v48  ;;  %v3621_v48 = vld [vmem:[%s6171_s12] sm:$0xff]  ;;  %v3622_v0 = vld [vmem:[%s6171_s12 + $0x8] sm:$0xff] }
0x154f   :  { %v3192_v49 = vsel %vm188_vm8, %v3182_v36, 0.0  ;;  %4377 = vmatprep.subr.bf16.mxu0 %v4376_v21 }
0x1550   :  { %3193 = vadd.xlane.f32.xlu1 %v3192_v49  ;;  %4379 = vmatpush3.bf16.msra.mxu0 %v4376_v21 }
0x1551   :  { %4381 = vmatprep.subr.bf16.mxu0 %v4380_v14  ;;  %4409 = vmatprep.subr.bf16.mxu1 %v4408_v17 }
0x1552   :  { %4411 = vmatpush3.bf16.msra.mxu1 %v4408_v17  ;;  %v4424_v17 = vpack.c.bf16 %v3622_v0, %v3621_v48 }
0x1554   :  { %3196 = vadd.xlane.f32.xlu1 %v3195_v50  ;;  %4383 = vmatpush3.bf16.msra.mxu0 %v4380_v14 }
0x1558   :  { %3211 = vadd.xlane.f32.xlu1 %v3210_v12 }
0x155c   :  { %3214 = vadd.xlane.f32.xlu1 %v3213_v44 }
0x15dd   :  { %v3194_v24 = vpop.xlane.xlu1 %3193 }
0x15de   :  { %v3200_v41 = vmul.f32 0.03125, %v3194_v24  ;;  %v3820_v24 = vld [vmem:[%s6169_s9 + $0x1] ss:$0 sm:$0xff] }
0x15e0   :  { %v6005_v16 = vsub.f32 %v3182_v36, %v3200_v41  ;;  %v3839_v36 = vld [vmem:[%s6168_s10 + $0xf0] sm:$0xff] }
0x15e1   :  { %v3197_v6 = vpop.xlane.xlu1 %3196 }
0x15e2   :  { %v3201_v32 = vmul.f32 0.03125, %v3197_v6  ;;  %v3208_v29 = vmul.f32 %v6005_v16, %v6005_v16 }
0x15e4   :  { %v6009_v47 = vsub.f32 %v3183_v15, %v3201_v32  ;;  %v3216_v11 = vsel %vm188_vm8, %v3208_v29, 0.0 }
0x15e5   :  { %3217 = vadd.xlane.f32.xlu0 %v3216_v11  ;;  %v3212_v10 = vpop.xlane.xlu1 %3211 }
0x15e6   :  { %v3222_v54 = vmul.f32 0.03125, %v3212_v10  ;;  %v3209_v61 = vmul.f32 %v6009_v47, %v6009_v47 }
0x15e8   :  { %v3226_v58 = vadd.f32 1e-05, %v3222_v54  ;;  %v3219_v35 = vsel %vm188_vm8, %v3209_v61, 0.0 }
0x15e9   :  { %3220 = vadd.xlane.f32.xlu1 %v3219_v35  ;;  %v3215_v43 = vpop.xlane.xlu1 %3214 }
0x15ea   :  { %4671 = vrsqrt.f32 %v3226_v58  ;;  %v3223_v20 = vmul.f32 0.03125, %v3215_v43 }
0x15ec   :  { %v3227_v46 = vadd.f32 1e-05, %v3223_v20 }
0x15ee   :  { %4673 = vrsqrt.f32 %v3227_v46  ;;  %v3495_v46 = vld [vmem:[%s6170_s11] sm:$0xff] }
0x15f4   :  { %v4672_v19 = vpop.eup %4671 }
0x15f5   :  { %v3234_v4 = vmul.f32 %v4672_v19, %v3202_v9  ;;  %v4412_v9 = vpack.c.bf16 %v3840_v34, %v3839_v36  ;;  %v3496_v19 = vld [vmem:[%s6170_s11 + $0x8] sm:$0xff] }
0x15f7   :  { %v3242_v60 = vmul.f32 %v6018_v28, %v3234_v4  ;;  %4413 = vmatprep.subr.bf16.mxu1 %v4412_v9  ;;  %v3497_v4 = vld [vmem:[%s6170_s11 + $0x10] sm:$0xff] }
0x15f8   :  { %v4674_v25 = vpop.eup %4673  ;;  %4415 = vmatpush3.bf16.msra.mxu1 %v4412_v9 }
0x15f9   :  { %v3235_v52 = vmul.f32 %v4674_v25, %v3203_v37  ;;  %v6027_v7 = vadd.f32 %v6023_v23, %v3242_v60  ;;  %4432 = vmatprep.subr.bf16.mxu1 %v4424_v17 }
0x15fb   :  { %4182 = vmatprep.mubr.msk.f32.mxu0 %vm188_vm8, %v6027_v7  ;;  %v3243_v53 = vmul.f32 %v6018_v28, %v3235_v52 }
0x15fd   :  { %v6033_v45 = vadd.f32 %v6023_v23, %v3243_v53 }
0x15ff   :  { %4183 = vmatmul.mubr.msk.f32.vlgmr.msra.gmra.mrb[28].mxu0 %vm188_vm8, %v6033_v45 }
0x1672   :  { %v3218_v49 = vpop.xlane.xlu0 %3217 }
0x1673   :  { %v3224_v15 = vmul.f32 0.03125, %v3218_v49 }
0x1675   :  { %v3228_v37 = vadd.f32 1e-05, %v3224_v15 }
0x1676   :  { %v3221_v50 = vpop.xlane.xlu1 %3220 }
0x1677   :  { %4675 = vrsqrt.f32 %v3228_v37  ;;  %v3225_v18 = vmul.f32 0.03125, %v3221_v50 }
0x1679   :  { %v3229_v12 = vadd.f32 1e-05, %v3225_v18  ;;  %v3842_v18 = vld [vmem:[%s6162_s4 + $0xe] ss:$0 sm:$0xff] }
0x167b   :  { %4677 = vrsqrt.f32 %v3229_v12 }
0x1681   :  { %v4676_v55 = vpop.eup %4675 }
0x1682   :  { %v3236_v44 = vmul.f32 %v4676_v55, %v6005_v16 }
0x1684   :  { %v3244_v59 = vmul.f32 %v6018_v28, %v3236_v44 }
0x1685   :  { %v4678_v30 = vpop.eup %4677 }
0x1686   :  { %v6088_v21 = vadd.f32 %v6023_v23, %v3244_v59  ;;  %v3237_v2 = vmul.f32 %v4678_v30, %v6009_v47 }
0x1688   :  { %4185 = vmatprep.mubr.msk.f32.mxu0 %vm188_vm8, %v6088_v21  ;;  %v3245_v56 = vmul.f32 %v6018_v28, %v3237_v2  ;;  %v4416_v28 = vpack.c.bf16 %v3496_v19, %v3495_v46 }
0x168a   :  { %v6095_v14 = vadd.f32 %v6023_v23, %v3245_v56  ;;  %4417 = vmatprep.subr.bf16.mxu0 %v4416_v28  ;;  %v3498_v23 = vld [vmem:[%s6170_s11 + $0x18] sm:$0xff] }
0x168b   :  { %4419 = vmatpush3.bf16.msra.mxu0 %v4416_v28  ;;  %v4420_v60 = vpack.c.bf16 %v3498_v23, %v3497_v4  ;;  %v3847_v23 = vld [vmem:[%s6172_s13] ss:$0 sm:$0xff] }
0x168c   :  { %4186 = vmatmul.mubr.msk.f32.gmra.mrb[30].mxu0 %vm188_vm8, %v6095_v14 }
0x168d   :  { %4421 = vmatprep.subr.bf16.mxu0 %v4420_v60 }
0x168f   :  { %4423 = vmatpush3.bf16.msra.mxu0 %v4420_v60 }
0x1690   :  { %4425 = vmatprep.subr.bf16.mxu0 %v4424_v17 }
0x16d2   :  { %v4184_v41 = vpop.f32.mrb[28].mxu0 }
0x16d3   :  { %v3351_v16 = vadd.f32 %v4184_v41, %v3820_v24  ;;  %v3345_v6 = vpop.f32.mrb[29].mxu0 }
0x16d4   :  { %v3346_v32 = vadd.f32 %v3820_v24, %v3345_v6 }
0x16d5   :  { %v3369_v29 = vmul.f32 0.70710677, %v3351_v16  ;;  %v3365_v35 = vmul.f32 0.5, %v3351_v16 }
0x16d6   :  { %v3368_v47 = vmul.f32 0.70710677, %v3346_v32  ;;  %v3364_v61 = vmul.f32 0.5, %v3346_v32 }
0x16d7   :  { %4679 = verf.f32 %v3369_v29 }
0x16d8   :  { %4681 = verf.f32 %v3368_v47 }
0x16e1   :  { %v4680_v11 = vpop.eup %4679 }
0x16e2   :  { %v4682_v10 = vpop.eup %4681  ;;  %v3377_v54 = vadd.f32 1.0, %v4680_v11 }
0x16e3   :  { %v3376_v58 = vadd.f32 1.0, %v4682_v10 }
0x16e4   :  { %v3381_v20 = vmul.f32 %v3377_v54, %v3365_v35 }
0x16e5   :  { %v3380_v43 = vmul.f32 %v3376_v58, %v3364_v61 }
0x16e7   :  { %4220 = vmatprep.mubr.f32.mxu1 %v3380_v43 }
0x16e8   :  { %4221 = vmatmul.mubr.f32.vlgmr.msra.gmra.mrb[16].mxu1 %v3381_v20 }
0x16e9   :  { %4434 = vmatpush3.bf16.msra.mxu1 %v4424_v17 }
0x175f   :  { %v4187_v25 = vpop.f32.mrb[30].mxu0 }
0x1760   :  { %v3361_v52 = vadd.f32 %v4187_v25, %v3820_v24  ;;  %v3355_v53 = vpop.f32.mrb[31].mxu0 }
0x1761   :  { %v3356_v1 = vadd.f32 %v3820_v24, %v3355_v53 }
0x1762   :  { %v3371_v62 = vmul.f32 0.70710677, %v3361_v52  ;;  %v3367_v3 = vmul.f32 0.5, %v3361_v52 }
0x1763   :  { %v3370_v13 = vmul.f32 0.70710677, %v3356_v1  ;;  %v3366_v38 = vmul.f32 0.5, %v3356_v1 }
0x1764   :  { %4683 = verf.f32 %v3371_v62 }
0x1765   :  { %4685 = verf.f32 %v3370_v13 }
0x176e   :  { %v4684_v22 = vpop.eup %4683 }
0x176f   :  { %v4686_v33 = vpop.eup %4685  ;;  %v3379_v8 = vadd.f32 1.0, %v4684_v22 }
0x1770   :  { %v3378_v26 = vadd.f32 1.0, %v4686_v33 }
0x1771   :  { %v3383_v31 = vmul.f32 %v3379_v8, %v3367_v3 }
0x1772   :  { %v3382_v42 = vmul.f32 %v3378_v26, %v3366_v38 }
0x1774   :  { %4223 = vmatprep.mubr.f32.mxu1 %v3382_v42 }
0x1775   :  { %4224 = vmatmul.mubr.f32.gmra.mrb[18].mxu1 %v3383_v31 }
0x17bb   :  { %v4222_v63 = vpop.f32.mrb[16].mxu1 }
0x17bc   :  { %v3478_v51 = vadd.f32 %v4222_v63, %v3841_v39  ;;  %v3472_v5 = vpop.f32.mrb[17].mxu1 }
0x17bd   :  { %v3473_v27 = vadd.f32 %v3841_v39, %v3472_v5 }
0x17be   :  { %v3492_v57 = vadd.f32 %v3478_v51, %v6033_v45  ;;  %v3624_v45 = vld [vmem:[%s6171_s12 + $0x18] sm:$0xff] }
0x17bf   :  { %v3491_v40 = vadd.f32 %v3473_v27, %v6027_v7  ;;  %v3623_v7 = vld [vmem:[%s6171_s12 + $0x10] sm:$0xff] }
0x17c0   :  { %v4428_v36 = vpack.c.bf16 %v3624_v45, %v3623_v7 }
0x17c1   :  { %4234 = vmatprep.mubr.msk.f32.mxu0 %vm188_vm8, %v3491_v40 }
0x17c2   :  { %4235 = vmatmul.mubr.msk.f32.vlgmr.msra.gmra.mrb[32].mxu0 %vm188_vm8, %v3492_v57  ;;  %4433 = vmatprep.subr.bf16.mxu1 %v4428_v36 }
0x17c3   :  { %4427 = vmatpush3.bf16.msra.mxu0 %v4424_v17  ;;  %4435 = vmatpush3.bf16.msra.mxu1 %v4428_v36 }
0x17c4   :  { %4429 = vmatprep.subr.bf16.mxu0 %v4428_v36 }
0x17c7   :  { %4431 = vmatpush3.bf16.msra.mxu0 %v4428_v36 }
0x1848   :  { %v4225_v34 = vpop.f32.mrb[18].mxu1 }
0x1849   :  { %v3488_v9 = vadd.f32 %v4225_v34, %v3841_v39  ;;  %v3482_v49 = vpop.f32.mrb[19].mxu1 }
0x184a   :  { %v3483_v15 = vadd.f32 %v3841_v39, %v3482_v49 }
0x184b   :  { %v3494_v50 = vadd.f32 %v3488_v9, %v6095_v14 }
0x184c   :  { %v3493_v37 = vadd.f32 %v3483_v15, %v6088_v21 }
0x184e   :  { %4237 = vmatprep.mubr.msk.f32.mxu0 %vm188_vm8, %v3493_v37 }
0x184f   :  { %4238 = vmatmul.mubr.msk.f32.gmra.mrb[34].mxu0 %vm188_vm8, %v3494_v50 }
0x1895   :  { %v4236_v12 = vpop.f32.mrb[32].mxu0 }
0x1896   :  { %v3588_v55 = vadd.f32 %v4236_v12, %v3842_v18  ;;  %v3582_v44 = vpop.f32.mrb[33].mxu0 }
0x1897   :  { %v3583_v59 = vadd.f32 %v3842_v18, %v3582_v44 }
0x1898   :  { %v3606_v30 = vmul.f32 0.70710677, %v3588_v55  ;;  %v3602_v16 = vmul.f32 0.5, %v3588_v55 }
0x1899   :  { %v3605_v2 = vmul.f32 0.70710677, %v3583_v59  ;;  %v3601_v14 = vmul.f32 0.5, %v3583_v59 }
0x189a   :  { %4687 = verf.f32 %v3606_v30 }
0x189b   :  { %4689 = verf.f32 %v3605_v2 }
0x18a4   :  { %v4688_v56 = vpop.eup %4687 }
0x18a5   :  { %v4690_v21 = vpop.eup %4689  ;;  %v3614_v24 = vadd.f32 1.0, %v4688_v56 }
0x18a6   :  { %v3613_v41 = vadd.f32 1.0, %v4690_v21 }
0x18a7   :  { %v3618_v32 = vmul.f32 %v3614_v24, %v3602_v16 }
0x18a8   :  { %v3617_v6 = vmul.f32 %v3613_v41, %v3601_v14 }
0x18aa   :  { %4248 = vmatprep.mubr.msk.f32.mxu0 %vm188_vm8, %v3617_v6 }
0x18ab   :  { %4249 = vmatmul.mubr.msk.f32.vlgmr.msra.gmra.mrb[36].mxu0 %vm188_vm8, %v3618_v32 }
0x1922   :  { %v4239_v29 = vpop.f32.mrb[34].mxu0 }
0x1923   :  { %v3598_v47 = vadd.f32 %v4239_v29, %v3842_v18  ;;  %v3592_v11 = vpop.f32.mrb[35].mxu0 }
0x1924   :  { %v3593_v10 = vadd.f32 %v3842_v18, %v3592_v11 }
0x1925   :  { %v3608_v54 = vmul.f32 0.70710677, %v3598_v47  ;;  %v3604_v19 = vmul.f32 0.5, %v3598_v47 }
0x1926   :  { %v3607_v61 = vmul.f32 0.70710677, %v3593_v10  ;;  %v3603_v20 = vmul.f32 0.5, %v3593_v10 }
0x1927   :  { %4691 = verf.f32 %v3608_v54 }
0x1928   :  { %4693 = verf.f32 %v3607_v61 }
0x1931   :  { %v4692_v58 = vpop.eup %4691 }
0x1932   :  { %v4694_v35 = vpop.eup %4693  ;;  %v3616_v43 = vadd.f32 1.0, %v4692_v58 }
0x1933   :  { %v3615_v46 = vadd.f32 1.0, %v4694_v35 }
0x1934   :  { %v3620_v4 = vmul.f32 %v3616_v43, %v3604_v19 }
0x1935   :  { %v3619_v28 = vmul.f32 %v3615_v46, %v3603_v20 }
0x1937   :  { %4251 = vmatprep.mubr.msk.f32.mxu1 %vm188_vm8, %v3619_v28 }
0x1938   :  { %4252 = vmatmul.mubr.msk.f32.vlgmr.msra.gmra.mrb[20].mxu1 %vm188_vm8, %v3620_v4 }
0x197e   :  { %v4250_v60 = vpop.f32.mrb[36].mxu0 }
0x197f   :  { %v3716_v25 = vadd.f32 %v4250_v60, %v3847_v23  ;;  %v3710_v52 = vpop.f32.mrb[37].mxu0 }
0x1980   :  { %v3711_v53 = vadd.f32 %v3847_v23, %v3710_v52 }
0x1981   :  { %3730 = vst [vmem:[%s6173_s14 + $0x8] sm:$0xff] %v3716_v25 }
0x1982   :  { %3729 = vst [vmem:[%s6173_s14] sm:$0xff] %v3711_v53 }
0x1a0b   :  { %v4253_v1 = vpop.f32.mrb[20].mxu1 }
0x1a0c   :  { %v3726_v62 = vadd.f32 %v4253_v1, %v3847_v23  ;;  %v3720_v13 = vpop.f32.mrb[21].mxu1 }
0x1a0d   :  { %v3721_v22 = vadd.f32 %v3847_v23, %v3720_v13 }
0x1a0e   :  { %3732 = vst [vmem:[%s6173_s14 + $0x18] sm:$0xff] %v3726_v62 }
0x1a0f   :  { %3731 = vst [vmem:[%s6173_s14 + $0x10] sm:$0xff] %v3721_v22 }

</bundles_post_ra>
